<compile_context>
chip_gen: v5e
topology: v5e:2x2
jax: 0.10.0
libtpu: 0.0.40
codegen_flags: <defaults>
</compile_context>

<pallas_src>
import jax
import jax.numpy as jnp
from jax.experimental import pallas as pl
from jax.experimental.pallas import tpu as pltpu

# ---- small synthetic config (consistent with the module's __init__) ----
VOCAB = 100        # tokenizer.vocab_size
PAD_ID = 0         # tokenizer.pad_token_id
B = 2              # batch
S_SRC = 8          # source sequence length
S_TRG = 8          # target sequence length
H = 32             # hidden_dim
NH = 4             # num_heads
HD = H // NH       # head dim
FFN = 64           # ffn_dim
NL_ENC = 2         # enc_num_layers
NL_DEC = 2         # dec_num_layers
MAXLEN = 16        # max_len
EPS = 1e-5         # layernorm_eps
SCALE = 1.0 / (HD ** 0.5)
NEG = -1e9         # masked_fill value
# dropout is identity at inference time.


# ----------------------------------------------------------------------------
# in-kernel helpers (operate on values, all ops lower cleanly in Mosaic)
# ----------------------------------------------------------------------------
def _split_heads(m, offset):
    """(S, k*H) column-block starting at `offset` -> (NH, S, HD)."""
    return jnp.stack(
        [m[:, offset + h * HD: offset + (h + 1) * HD] for h in range(NH)], axis=0)


def _layernorm(x, g, b):
    mu = jnp.mean(x, axis=-1, keepdims=True)
    var = jnp.mean((x - mu) ** 2, axis=-1, keepdims=True)   # biased var (torch default)
    return (x - mu) * jax.lax.rsqrt(var + EPS) * g + b


def _softmax(s):
    s = s - jnp.max(s, axis=-1, keepdims=True)
    e = jnp.exp(s)
    return e * pl.reciprocal(jnp.sum(e, axis=-1, keepdims=True), approx=True)


def _mha(x_q, x_kv, w_qkv=None, b_qkv=None, w_q=None, b_q=None, w_kv=None, b_kv=None,
         w_o3=None, b_o=None, mask=None):
    """Multi-head attention. Either fused self-attn (w_qkv) or cross-attn (w_q + w_kv)."""
    if w_qkv is not None:                       # self-attention: one (H,3H) matmul
        qkv = jnp.dot(x_q, w_qkv, preferred_element_type=jnp.float32) + b_qkv
        q3 = _split_heads(qkv, 0)
        k3 = _split_heads(qkv, H)
        v3 = _split_heads(qkv, 2 * H)
    else:                                       # cross-attention: q from x_q, kv from x_kv
        q = jnp.dot(x_q, w_q, preferred_element_type=jnp.float32) + b_q
        kv = jnp.dot(x_kv, w_kv, preferred_element_type=jnp.float32) + b_kv
        q3 = _split_heads(q, 0)
        k3 = _split_heads(kv, 0)
        v3 = _split_heads(kv, H)
    s = jnp.einsum('nqd,nkd->nqk', q3, k3, preferred_element_type=jnp.float32) * SCALE
    s = jnp.where(mask > 0.0, s, NEG)
    p = _softmax(s)                                             # (NH, Sq, Sk)
    ctx = jnp.einsum('nqk,nkd->nqd', p, v3, preferred_element_type=jnp.float32)
    proj = jnp.einsum('nqd,ndh->nqh', ctx, w_o3, preferred_element_type=jnp.float32)
    out = jnp.sum(proj, axis=0) + b_o                           # (Sq, H)
    return p, out


# ----------------------------------------------------------------------------
# fused transformer kernel (whole encoder stack + decoder stack + lm head)
# ----------------------------------------------------------------------------
def transformer_kernel(src_ref, trg_ref, ekm_ref, dm_ref,
                       e_wqkv, e_bqkv, e_wo3, e_w1, e_b1, e_w2, e_vec,
                       d_wsqkv, d_bsqkv, d_wso3, d_wcq, d_wckv, d_bckv, d_wco3,
                       d_w1, d_b1, d_w2, d_vec,
                       w_fc, b_fc,
                       cross_ref, logits_ref):
    x = src_ref[0]                 # (S_SRC, H)  float32 (no redundant astype)
    ekm = ekm_ref[...]             # (1, 1, S_SRC)  key mask (1=keep)
    dm = dm_ref[...]               # (1, S_TRG, S_TRG)  causal+pad mask

    # ------------------------- encoder stack -------------------------
    for l in range(NL_ENC):        # static unroll across layers (fused in one kernel)
        vec = e_vec[l]             # (6, H): [b_o, b_2, g1, be1, g2, be2]
        _, attn = _mha(x, x, w_qkv=e_wqkv[l], b_qkv=e_bqkv[l],
                       w_o3=e_wo3[l], b_o=vec[0:1], mask=ekm)
        y1 = _layernorm(x + attn, vec[2:3], vec[3:4])
        h1 = jnp.maximum(
            jnp.dot(y1, e_w1[l], preferred_element_type=jnp.float32) + e_b1[l], 0.0)
        f = jnp.dot(h1, e_w2[l], preferred_element_type=jnp.float32) + vec[1:2]
        x = _layernorm(y1 + f, vec[4:5], vec[5:6])
    enc_out = x                    # (S_SRC, H) — stays in VMEM, never round-trips to HBM

    # ------------------------- decoder stack -------------------------
    y = trg_ref[0]                 # (S_TRG, H)
    for l in range(NL_DEC):
        vec = d_vec[l]             # (10, H): [b_so, b_cq, b_co, b_2, g1, be1, g2, be2, g3, be3]

        # masked self-attention
        _, sattn = _mha(y, y, w_qkv=d_wsqkv[l], b_qkv=d_bsqkv[l],
                        w_o3=d_wso3[l], b_o=vec[0:1], mask=dm)
        y1 = _layernorm(y + sattn, vec[4:5], vec[5:6])

        # cross-attention on encoder output
        pc, cattn = _mha(y1, enc_out, w_q=d_wcq[l], b_q=vec[1:2],
                         w_kv=d_wckv[l], b_kv=d_bckv[l],
                         w_o3=d_wco3[l], b_o=vec[2:3], mask=ekm)
        cross_ref[0, l * NH:(l + 1) * NH] = pc      # one store per layer (all heads at once)
        y2 = _layernorm(y1 + cattn, vec[6:7], vec[7:8])

        # FFN
        h1 = jnp.maximum(
            jnp.dot(y2, d_w1[l], preferred_element_type=jnp.float32) + d_b1[l], 0.0)
        f = jnp.dot(h1, d_w2[l], preferred_element_type=jnp.float32) + vec[3:4]
        y = _layernorm(y2 + f, vec[8:9], vec[9:10])

    # ------------------------- lm head (Transformer.fc) -------------------------
    logits_ref[0] = jnp.dot(y, w_fc[...], preferred_element_type=jnp.float32) + b_fc[...]


# ----------------------------------------------------------------------------
# wrapper: one pallas_call for the whole forward pass
# ----------------------------------------------------------------------------
def transformer_pallas(src_emb, trg_emb, enc_kmask, dec_mask,
                       enc_params, dec_params, fc_params):
    w_fc, b_fc = fc_params
    weights = tuple(enc_params) + tuple(dec_params) + (w_fc, b_fc)

    def full(a):
        return pl.BlockSpec(a.shape, lambda b, _n=a.ndim: (0,) * _n)

    in_specs = [pl.BlockSpec((1, S_SRC, H), lambda b: (b, 0, 0)),
                pl.BlockSpec((1, S_TRG, H), lambda b: (b, 0, 0)),
                pl.BlockSpec((1, 1, S_SRC), lambda b: (b, 0, 0)),
                pl.BlockSpec((1, S_TRG, S_TRG), lambda b: (b, 0, 0))]
    in_specs += [full(w) for w in weights]

    out_specs = (pl.BlockSpec((1, NL_DEC * NH, S_TRG, S_SRC), lambda b: (b, 0, 0, 0)),
                 pl.BlockSpec((1, S_TRG, VOCAB), lambda b: (b, 0, 0)))
    out_shape = (jax.ShapeDtypeStruct((B, NL_DEC * NH, S_TRG, S_SRC), jnp.float32),
                 jax.ShapeDtypeStruct((B, S_TRG, VOCAB), jnp.float32))

    # rough cost estimate for XLA scheduling
    flops_enc = NL_ENC * (2 * S_SRC * H * 3 * H + 4 * NH * S_SRC * S_SRC * HD
                          + 2 * NH * S_SRC * HD * H + 4 * S_SRC * H * FFN)
    flops_dec = NL_DEC * (2 * S_TRG * H * 3 * H + 4 * NH * S_TRG * S_TRG * HD
                          + 2 * NH * S_TRG * HD * H
                          + 2 * S_TRG * H * H + 4 * S_SRC * H * H
                          + 4 * NH * S_TRG * S_SRC * HD + 2 * NH * S_TRG * HD * H
                          + 4 * S_TRG * H * FFN)
    flops = B * (flops_enc + flops_dec + 2 * S_TRG * H * VOCAB)
    transc = B * (NL_ENC * NH * S_SRC * S_SRC
                  + NL_DEC * NH * (S_TRG * S_TRG + S_TRG * S_SRC)
                  + 8 * (NL_ENC + NL_DEC) * max(S_SRC, S_TRG))
    all_inputs = (src_emb, trg_emb, enc_kmask, dec_mask) + weights
    in_bytes = sum(int(a.size) * a.dtype.itemsize for a in all_inputs)
    out_bytes = (B * NL_DEC * NH * S_TRG * S_SRC + B * S_TRG * VOCAB) * 4
    cost = pl.CostEstimate(flops=int(flops), transcendentals=int(transc),
                           bytes_accessed=int(in_bytes + out_bytes))

    cross, logits = pl.pallas_call(
        transformer_kernel,
        out_shape=out_shape,
        grid=(B,),
        in_specs=in_specs,
        out_specs=out_specs,
        compiler_params=pltpu.CompilerParams(dimension_semantics=("parallel",)),
        cost_estimate=cost,
    )(src_emb, trg_emb, enc_kmask, dec_mask, *weights)

    cross = cross.reshape(B, NL_DEC, NH, S_TRG, S_SRC)
    return cross, logits


# ----------------------------------------------------------------------------
# parameters / embeddings / masks (plain JAX glue)
# ----------------------------------------------------------------------------
def sinusoidal_pos_encoding(max_len, d):
    pos = jnp.arange(max_len, dtype=jnp.float32)[:, None]
    i = jnp.arange(d // 2, dtype=jnp.float32)[None, :]
    angle = pos / jnp.power(10000.0, (2.0 * i) / d)
    pe = jnp.zeros((max_len, d), dtype=jnp.float32)
    pe = pe.at[:, 0::2].set(jnp.sin(angle))
    pe = pe.at[:, 1::2].set(jnp.cos(angle))
    return pe


def init_params(key):
    """Deterministic synthetic parameters, packed for the fused kernel."""
    keys = jax.random.split(key, 96)
    it = iter(keys)
    nxt = lambda: next(it)

    def w(k, fi, fo):
        return (1.0 / jnp.sqrt(fi)) * jax.random.normal(k, (fi, fo), jnp.float32)

    def bvec(k, fo):
        return 0.02 * jax.random.normal(k, (fo,), jnp.float32)

    # Token embedding tables (encoder + decoder), pad row zeroed (padding_idx semantics).
    emb_enc = 0.02 * jax.random.normal(nxt(), (VOCAB, H), jnp.float32)
    emb_enc = emb_enc.at[PAD_ID].set(0.0)
    emb_dec = 0.02 * jax.random.normal(nxt(), (VOCAB, H), jnp.float32)
    emb_dec = emb_dec.at[PAD_ID].set(0.0)
    # TODO(synk): some TokenEmbeddings variants scale by sqrt(hidden_dim); omitted here.
    pe = sinusoidal_pos_encoding(MAXLEN, H)

    ones_h = jnp.ones((H,), jnp.float32)
    zeros_h = jnp.zeros((H,), jnp.float32)

    # --- encoder layers (packed) ---
    e_wqkv, e_bqkv, e_wo3, e_w1, e_b1, e_w2, e_vec = [], [], [], [], [], [], []
    for _ in range(NL_ENC):
        wq, wk, wv, wo = w(nxt(), H, H), w(nxt(), H, H), w(nxt(), H, H), w(nxt(), H, H)
        w1, w2 = w(nxt(), H, FFN), w(nxt(), FFN, H)
        bqkv = bvec(nxt(), 3 * H)
        bo, b1, b2 = bvec(nxt(), H), bvec(nxt(), FFN), bvec(nxt(), H)
        e_wqkv.append(jnp.concatenate([wq, wk, wv], axis=1))        # (H, 3H)
        e_bqkv.append(bqkv.reshape(1, 3 * H))
        e_wo3.append(wo.reshape(NH, HD, H))                         # (NH, HD, H)
        e_w1.append(w1)
        e_b1.append(b1.reshape(1, FFN))
        e_w2.append(w2)
        e_vec.append(jnp.stack([bo, b2, ones_h, zeros_h, ones_h, zeros_h], axis=0))  # (6, H)
    enc_params = tuple(jnp.stack(lst, axis=0) for lst in
                       (e_wqkv, e_bqkv, e_wo3, e_w1, e_b1, e_w2, e_vec))

    # --- decoder layers (packed) ---
    (d_wsqkv, d_bsqkv, d_wso3, d_wcq, d_wckv, d_bckv, d_wco3,
     d_w1, d_b1, d_w2, d_vec) = ([] for _ in range(11))
    for _ in range(NL_DEC):
        wsq, wsk, wsv, wso = w(nxt(), H, H), w(nxt(), H, H), w(nxt(), H, H), w(nxt(), H, H)
        wcq, wck, wcv, wco = w(nxt(), H, H), w(nxt(), H, H), w(nxt(), H, H), w(nxt(), H, H)
        w1, w2 = w(nxt(), H, FFN), w(nxt(), FFN, H)
        bsqkv, bckv = bvec(nxt(), 3 * H), bvec(nxt(), 2 * H)
        bso, bcq, bco = bvec(nxt(), H), bvec(nxt(), H), bvec(nxt(), H)
        b1, b2 = bvec(nxt(), FFN), bvec(nxt(), H)
        d_wsqkv.append(jnp.concatenate([wsq, wsk, wsv], axis=1))    # (H, 3H)
        d_bsqkv.append(bsqkv.reshape(1, 3 * H))
        d_wso3.append(wso.reshape(NH, HD, H))
        d_wcq.append(wcq)
        d_wckv.append(jnp.concatenate([wck, wcv], axis=1))          # (H, 2H)
        d_bckv.append(bckv.reshape(1, 2 * H))
        d_wco3.append(wco.reshape(NH, HD, H))
        d_w1.append(w1)
        d_b1.append(b1.reshape(1, FFN))
        d_w2.append(w2)
        d_vec.append(jnp.stack([bso, bcq, bco, b2,
                                ones_h, zeros_h, ones_h, zeros_h, ones_h, zeros_h],
                               axis=0))                             # (10, H)
    dec_params = tuple(jnp.stack(lst, axis=0) for lst in
                       (d_wsqkv, d_bsqkv, d_wso3, d_wcq, d_wckv, d_bckv, d_wco3,
                        d_w1, d_b1, d_w2, d_vec))

    # --- final linear head ---
    w_fc = w(nxt(), H, VOCAB)
    b_fc = 0.02 * jax.random.normal(nxt(), (1, VOCAB), jnp.float32)

    return emb_enc, emb_dec, pe, enc_params, dec_params, (w_fc, b_fc)


def transformer_forward(src, trg, params):
    """Full Transformer.forward: returns (list of per-layer cross-attn weights, logits)."""
    emb_enc, emb_dec, pe, enc_params, dec_params, fc_params = params

    # make_mask(src, trg)  (plain JAX glue — boolean/host-style ops)
    enc_kmask = (src != PAD_ID).astype(jnp.float32)[:, None, :]           # (B, 1, S_SRC)
    causal = jnp.tril(jnp.ones((S_TRG, S_TRG), jnp.float32))
    trg_keep = (trg != PAD_ID).astype(jnp.float32)
    dec_mask = ((causal[None, :, :] + trg_keep[:, None, :]) >= 2.0).astype(jnp.float32)
    # enc_dec_mask == enc_mask (same key mask reused in the kernel)

    # TODO(synk): token-embedding gather + sinusoidal positional add kept in plain JAX
    #             (a data-dependent gather has no clean tiny-Pallas equivalent).
    src_emb = emb_enc[src] + pe[:S_SRC][None, :, :]
    trg_emb = emb_dec[trg] + pe[:S_TRG][None, :, :]
    # dropout_layer -> identity at inference.

    cross, logits = transformer_pallas(src_emb, trg_emb, enc_kmask, dec_mask,
                                       enc_params, dec_params, fc_params)
    all_cross_attn_wts = [cross[:, l] for l in range(NL_DEC)]
    # (encoder self-attention weights are discarded by Transformer.forward -> not produced)
    return all_cross_attn_wts, logits


if __name__ == "__main__":
    key = jax.random.PRNGKey(0)
    k_src, k_trg, k_par = jax.random.split(key, 3)

    src = jax.random.randint(k_src, (B, S_SRC), minval=1, maxval=VOCAB, dtype=jnp.int32)
    trg = jax.random.randint(k_trg, (B, S_TRG), minval=1, maxval=VOCAB, dtype=jnp.int32)
    # add some padding to exercise the masks
    src = src.at[0, -2:].set(PAD_ID)
    trg = trg.at[1, -3:].set(PAD_ID)

    params = init_params(k_par)
    all_cross_attn_wts, logits = transformer_forward(src, trg, params)

    jax.block_until_ready(logits)
    for a in all_cross_attn_wts:
        jax.block_until_ready(a)

    assert logits.shape == (B, S_TRG, VOCAB)
    assert len(all_cross_attn_wts) == NL_DEC
    assert all(a.shape == (B, NH, S_TRG, S_SRC) for a in all_cross_attn_wts)
    assert bool(jnp.all(jnp.isfinite(logits)))
    # cross-attention rows sum to ~1 (approx reciprocal -> loose tolerance)
    rows = jnp.sum(all_cross_attn_wts[0], axis=-1)
    assert jnp.allclose(rows, 1.0, atol=2e-2)
    # padded source positions receive ~zero cross-attention
    assert float(jnp.max(all_cross_attn_wts[0][0, :, :, S_SRC - 2:])) < 1e-6

    print("KERNEL_OK")
</pallas_src>

<mosaic_0001>
module attributes {stable_mosaic.version = 11 : i64} {
  func.func @transformer_kernel(%arg0: i32, %arg1: memref<1x8x32xf32, #tpu.memory_space<vmem>>, %arg2: memref<1x8x32xf32, #tpu.memory_space<vmem>>, %arg3: memref<1x1x8xf32, #tpu.memory_space<vmem>>, %arg4: memref<1x8x8xf32, #tpu.memory_space<vmem>>, %arg5: memref<2x32x96xf32, #tpu.memory_space<vmem>>, %arg6: memref<2x1x96xf32, #tpu.memory_space<vmem>>, %arg7: memref<2x4x8x32xf32, #tpu.memory_space<vmem>>, %arg8: memref<2x32x64xf32, #tpu.memory_space<vmem>>, %arg9: memref<2x1x64xf32, #tpu.memory_space<vmem>>, %arg10: memref<2x64x32xf32, #tpu.memory_space<vmem>>, %arg11: memref<2x6x32xf32, #tpu.memory_space<vmem>>, %arg12: memref<2x32x96xf32, #tpu.memory_space<vmem>>, %arg13: memref<2x1x96xf32, #tpu.memory_space<vmem>>, %arg14: memref<2x4x8x32xf32, #tpu.memory_space<vmem>>, %arg15: memref<2x32x32xf32, #tpu.memory_space<vmem>>, %arg16: memref<2x32x64xf32, #tpu.memory_space<vmem>>, %arg17: memref<2x1x64xf32, #tpu.memory_space<vmem>>, %arg18: memref<2x4x8x32xf32, #tpu.memory_space<vmem>>, %arg19: memref<2x32x64xf32, #tpu.memory_space<vmem>>, %arg20: memref<2x1x64xf32, #tpu.memory_space<vmem>>, %arg21: memref<2x64x32xf32, #tpu.memory_space<vmem>>, %arg22: memref<2x10x32xf32, #tpu.memory_space<vmem>>, %arg23: memref<32x100xf32, #tpu.memory_space<vmem>>, %arg24: memref<1x100xf32, #tpu.memory_space<vmem>>, %arg25: memref<1x8x8x8xf32, #tpu.memory_space<vmem>>, %arg26: memref<1x8x100xf32, #tpu.memory_space<vmem>>) attributes {dimension_semantics = [#tpu.dimension_semantics<parallel>], iteration_bounds = array<i64: 2>, scalar_prefetch = 0 : i64, scratch_operands = 0 : i64, tpu.core_type = #tpu.core_type<tc>, window_params = [{transform_indices = @transform_0, window_bounds = array<i64: 1, 8, 32>}, {transform_indices = @transform_1, window_bounds = array<i64: 1, 8, 32>}, {transform_indices = @transform_2, window_bounds = array<i64: 1, 1, 8>}, {transform_indices = @transform_3, window_bounds = array<i64: 1, 8, 8>}, {pipeline_mode = #tpu.pipeline_mode<synchronous>, transform_indices = @transform_4, window_bounds = array<i64: 2, 32, 96>}, {pipeline_mode = #tpu.pipeline_mode<synchronous>, transform_indices = @transform_5, window_bounds = array<i64: 2, 1, 96>}, {pipeline_mode = #tpu.pipeline_mode<synchronous>, transform_indices = @transform_6, window_bounds = array<i64: 2, 4, 8, 32>}, {pipeline_mode = #tpu.pipeline_mode<synchronous>, transform_indices = @transform_7, window_bounds = array<i64: 2, 32, 64>}, {pipeline_mode = #tpu.pipeline_mode<synchronous>, transform_indices = @transform_8, window_bounds = array<i64: 2, 1, 64>}, {pipeline_mode = #tpu.pipeline_mode<synchronous>, transform_indices = @transform_9, window_bounds = array<i64: 2, 64, 32>}, {pipeline_mode = #tpu.pipeline_mode<synchronous>, transform_indices = @transform_10, window_bounds = array<i64: 2, 6, 32>}, {pipeline_mode = #tpu.pipeline_mode<synchronous>, transform_indices = @transform_11, window_bounds = array<i64: 2, 32, 96>}, {pipeline_mode = #tpu.pipeline_mode<synchronous>, transform_indices = @transform_12, window_bounds = array<i64: 2, 1, 96>}, {pipeline_mode = #tpu.pipeline_mode<synchronous>, transform_indices = @transform_13, window_bounds = array<i64: 2, 4, 8, 32>}, {pipeline_mode = #tpu.pipeline_mode<synchronous>, transform_indices = @transform_14, window_bounds = array<i64: 2, 32, 32>}, {pipeline_mode = #tpu.pipeline_mode<synchronous>, transform_indices = @transform_15, window_bounds = array<i64: 2, 32, 64>}, {pipeline_mode = #tpu.pipeline_mode<synchronous>, transform_indices = @transform_16, window_bounds = array<i64: 2, 1, 64>}, {pipeline_mode = #tpu.pipeline_mode<synchronous>, transform_indices = @transform_17, window_bounds = array<i64: 2, 4, 8, 32>}, {pipeline_mode = #tpu.pipeline_mode<synchronous>, transform_indices = @transform_18, window_bounds = array<i64: 2, 32, 64>}, {pipeline_mode = #tpu.pipeline_mode<synchronous>, transform_indices = @transform_19, window_bounds = array<i64: 2, 1, 64>}, {pipeline_mode = #tpu.pipeline_mode<synchronous>, transform_indices = @transform_20, window_bounds = array<i64: 2, 64, 32>}, {pipeline_mode = #tpu.pipeline_mode<synchronous>, transform_indices = @transform_21, window_bounds = array<i64: 2, 10, 32>}, {pipeline_mode = #tpu.pipeline_mode<synchronous>, transform_indices = @transform_22, window_bounds = array<i64: 32, 100>}, {pipeline_mode = #tpu.pipeline_mode<synchronous>, transform_indices = @transform_23, window_bounds = array<i64: 1, 100>}, {transform_indices = @transform_24, window_bounds = array<i64: 1, 8, 8, 8>}, {transform_indices = @transform_25, window_bounds = array<i64: 1, 8, 100>}]} {
    %c0 = arith.constant 0 : index
    %c0_0 = arith.constant 0 : index
    %c0_1 = arith.constant 0 : index
    %0 = vector.load %arg1[%c0, %c0_0, %c0_1] : memref<1x8x32xf32, #tpu.memory_space<vmem>>, vector<1x8x32xf32>
    %1 = vector.shape_cast %0 : vector<1x8x32xf32> to vector<8x32xf32>
    %c0_2 = arith.constant 0 : index
    %c0_3 = arith.constant 0 : index
    %c0_4 = arith.constant 0 : index
    %2 = vector.load %arg3[%c0_2, %c0_3, %c0_4] : memref<1x1x8xf32, #tpu.memory_space<vmem>>, vector<1x1x8xf32>
    %c0_5 = arith.constant 0 : index
    %c0_6 = arith.constant 0 : index
    %c0_7 = arith.constant 0 : index
    %3 = vector.load %arg4[%c0_5, %c0_6, %c0_7] : memref<1x8x8xf32, #tpu.memory_space<vmem>>, vector<1x8x8xf32>
    %c0_8 = arith.constant 0 : index
    %c0_9 = arith.constant 0 : index
    %c0_10 = arith.constant 0 : index
    %4 = vector.load %arg11[%c0_8, %c0_9, %c0_10] : memref<2x6x32xf32, #tpu.memory_space<vmem>>, vector<1x6x32xf32>
    %5 = vector.shape_cast %4 : vector<1x6x32xf32> to vector<6x32xf32>
    %c0_11 = arith.constant 0 : index
    %c0_12 = arith.constant 0 : index
    %c0_13 = arith.constant 0 : index
    %6 = vector.load %arg5[%c0_11, %c0_12, %c0_13] : memref<2x32x96xf32, #tpu.memory_space<vmem>>, vector<1x32x96xf32>
    %7 = vector.shape_cast %6 : vector<1x32x96xf32> to vector<32x96xf32>
    %c0_14 = arith.constant 0 : index
    %c0_15 = arith.constant 0 : index
    %c0_16 = arith.constant 0 : index
    %8 = vector.load %arg6[%c0_14, %c0_15, %c0_16] : memref<2x1x96xf32, #tpu.memory_space<vmem>>, vector<1x1x96xf32>
    %9 = vector.shape_cast %8 : vector<1x1x96xf32> to vector<1x96xf32>
    %c0_17 = arith.constant 0 : index
    %c0_18 = arith.constant 0 : index
    %c0_19 = arith.constant 0 : index
    %c0_20 = arith.constant 0 : index
    %10 = vector.load %arg7[%c0_17, %c0_18, %c0_19, %c0_20] : memref<2x4x8x32xf32, #tpu.memory_space<vmem>>, vector<1x4x8x32xf32>
    %11 = vector.shape_cast %10 : vector<1x4x8x32xf32> to vector<4x8x32xf32>
    %12 = vector.extract_strided_slice %5 {offsets = [0, 0], sizes = [1, 32], strides = [1, 1]} : vector<6x32xf32> to vector<1x32xf32>
    %cst = arith.constant dense<0.000000e+00> : vector<8x96xf32>
    %13 = tpu.matmul %1, %7, %cst {dimension_numbers = #tpu.dot_dimension_numbers<[1], [0], [0], [1], [0, 0, 1, 1], [], []>} : vector<8x32xf32>, vector<32x96xf32>, vector<8x96xf32> -> vector<8x96xf32>
    %14 = vector.broadcast %9 : vector<1x96xf32> to vector<8x96xf32>
    %15 = arith.addf %13, %14 : vector<8x96xf32>
    %16 = vector.extract_strided_slice %15 {offsets = [0, 0], sizes = [8, 8], strides = [1, 1]} : vector<8x96xf32> to vector<8x8xf32>
    %17 = vector.extract_strided_slice %15 {offsets = [0, 8], sizes = [8, 8], strides = [1, 1]} : vector<8x96xf32> to vector<8x8xf32>
    %18 = vector.extract_strided_slice %15 {offsets = [0, 16], sizes = [8, 8], strides = [1, 1]} : vector<8x96xf32> to vector<8x8xf32>
    %19 = vector.extract_strided_slice %15 {offsets = [0, 24], sizes = [8, 8], strides = [1, 1]} : vector<8x96xf32> to vector<8x8xf32>
    %20 = vector.shape_cast %16 : vector<8x8xf32> to vector<1x8x8xf32>
    %21 = vector.shape_cast %17 : vector<8x8xf32> to vector<1x8x8xf32>
    %22 = vector.shape_cast %18 : vector<8x8xf32> to vector<1x8x8xf32>
    %23 = vector.shape_cast %19 : vector<8x8xf32> to vector<1x8x8xf32>
    %24 = tpu.concatenate %20, %21, %22, %23 in 0 : vector<1x8x8xf32>, vector<1x8x8xf32>, vector<1x8x8xf32>, vector<1x8x8xf32> -> vector<4x8x8xf32>
    %25 = vector.extract_strided_slice %15 {offsets = [0, 32], sizes = [8, 8], strides = [1, 1]} : vector<8x96xf32> to vector<8x8xf32>
    %26 = vector.extract_strided_slice %15 {offsets = [0, 40], sizes = [8, 8], strides = [1, 1]} : vector<8x96xf32> to vector<8x8xf32>
    %27 = vector.extract_strided_slice %15 {offsets = [0, 48], sizes = [8, 8], strides = [1, 1]} : vector<8x96xf32> to vector<8x8xf32>
    %28 = vector.extract_strided_slice %15 {offsets = [0, 56], sizes = [8, 8], strides = [1, 1]} : vector<8x96xf32> to vector<8x8xf32>
    %29 = vector.shape_cast %25 : vector<8x8xf32> to vector<1x8x8xf32>
    %30 = vector.shape_cast %26 : vector<8x8xf32> to vector<1x8x8xf32>
    %31 = vector.shape_cast %27 : vector<8x8xf32> to vector<1x8x8xf32>
    %32 = vector.shape_cast %28 : vector<8x8xf32> to vector<1x8x8xf32>
    %33 = tpu.concatenate %29, %30, %31, %32 in 0 : vector<1x8x8xf32>, vector<1x8x8xf32>, vector<1x8x8xf32>, vector<1x8x8xf32> -> vector<4x8x8xf32>
    %34 = vector.extract_strided_slice %15 {offsets = [0, 64], sizes = [8, 8], strides = [1, 1]} : vector<8x96xf32> to vector<8x8xf32>
    %35 = vector.extract_strided_slice %15 {offsets = [0, 72], sizes = [8, 8], strides = [1, 1]} : vector<8x96xf32> to vector<8x8xf32>
    %36 = vector.extract_strided_slice %15 {offsets = [0, 80], sizes = [8, 8], strides = [1, 1]} : vector<8x96xf32> to vector<8x8xf32>
    %37 = vector.extract_strided_slice %15 {offsets = [0, 88], sizes = [8, 8], strides = [1, 1]} : vector<8x96xf32> to vector<8x8xf32>
    %38 = vector.shape_cast %34 : vector<8x8xf32> to vector<1x8x8xf32>
    %39 = vector.shape_cast %35 : vector<8x8xf32> to vector<1x8x8xf32>
    %40 = vector.shape_cast %36 : vector<8x8xf32> to vector<1x8x8xf32>
    %41 = vector.shape_cast %37 : vector<8x8xf32> to vector<1x8x8xf32>
    %42 = tpu.concatenate %38, %39, %40, %41 in 0 : vector<1x8x8xf32>, vector<1x8x8xf32>, vector<1x8x8xf32>, vector<1x8x8xf32> -> vector<4x8x8xf32>
    "tpu.trace_start"() <{level = 10 : i32, message = "nqd,nkd->nqk"}> : () -> ()
    %cst_21 = arith.constant dense<0.000000e+00> : vector<4x8x8xf32>
    %43 = tpu.matmul %24, %33, %cst_21 {dimension_numbers = #tpu.dot_dimension_numbers<[2], [2], [1], [1], [0, 0, 0, 1, 1, 1], [0], [0]>} : vector<4x8x8xf32>, vector<4x8x8xf32>, vector<4x8x8xf32> -> vector<4x8x8xf32>
    "tpu.trace_stop"() : () -> ()
    %cst_22 = arith.constant 0.353553385 : f32
    %44 = vector.broadcast %cst_22 : f32 to vector<4x8x8xf32>
    %45 = arith.mulf %43, %44 : vector<4x8x8xf32>
    %cst_23 = arith.constant 0.000000e+00 : f32
    %46 = vector.broadcast %cst_23 : f32 to vector<1x1x8xf32>
    %47 = arith.cmpf ogt, %2, %46 : vector<1x1x8xf32>
    %cst_24 = arith.constant -1.000000e+09 : f32
    %48 = vector.shape_cast %47 : vector<1x1x8xi1> to vector<1x1x8xi1>
    %49 = vector.broadcast %48 : vector<1x1x8xi1> to vector<4x8x8xi1>
    %50 = vector.broadcast %cst_24 : f32 to vector<4x8x8xf32>
    %51 = arith.select %49, %45, %50 : vector<4x8x8xi1>, vector<4x8x8xf32>
    %cst_25 = arith.constant dense<0xFF800000> : vector<4x8xf32>
    %52 = vector.multi_reduction <maximumf>, %51, %cst_25 [2] : vector<4x8x8xf32> to vector<4x8xf32>
    %53 = vector.shape_cast %52 : vector<4x8xf32> to vector<4x8x1xf32>
    %54 = vector.broadcast %53 : vector<4x8x1xf32> to vector<4x8x8xf32>
    %55 = arith.subf %51, %54 : vector<4x8x8xf32>
    %56 = math.exp %55 : vector<4x8x8xf32>
    %cst_26 = arith.constant dense<0.000000e+00> : vector<4x8xf32>
    %57 = vector.multi_reduction <add>, %56, %cst_26 [2] : vector<4x8x8xf32> to vector<4x8xf32>
    %58 = vector.shape_cast %57 : vector<4x8xf32> to vector<4x8x1xf32>
    %59 = tpu.reciprocal %58 {approx = true} : vector<4x8x1xf32> -> vector<4x8x1xf32>
    %60 = vector.broadcast %59 : vector<4x8x1xf32> to vector<4x8x8xf32>
    %61 = arith.mulf %56, %60 : vector<4x8x8xf32>
    "tpu.trace_start"() <{level = 10 : i32, message = "nqk,nkd->nqd"}> : () -> ()
    %cst_27 = arith.constant dense<0.000000e+00> : vector<4x8x8xf32>
    %62 = tpu.matmul %61, %42, %cst_27 {dimension_numbers = #tpu.dot_dimension_numbers<[2], [1], [1], [2], [0, 0, 0, 1, 1, 2], [0], [0]>} : vector<4x8x8xf32>, vector<4x8x8xf32>, vector<4x8x8xf32> -> vector<4x8x8xf32>
    "tpu.trace_stop"() : () -> ()
    "tpu.trace_start"() <{level = 10 : i32, message = "nqd,ndh->nqh"}> : () -> ()
    %cst_28 = arith.constant dense<0.000000e+00> : vector<4x8x32xf32>
    %63 = tpu.matmul %62, %11, %cst_28 {dimension_numbers = #tpu.dot_dimension_numbers<[2], [1], [1], [2], [0, 0, 0, 1, 1, 2], [0], [0]>} : vector<4x8x8xf32>, vector<4x8x32xf32>, vector<4x8x32xf32> -> vector<4x8x32xf32>
    "tpu.trace_stop"() : () -> ()
    %cst_29 = arith.constant dense<0.000000e+00> : vector<8x32xf32>
    %64 = vector.multi_reduction <add>, %63, %cst_29 [0] : vector<4x8x32xf32> to vector<8x32xf32>
    %65 = vector.broadcast %12 : vector<1x32xf32> to vector<8x32xf32>
    %66 = arith.addf %64, %65 : vector<8x32xf32>
    %67 = arith.addf %1, %66 : vector<8x32xf32>
    %68 = vector.extract_strided_slice %5 {offsets = [2, 0], sizes = [1, 32], strides = [1, 1]} : vector<6x32xf32> to vector<1x32xf32>
    %69 = vector.extract_strided_slice %5 {offsets = [3, 0], sizes = [1, 32], strides = [1, 1]} : vector<6x32xf32> to vector<1x32xf32>
    %cst_30 = arith.constant dense<0.000000e+00> : vector<8xf32>
    %70 = vector.multi_reduction <add>, %67, %cst_30 [1] : vector<8x32xf32> to vector<8xf32>
    %71 = vector.shape_cast %70 : vector<8xf32> to vector<8x1xf32>
    %cst_31 = arith.constant 3.200000e+01 : f32
    %72 = vector.broadcast %cst_31 : f32 to vector<8x1xf32>
    %73 = arith.divf %71, %72 : vector<8x1xf32>
    %74 = vector.broadcast %73 : vector<8x1xf32> to vector<8x32xf32>
    %75 = arith.subf %67, %74 : vector<8x32xf32>
    %76 = arith.mulf %75, %75 : vector<8x32xf32>
    %cst_32 = arith.constant dense<0.000000e+00> : vector<8xf32>
    %77 = vector.multi_reduction <add>, %76, %cst_32 [1] : vector<8x32xf32> to vector<8xf32>
    %78 = vector.shape_cast %77 : vector<8xf32> to vector<8x1xf32>
    %cst_33 = arith.constant 3.200000e+01 : f32
    %79 = vector.broadcast %cst_33 : f32 to vector<8x1xf32>
    %80 = arith.divf %78, %79 : vector<8x1xf32>
    %81 = vector.broadcast %73 : vector<8x1xf32> to vector<8x32xf32>
    %82 = arith.subf %67, %81 : vector<8x32xf32>
    %cst_34 = arith.constant 9.99999974E-6 : f32
    %83 = vector.broadcast %cst_34 : f32 to vector<8x1xf32>
    %84 = arith.addf %80, %83 : vector<8x1xf32>
    %85 = math.rsqrt %84 : vector<8x1xf32>
    %86 = vector.broadcast %85 : vector<8x1xf32> to vector<8x32xf32>
    %87 = arith.mulf %82, %86 : vector<8x32xf32>
    %88 = vector.broadcast %68 : vector<1x32xf32> to vector<8x32xf32>
    %89 = arith.mulf %87, %88 : vector<8x32xf32>
    %90 = vector.broadcast %69 : vector<1x32xf32> to vector<8x32xf32>
    %91 = arith.addf %89, %90 : vector<8x32xf32>
    %c0_35 = arith.constant 0 : index
    %c0_36 = arith.constant 0 : index
    %c0_37 = arith.constant 0 : index
    %92 = vector.load %arg8[%c0_35, %c0_36, %c0_37] : memref<2x32x64xf32, #tpu.memory_space<vmem>>, vector<1x32x64xf32>
    %93 = vector.shape_cast %92 : vector<1x32x64xf32> to vector<32x64xf32>
    %cst_38 = arith.constant dense<0.000000e+00> : vector<8x64xf32>
    %94 = tpu.matmul %91, %93, %cst_38 {dimension_numbers = #tpu.dot_dimension_numbers<[1], [0], [0], [1], [0, 0, 1, 1], [], []>} : vector<8x32xf32>, vector<32x64xf32>, vector<8x64xf32> -> vector<8x64xf32>
    %c0_39 = arith.constant 0 : index
    %c0_40 = arith.constant 0 : index
    %c0_41 = arith.constant 0 : index
    %95 = vector.load %arg9[%c0_39, %c0_40, %c0_41] : memref<2x1x64xf32, #tpu.memory_space<vmem>>, vector<1x1x64xf32>
    %96 = vector.shape_cast %95 : vector<1x1x64xf32> to vector<1x64xf32>
    %97 = vector.broadcast %96 : vector<1x64xf32> to vector<8x64xf32>
    %98 = arith.addf %94, %97 : vector<8x64xf32>
    %cst_42 = arith.constant 0.000000e+00 : f32
    %99 = vector.broadcast %cst_42 : f32 to vector<8x64xf32>
    %100 = arith.maximumf %98, %99 : vector<8x64xf32>
    %c0_43 = arith.constant 0 : index
    %c0_44 = arith.constant 0 : index
    %c0_45 = arith.constant 0 : index
    %101 = vector.load %arg10[%c0_43, %c0_44, %c0_45] : memref<2x64x32xf32, #tpu.memory_space<vmem>>, vector<1x64x32xf32>
    %102 = vector.shape_cast %101 : vector<1x64x32xf32> to vector<64x32xf32>
    %cst_46 = arith.constant dense<0.000000e+00> : vector<8x32xf32>
    %103 = tpu.matmul %100, %102, %cst_46 {dimension_numbers = #tpu.dot_dimension_numbers<[1], [0], [0], [1], [0, 0, 1, 1], [], []>} : vector<8x64xf32>, vector<64x32xf32>, vector<8x32xf32> -> vector<8x32xf32>
    %104 = vector.extract_strided_slice %5 {offsets = [1, 0], sizes = [1, 32], strides = [1, 1]} : vector<6x32xf32> to vector<1x32xf32>
    %105 = vector.broadcast %104 : vector<1x32xf32> to vector<8x32xf32>
    %106 = arith.addf %103, %105 : vector<8x32xf32>
    %107 = arith.addf %91, %106 : vector<8x32xf32>
    %108 = vector.extract_strided_slice %5 {offsets = [4, 0], sizes = [1, 32], strides = [1, 1]} : vector<6x32xf32> to vector<1x32xf32>
    %109 = vector.extract_strided_slice %5 {offsets = [5, 0], sizes = [1, 32], strides = [1, 1]} : vector<6x32xf32> to vector<1x32xf32>
    %cst_47 = arith.constant dense<0.000000e+00> : vector<8xf32>
    %110 = vector.multi_reduction <add>, %107, %cst_47 [1] : vector<8x32xf32> to vector<8xf32>
    %111 = vector.shape_cast %110 : vector<8xf32> to vector<8x1xf32>
    %cst_48 = arith.constant 3.200000e+01 : f32
    %112 = vector.broadcast %cst_48 : f32 to vector<8x1xf32>
    %113 = arith.divf %111, %112 : vector<8x1xf32>
    %114 = vector.broadcast %113 : vector<8x1xf32> to vector<8x32xf32>
    %115 = arith.subf %107, %114 : vector<8x32xf32>
    %116 = arith.mulf %115, %115 : vector<8x32xf32>
    %cst_49 = arith.constant dense<0.000000e+00> : vector<8xf32>
    %117 = vector.multi_reduction <add>, %116, %cst_49 [1] : vector<8x32xf32> to vector<8xf32>
    %118 = vector.shape_cast %117 : vector<8xf32> to vector<8x1xf32>
    %cst_50 = arith.constant 3.200000e+01 : f32
    %119 = vector.broadcast %cst_50 : f32 to vector<8x1xf32>
    %120 = arith.divf %118, %119 : vector<8x1xf32>
    %121 = vector.broadcast %113 : vector<8x1xf32> to vector<8x32xf32>
    %122 = arith.subf %107, %121 : vector<8x32xf32>
    %cst_51 = arith.constant 9.99999974E-6 : f32
    %123 = vector.broadcast %cst_51 : f32 to vector<8x1xf32>
    %124 = arith.addf %120, %123 : vector<8x1xf32>
    %125 = math.rsqrt %124 : vector<8x1xf32>
    %126 = vector.broadcast %125 : vector<8x1xf32> to vector<8x32xf32>
    %127 = arith.mulf %122, %126 : vector<8x32xf32>
    %128 = vector.broadcast %108 : vector<1x32xf32> to vector<8x32xf32>
    %129 = arith.mulf %127, %128 : vector<8x32xf32>
    %130 = vector.broadcast %109 : vector<1x32xf32> to vector<8x32xf32>
    %131 = arith.addf %129, %130 : vector<8x32xf32>
    %c1 = arith.constant 1 : index
    %c0_52 = arith.constant 0 : index
    %c0_53 = arith.constant 0 : index
    %132 = vector.load %arg11[%c1, %c0_52, %c0_53] : memref<2x6x32xf32, #tpu.memory_space<vmem>>, vector<1x6x32xf32>
    %133 = vector.shape_cast %132 : vector<1x6x32xf32> to vector<6x32xf32>
    %c1_54 = arith.constant 1 : index
    %c0_55 = arith.constant 0 : index
    %c0_56 = arith.constant 0 : index
    %134 = vector.load %arg5[%c1_54, %c0_55, %c0_56] : memref<2x32x96xf32, #tpu.memory_space<vmem>>, vector<1x32x96xf32>
    %135 = vector.shape_cast %134 : vector<1x32x96xf32> to vector<32x96xf32>
    %c1_57 = arith.constant 1 : index
    %c0_58 = arith.constant 0 : index
    %c0_59 = arith.constant 0 : index
    %136 = vector.load %arg6[%c1_57, %c0_58, %c0_59] : memref<2x1x96xf32, #tpu.memory_space<vmem>>, vector<1x1x96xf32>
    %137 = vector.shape_cast %136 : vector<1x1x96xf32> to vector<1x96xf32>
    %c1_60 = arith.constant 1 : index
    %c0_61 = arith.constant 0 : index
    %c0_62 = arith.constant 0 : index
    %c0_63 = arith.constant 0 : index
    %138 = vector.load %arg7[%c1_60, %c0_61, %c0_62, %c0_63] : memref<2x4x8x32xf32, #tpu.memory_space<vmem>>, vector<1x4x8x32xf32>
    %139 = vector.shape_cast %138 : vector<1x4x8x32xf32> to vector<4x8x32xf32>
    %140 = vector.extract_strided_slice %133 {offsets = [0, 0], sizes = [1, 32], strides = [1, 1]} : vector<6x32xf32> to vector<1x32xf32>
    %cst_64 = arith.constant dense<0.000000e+00> : vector<8x96xf32>
    %141 = tpu.matmul %131, %135, %cst_64 {dimension_numbers = #tpu.dot_dimension_numbers<[1], [0], [0], [1], [0, 0, 1, 1], [], []>} : vector<8x32xf32>, vector<32x96xf32>, vector<8x96xf32> -> vector<8x96xf32>
    %142 = vector.broadcast %137 : vector<1x96xf32> to vector<8x96xf32>
    %143 = arith.addf %141, %142 : vector<8x96xf32>
    %144 = vector.extract_strided_slice %143 {offsets = [0, 0], sizes = [8, 8], strides = [1, 1]} : vector<8x96xf32> to vector<8x8xf32>
    %145 = vector.extract_strided_slice %143 {offsets = [0, 8], sizes = [8, 8], strides = [1, 1]} : vector<8x96xf32> to vector<8x8xf32>
    %146 = vector.extract_strided_slice %143 {offsets = [0, 16], sizes = [8, 8], strides = [1, 1]} : vector<8x96xf32> to vector<8x8xf32>
    %147 = vector.extract_strided_slice %143 {offsets = [0, 24], sizes = [8, 8], strides = [1, 1]} : vector<8x96xf32> to vector<8x8xf32>
    %148 = vector.shape_cast %144 : vector<8x8xf32> to vector<1x8x8xf32>
    %149 = vector.shape_cast %145 : vector<8x8xf32> to vector<1x8x8xf32>
    %150 = vector.shape_cast %146 : vector<8x8xf32> to vector<1x8x8xf32>
    %151 = vector.shape_cast %147 : vector<8x8xf32> to vector<1x8x8xf32>
    %152 = tpu.concatenate %148, %149, %150, %151 in 0 : vector<1x8x8xf32>, vector<1x8x8xf32>, vector<1x8x8xf32>, vector<1x8x8xf32> -> vector<4x8x8xf32>
    %153 = vector.extract_strided_slice %143 {offsets = [0, 32], sizes = [8, 8], strides = [1, 1]} : vector<8x96xf32> to vector<8x8xf32>
    %154 = vector.extract_strided_slice %143 {offsets = [0, 40], sizes = [8, 8], strides = [1, 1]} : vector<8x96xf32> to vector<8x8xf32>
    %155 = vector.extract_strided_slice %143 {offsets = [0, 48], sizes = [8, 8], strides = [1, 1]} : vector<8x96xf32> to vector<8x8xf32>
    %156 = vector.extract_strided_slice %143 {offsets = [0, 56], sizes = [8, 8], strides = [1, 1]} : vector<8x96xf32> to vector<8x8xf32>
    %157 = vector.shape_cast %153 : vector<8x8xf32> to vector<1x8x8xf32>
    %158 = vector.shape_cast %154 : vector<8x8xf32> to vector<1x8x8xf32>
    %159 = vector.shape_cast %155 : vector<8x8xf32> to vector<1x8x8xf32>
    %160 = vector.shape_cast %156 : vector<8x8xf32> to vector<1x8x8xf32>
    %161 = tpu.concatenate %157, %158, %159, %160 in 0 : vector<1x8x8xf32>, vector<1x8x8xf32>, vector<1x8x8xf32>, vector<1x8x8xf32> -> vector<4x8x8xf32>
    %162 = vector.extract_strided_slice %143 {offsets = [0, 64], sizes = [8, 8], strides = [1, 1]} : vector<8x96xf32> to vector<8x8xf32>
    %163 = vector.extract_strided_slice %143 {offsets = [0, 72], sizes = [8, 8], strides = [1, 1]} : vector<8x96xf32> to vector<8x8xf32>
    %164 = vector.extract_strided_slice %143 {offsets = [0, 80], sizes = [8, 8], strides = [1, 1]} : vector<8x96xf32> to vector<8x8xf32>
    %165 = vector.extract_strided_slice %143 {offsets = [0, 88], sizes = [8, 8], strides = [1, 1]} : vector<8x96xf32> to vector<8x8xf32>
    %166 = vector.shape_cast %162 : vector<8x8xf32> to vector<1x8x8xf32>
    %167 = vector.shape_cast %163 : vector<8x8xf32> to vector<1x8x8xf32>
    %168 = vector.shape_cast %164 : vector<8x8xf32> to vector<1x8x8xf32>
    %169 = vector.shape_cast %165 : vector<8x8xf32> to vector<1x8x8xf32>
    %170 = tpu.concatenate %166, %167, %168, %169 in 0 : vector<1x8x8xf32>, vector<1x8x8xf32>, vector<1x8x8xf32>, vector<1x8x8xf32> -> vector<4x8x8xf32>
    "tpu.trace_start"() <{level = 10 : i32, message = "nqd,nkd->nqk"}> : () -> ()
    %cst_65 = arith.constant dense<0.000000e+00> : vector<4x8x8xf32>
    %171 = tpu.matmul %152, %161, %cst_65 {dimension_numbers = #tpu.dot_dimension_numbers<[2], [2], [1], [1], [0, 0, 0, 1, 1, 1], [0], [0]>} : vector<4x8x8xf32>, vector<4x8x8xf32>, vector<4x8x8xf32> -> vector<4x8x8xf32>
    "tpu.trace_stop"() : () -> ()
    %cst_66 = arith.constant 0.353553385 : f32
    %172 = vector.broadcast %cst_66 : f32 to vector<4x8x8xf32>
    %173 = arith.mulf %171, %172 : vector<4x8x8xf32>
    %cst_67 = arith.constant 0.000000e+00 : f32
    %174 = vector.broadcast %cst_67 : f32 to vector<1x1x8xf32>
    %175 = arith.cmpf ogt, %2, %174 : vector<1x1x8xf32>
    %cst_68 = arith.constant -1.000000e+09 : f32
    %176 = vector.shape_cast %175 : vector<1x1x8xi1> to vector<1x1x8xi1>
    %177 = vector.broadcast %176 : vector<1x1x8xi1> to vector<4x8x8xi1>
    %178 = vector.broadcast %cst_68 : f32 to vector<4x8x8xf32>
    %179 = arith.select %177, %173, %178 : vector<4x8x8xi1>, vector<4x8x8xf32>
    %cst_69 = arith.constant dense<0xFF800000> : vector<4x8xf32>
    %180 = vector.multi_reduction <maximumf>, %179, %cst_69 [2] : vector<4x8x8xf32> to vector<4x8xf32>
    %181 = vector.shape_cast %180 : vector<4x8xf32> to vector<4x8x1xf32>
    %182 = vector.broadcast %181 : vector<4x8x1xf32> to vector<4x8x8xf32>
    %183 = arith.subf %179, %182 : vector<4x8x8xf32>
    %184 = math.exp %183 : vector<4x8x8xf32>
    %cst_70 = arith.constant dense<0.000000e+00> : vector<4x8xf32>
    %185 = vector.multi_reduction <add>, %184, %cst_70 [2] : vector<4x8x8xf32> to vector<4x8xf32>
    %186 = vector.shape_cast %185 : vector<4x8xf32> to vector<4x8x1xf32>
    %187 = tpu.reciprocal %186 {approx = true} : vector<4x8x1xf32> -> vector<4x8x1xf32>
    %188 = vector.broadcast %187 : vector<4x8x1xf32> to vector<4x8x8xf32>
    %189 = arith.mulf %184, %188 : vector<4x8x8xf32>
    "tpu.trace_start"() <{level = 10 : i32, message = "nqk,nkd->nqd"}> : () -> ()
    %cst_71 = arith.constant dense<0.000000e+00> : vector<4x8x8xf32>
    %190 = tpu.matmul %189, %170, %cst_71 {dimension_numbers = #tpu.dot_dimension_numbers<[2], [1], [1], [2], [0, 0, 0, 1, 1, 2], [0], [0]>} : vector<4x8x8xf32>, vector<4x8x8xf32>, vector<4x8x8xf32> -> vector<4x8x8xf32>
    "tpu.trace_stop"() : () -> ()
    "tpu.trace_start"() <{level = 10 : i32, message = "nqd,ndh->nqh"}> : () -> ()
    %cst_72 = arith.constant dense<0.000000e+00> : vector<4x8x32xf32>
    %191 = tpu.matmul %190, %139, %cst_72 {dimension_numbers = #tpu.dot_dimension_numbers<[2], [1], [1], [2], [0, 0, 0, 1, 1, 2], [0], [0]>} : vector<4x8x8xf32>, vector<4x8x32xf32>, vector<4x8x32xf32> -> vector<4x8x32xf32>
    "tpu.trace_stop"() : () -> ()
    %cst_73 = arith.constant dense<0.000000e+00> : vector<8x32xf32>
    %192 = vector.multi_reduction <add>, %191, %cst_73 [0] : vector<4x8x32xf32> to vector<8x32xf32>
    %193 = vector.broadcast %140 : vector<1x32xf32> to vector<8x32xf32>
    %194 = arith.addf %192, %193 : vector<8x32xf32>
    %195 = arith.addf %131, %194 : vector<8x32xf32>
    %196 = vector.extract_strided_slice %133 {offsets = [2, 0], sizes = [1, 32], strides = [1, 1]} : vector<6x32xf32> to vector<1x32xf32>
    %197 = vector.extract_strided_slice %133 {offsets = [3, 0], sizes = [1, 32], strides = [1, 1]} : vector<6x32xf32> to vector<1x32xf32>
    %cst_74 = arith.constant dense<0.000000e+00> : vector<8xf32>
    %198 = vector.multi_reduction <add>, %195, %cst_74 [1] : vector<8x32xf32> to vector<8xf32>
    %199 = vector.shape_cast %198 : vector<8xf32> to vector<8x1xf32>
    %cst_75 = arith.constant 3.200000e+01 : f32
    %200 = vector.broadcast %cst_75 : f32 to vector<8x1xf32>
    %201 = arith.divf %199, %200 : vector<8x1xf32>
    %202 = vector.broadcast %201 : vector<8x1xf32> to vector<8x32xf32>
    %203 = arith.subf %195, %202 : vector<8x32xf32>
    %204 = arith.mulf %203, %203 : vector<8x32xf32>
    %cst_76 = arith.constant dense<0.000000e+00> : vector<8xf32>
    %205 = vector.multi_reduction <add>, %204, %cst_76 [1] : vector<8x32xf32> to vector<8xf32>
    %206 = vector.shape_cast %205 : vector<8xf32> to vector<8x1xf32>
    %cst_77 = arith.constant 3.200000e+01 : f32
    %207 = vector.broadcast %cst_77 : f32 to vector<8x1xf32>
    %208 = arith.divf %206, %207 : vector<8x1xf32>
    %209 = vector.broadcast %201 : vector<8x1xf32> to vector<8x32xf32>
    %210 = arith.subf %195, %209 : vector<8x32xf32>
    %cst_78 = arith.constant 9.99999974E-6 : f32
    %211 = vector.broadcast %cst_78 : f32 to vector<8x1xf32>
    %212 = arith.addf %208, %211 : vector<8x1xf32>
    %213 = math.rsqrt %212 : vector<8x1xf32>
    %214 = vector.broadcast %213 : vector<8x1xf32> to vector<8x32xf32>
    %215 = arith.mulf %210, %214 : vector<8x32xf32>
    %216 = vector.broadcast %196 : vector<1x32xf32> to vector<8x32xf32>
    %217 = arith.mulf %215, %216 : vector<8x32xf32>
    %218 = vector.broadcast %197 : vector<1x32xf32> to vector<8x32xf32>
    %219 = arith.addf %217, %218 : vector<8x32xf32>
    %c1_79 = arith.constant 1 : index
    %c0_80 = arith.constant 0 : index
    %c0_81 = arith.constant 0 : index
    %220 = vector.load %arg8[%c1_79, %c0_80, %c0_81] : memref<2x32x64xf32, #tpu.memory_space<vmem>>, vector<1x32x64xf32>
    %221 = vector.shape_cast %220 : vector<1x32x64xf32> to vector<32x64xf32>
    %cst_82 = arith.constant dense<0.000000e+00> : vector<8x64xf32>
    %222 = tpu.matmul %219, %221, %cst_82 {dimension_numbers = #tpu.dot_dimension_numbers<[1], [0], [0], [1], [0, 0, 1, 1], [], []>} : vector<8x32xf32>, vector<32x64xf32>, vector<8x64xf32> -> vector<8x64xf32>
    %c1_83 = arith.constant 1 : index
    %c0_84 = arith.constant 0 : index
    %c0_85 = arith.constant 0 : index
    %223 = vector.load %arg9[%c1_83, %c0_84, %c0_85] : memref<2x1x64xf32, #tpu.memory_space<vmem>>, vector<1x1x64xf32>
    %224 = vector.shape_cast %223 : vector<1x1x64xf32> to vector<1x64xf32>
    %225 = vector.broadcast %224 : vector<1x64xf32> to vector<8x64xf32>
    %226 = arith.addf %222, %225 : vector<8x64xf32>
    %cst_86 = arith.constant 0.000000e+00 : f32
    %227 = vector.broadcast %cst_86 : f32 to vector<8x64xf32>
    %228 = arith.maximumf %226, %227 : vector<8x64xf32>
    %c1_87 = arith.constant 1 : index
    %c0_88 = arith.constant 0 : index
    %c0_89 = arith.constant 0 : index
    %229 = vector.load %arg10[%c1_87, %c0_88, %c0_89] : memref<2x64x32xf32, #tpu.memory_space<vmem>>, vector<1x64x32xf32>
    %230 = vector.shape_cast %229 : vector<1x64x32xf32> to vector<64x32xf32>
    %cst_90 = arith.constant dense<0.000000e+00> : vector<8x32xf32>
    %231 = tpu.matmul %228, %230, %cst_90 {dimension_numbers = #tpu.dot_dimension_numbers<[1], [0], [0], [1], [0, 0, 1, 1], [], []>} : vector<8x64xf32>, vector<64x32xf32>, vector<8x32xf32> -> vector<8x32xf32>
    %232 = vector.extract_strided_slice %133 {offsets = [1, 0], sizes = [1, 32], strides = [1, 1]} : vector<6x32xf32> to vector<1x32xf32>
    %233 = vector.broadcast %232 : vector<1x32xf32> to vector<8x32xf32>
    %234 = arith.addf %231, %233 : vector<8x32xf32>
    %235 = arith.addf %219, %234 : vector<8x32xf32>
    %236 = vector.extract_strided_slice %133 {offsets = [4, 0], sizes = [1, 32], strides = [1, 1]} : vector<6x32xf32> to vector<1x32xf32>
    %237 = vector.extract_strided_slice %133 {offsets = [5, 0], sizes = [1, 32], strides = [1, 1]} : vector<6x32xf32> to vector<1x32xf32>
    %cst_91 = arith.constant dense<0.000000e+00> : vector<8xf32>
    %238 = vector.multi_reduction <add>, %235, %cst_91 [1] : vector<8x32xf32> to vector<8xf32>
    %239 = vector.shape_cast %238 : vector<8xf32> to vector<8x1xf32>
    %cst_92 = arith.constant 3.200000e+01 : f32
    %240 = vector.broadcast %cst_92 : f32 to vector<8x1xf32>
    %241 = arith.divf %239, %240 : vector<8x1xf32>
    %242 = vector.broadcast %241 : vector<8x1xf32> to vector<8x32xf32>
    %243 = arith.subf %235, %242 : vector<8x32xf32>
    %244 = arith.mulf %243, %243 : vector<8x32xf32>
    %cst_93 = arith.constant dense<0.000000e+00> : vector<8xf32>
    %245 = vector.multi_reduction <add>, %244, %cst_93 [1] : vector<8x32xf32> to vector<8xf32>
    %246 = vector.shape_cast %245 : vector<8xf32> to vector<8x1xf32>
    %cst_94 = arith.constant 3.200000e+01 : f32
    %247 = vector.broadcast %cst_94 : f32 to vector<8x1xf32>
    %248 = arith.divf %246, %247 : vector<8x1xf32>
    %249 = vector.broadcast %241 : vector<8x1xf32> to vector<8x32xf32>
    %250 = arith.subf %235, %249 : vector<8x32xf32>
    %cst_95 = arith.constant 9.99999974E-6 : f32
    %251 = vector.broadcast %cst_95 : f32 to vector<8x1xf32>
    %252 = arith.addf %248, %251 : vector<8x1xf32>
    %253 = math.rsqrt %252 : vector<8x1xf32>
    %254 = vector.broadcast %253 : vector<8x1xf32> to vector<8x32xf32>
    %255 = arith.mulf %250, %254 : vector<8x32xf32>
    %256 = vector.broadcast %236 : vector<1x32xf32> to vector<8x32xf32>
    %257 = arith.mulf %255, %256 : vector<8x32xf32>
    %258 = vector.broadcast %237 : vector<1x32xf32> to vector<8x32xf32>
    %259 = arith.addf %257, %258 : vector<8x32xf32>
    %c0_96 = arith.constant 0 : index
    %c0_97 = arith.constant 0 : index
    %c0_98 = arith.constant 0 : index
    %260 = vector.load %arg2[%c0_96, %c0_97, %c0_98] : memref<1x8x32xf32, #tpu.memory_space<vmem>>, vector<1x8x32xf32>
    %261 = vector.shape_cast %260 : vector<1x8x32xf32> to vector<8x32xf32>
    %c0_99 = arith.constant 0 : index
    %c0_100 = arith.constant 0 : index
    %c0_101 = arith.constant 0 : index
    %262 = vector.load %arg22[%c0_99, %c0_100, %c0_101] : memref<2x10x32xf32, #tpu.memory_space<vmem>>, vector<1x10x32xf32>
    %263 = vector.shape_cast %262 : vector<1x10x32xf32> to vector<10x32xf32>
    %c0_102 = arith.constant 0 : index
    %c0_103 = arith.constant 0 : index
    %c0_104 = arith.constant 0 : index
    %264 = vector.load %arg12[%c0_102, %c0_103, %c0_104] : memref<2x32x96xf32, #tpu.memory_space<vmem>>, vector<1x32x96xf32>
    %265 = vector.shape_cast %264 : vector<1x32x96xf32> to vector<32x96xf32>
    %c0_105 = arith.constant 0 : index
    %c0_106 = arith.constant 0 : index
    %c0_107 = arith.constant 0 : index
    %266 = vector.load %arg13[%c0_105, %c0_106, %c0_107] : memref<2x1x96xf32, #tpu.memory_space<vmem>>, vector<1x1x96xf32>
    %267 = vector.shape_cast %266 : vector<1x1x96xf32> to vector<1x96xf32>
    %c0_108 = arith.constant 0 : index
    %c0_109 = arith.constant 0 : index
    %c0_110 = arith.constant 0 : index
    %c0_111 = arith.constant 0 : index
    %268 = vector.load %arg14[%c0_108, %c0_109, %c0_110, %c0_111] : memref<2x4x8x32xf32, #tpu.memory_space<vmem>>, vector<1x4x8x32xf32>
    %269 = vector.shape_cast %268 : vector<1x4x8x32xf32> to vector<4x8x32xf32>
    %270 = vector.extract_strided_slice %263 {offsets = [0, 0], sizes = [1, 32], strides = [1, 1]} : vector<10x32xf32> to vector<1x32xf32>
    %cst_112 = arith.constant dense<0.000000e+00> : vector<8x96xf32>
    %271 = tpu.matmul %261, %265, %cst_112 {dimension_numbers = #tpu.dot_dimension_numbers<[1], [0], [0], [1], [0, 0, 1, 1], [], []>} : vector<8x32xf32>, vector<32x96xf32>, vector<8x96xf32> -> vector<8x96xf32>
    %272 = vector.broadcast %267 : vector<1x96xf32> to vector<8x96xf32>
    %273 = arith.addf %271, %272 : vector<8x96xf32>
    %274 = vector.extract_strided_slice %273 {offsets = [0, 0], sizes = [8, 8], strides = [1, 1]} : vector<8x96xf32> to vector<8x8xf32>
    %275 = vector.extract_strided_slice %273 {offsets = [0, 8], sizes = [8, 8], strides = [1, 1]} : vector<8x96xf32> to vector<8x8xf32>
    %276 = vector.extract_strided_slice %273 {offsets = [0, 16], sizes = [8, 8], strides = [1, 1]} : vector<8x96xf32> to vector<8x8xf32>
    %277 = vector.extract_strided_slice %273 {offsets = [0, 24], sizes = [8, 8], strides = [1, 1]} : vector<8x96xf32> to vector<8x8xf32>
    %278 = vector.shape_cast %274 : vector<8x8xf32> to vector<1x8x8xf32>
    %279 = vector.shape_cast %275 : vector<8x8xf32> to vector<1x8x8xf32>
    %280 = vector.shape_cast %276 : vector<8x8xf32> to vector<1x8x8xf32>
    %281 = vector.shape_cast %277 : vector<8x8xf32> to vector<1x8x8xf32>
    %282 = tpu.concatenate %278, %279, %280, %281 in 0 : vector<1x8x8xf32>, vector<1x8x8xf32>, vector<1x8x8xf32>, vector<1x8x8xf32> -> vector<4x8x8xf32>
    %283 = vector.extract_strided_slice %273 {offsets = [0, 32], sizes = [8, 8], strides = [1, 1]} : vector<8x96xf32> to vector<8x8xf32>
    %284 = vector.extract_strided_slice %273 {offsets = [0, 40], sizes = [8, 8], strides = [1, 1]} : vector<8x96xf32> to vector<8x8xf32>
    %285 = vector.extract_strided_slice %273 {offsets = [0, 48], sizes = [8, 8], strides = [1, 1]} : vector<8x96xf32> to vector<8x8xf32>
    %286 = vector.extract_strided_slice %273 {offsets = [0, 56], sizes = [8, 8], strides = [1, 1]} : vector<8x96xf32> to vector<8x8xf32>
    %287 = vector.shape_cast %283 : vector<8x8xf32> to vector<1x8x8xf32>
    %288 = vector.shape_cast %284 : vector<8x8xf32> to vector<1x8x8xf32>
    %289 = vector.shape_cast %285 : vector<8x8xf32> to vector<1x8x8xf32>
    %290 = vector.shape_cast %286 : vector<8x8xf32> to vector<1x8x8xf32>
    %291 = tpu.concatenate %287, %288, %289, %290 in 0 : vector<1x8x8xf32>, vector<1x8x8xf32>, vector<1x8x8xf32>, vector<1x8x8xf32> -> vector<4x8x8xf32>
    %292 = vector.extract_strided_slice %273 {offsets = [0, 64], sizes = [8, 8], strides = [1, 1]} : vector<8x96xf32> to vector<8x8xf32>
    %293 = vector.extract_strided_slice %273 {offsets = [0, 72], sizes = [8, 8], strides = [1, 1]} : vector<8x96xf32> to vector<8x8xf32>
    %294 = vector.extract_strided_slice %273 {offsets = [0, 80], sizes = [8, 8], strides = [1, 1]} : vector<8x96xf32> to vector<8x8xf32>
    %295 = vector.extract_strided_slice %273 {offsets = [0, 88], sizes = [8, 8], strides = [1, 1]} : vector<8x96xf32> to vector<8x8xf32>
    %296 = vector.shape_cast %292 : vector<8x8xf32> to vector<1x8x8xf32>
    %297 = vector.shape_cast %293 : vector<8x8xf32> to vector<1x8x8xf32>
    %298 = vector.shape_cast %294 : vector<8x8xf32> to vector<1x8x8xf32>
    %299 = vector.shape_cast %295 : vector<8x8xf32> to vector<1x8x8xf32>
    %300 = tpu.concatenate %296, %297, %298, %299 in 0 : vector<1x8x8xf32>, vector<1x8x8xf32>, vector<1x8x8xf32>, vector<1x8x8xf32> -> vector<4x8x8xf32>
    "tpu.trace_start"() <{level = 10 : i32, message = "nqd,nkd->nqk"}> : () -> ()
    %cst_113 = arith.constant dense<0.000000e+00> : vector<4x8x8xf32>
    %301 = tpu.matmul %282, %291, %cst_113 {dimension_numbers = #tpu.dot_dimension_numbers<[2], [2], [1], [1], [0, 0, 0, 1, 1, 1], [0], [0]>} : vector<4x8x8xf32>, vector<4x8x8xf32>, vector<4x8x8xf32> -> vector<4x8x8xf32>
    "tpu.trace_stop"() : () -> ()
    %cst_114 = arith.constant 0.353553385 : f32
    %302 = vector.broadcast %cst_114 : f32 to vector<4x8x8xf32>
    %303 = arith.mulf %301, %302 : vector<4x8x8xf32>
    %cst_115 = arith.constant 0.000000e+00 : f32
    %304 = vector.broadcast %cst_115 : f32 to vector<1x8x8xf32>
    %305 = arith.cmpf ogt, %3, %304 : vector<1x8x8xf32>
    %cst_116 = arith.constant -1.000000e+09 : f32
    %306 = vector.shape_cast %305 : vector<1x8x8xi1> to vector<1x8x8xi1>
    %307 = vector.broadcast %306 : vector<1x8x8xi1> to vector<4x8x8xi1>
    %308 = vector.broadcast %cst_116 : f32 to vector<4x8x8xf32>
    %309 = arith.select %307, %303, %308 : vector<4x8x8xi1>, vector<4x8x8xf32>
    %cst_117 = arith.constant dense<0xFF800000> : vector<4x8xf32>
    %310 = vector.multi_reduction <maximumf>, %309, %cst_117 [2] : vector<4x8x8xf32> to vector<4x8xf32>
    %311 = vector.shape_cast %310 : vector<4x8xf32> to vector<4x8x1xf32>
    %312 = vector.broadcast %311 : vector<4x8x1xf32> to vector<4x8x8xf32>
    %313 = arith.subf %309, %312 : vector<4x8x8xf32>
    %314 = math.exp %313 : vector<4x8x8xf32>
    %cst_118 = arith.constant dense<0.000000e+00> : vector<4x8xf32>
    %315 = vector.multi_reduction <add>, %314, %cst_118 [2] : vector<4x8x8xf32> to vector<4x8xf32>
    %316 = vector.shape_cast %315 : vector<4x8xf32> to vector<4x8x1xf32>
    %317 = tpu.reciprocal %316 {approx = true} : vector<4x8x1xf32> -> vector<4x8x1xf32>
    %318 = vector.broadcast %317 : vector<4x8x1xf32> to vector<4x8x8xf32>
    %319 = arith.mulf %314, %318 : vector<4x8x8xf32>
    "tpu.trace_start"() <{level = 10 : i32, message = "nqk,nkd->nqd"}> : () -> ()
    %cst_119 = arith.constant dense<0.000000e+00> : vector<4x8x8xf32>
    %320 = tpu.matmul %319, %300, %cst_119 {dimension_numbers = #tpu.dot_dimension_numbers<[2], [1], [1], [2], [0, 0, 0, 1, 1, 2], [0], [0]>} : vector<4x8x8xf32>, vector<4x8x8xf32>, vector<4x8x8xf32> -> vector<4x8x8xf32>
    "tpu.trace_stop"() : () -> ()
    "tpu.trace_start"() <{level = 10 : i32, message = "nqd,ndh->nqh"}> : () -> ()
    %cst_120 = arith.constant dense<0.000000e+00> : vector<4x8x32xf32>
    %321 = tpu.matmul %320, %269, %cst_120 {dimension_numbers = #tpu.dot_dimension_numbers<[2], [1], [1], [2], [0, 0, 0, 1, 1, 2], [0], [0]>} : vector<4x8x8xf32>, vector<4x8x32xf32>, vector<4x8x32xf32> -> vector<4x8x32xf32>
    "tpu.trace_stop"() : () -> ()
    %cst_121 = arith.constant dense<0.000000e+00> : vector<8x32xf32>
    %322 = vector.multi_reduction <add>, %321, %cst_121 [0] : vector<4x8x32xf32> to vector<8x32xf32>
    %323 = vector.broadcast %270 : vector<1x32xf32> to vector<8x32xf32>
    %324 = arith.addf %322, %323 : vector<8x32xf32>
    %325 = arith.addf %261, %324 : vector<8x32xf32>
    %326 = vector.extract_strided_slice %263 {offsets = [4, 0], sizes = [1, 32], strides = [1, 1]} : vector<10x32xf32> to vector<1x32xf32>
    %327 = vector.extract_strided_slice %263 {offsets = [5, 0], sizes = [1, 32], strides = [1, 1]} : vector<10x32xf32> to vector<1x32xf32>
    %cst_122 = arith.constant dense<0.000000e+00> : vector<8xf32>
    %328 = vector.multi_reduction <add>, %325, %cst_122 [1] : vector<8x32xf32> to vector<8xf32>
    %329 = vector.shape_cast %328 : vector<8xf32> to vector<8x1xf32>
    %cst_123 = arith.constant 3.200000e+01 : f32
    %330 = vector.broadcast %cst_123 : f32 to vector<8x1xf32>
    %331 = arith.divf %329, %330 : vector<8x1xf32>
    %332 = vector.broadcast %331 : vector<8x1xf32> to vector<8x32xf32>
    %333 = arith.subf %325, %332 : vector<8x32xf32>
    %334 = arith.mulf %333, %333 : vector<8x32xf32>
    %cst_124 = arith.constant dense<0.000000e+00> : vector<8xf32>
    %335 = vector.multi_reduction <add>, %334, %cst_124 [1] : vector<8x32xf32> to vector<8xf32>
    %336 = vector.shape_cast %335 : vector<8xf32> to vector<8x1xf32>
    %cst_125 = arith.constant 3.200000e+01 : f32
    %337 = vector.broadcast %cst_125 : f32 to vector<8x1xf32>
    %338 = arith.divf %336, %337 : vector<8x1xf32>
    %339 = vector.broadcast %331 : vector<8x1xf32> to vector<8x32xf32>
    %340 = arith.subf %325, %339 : vector<8x32xf32>
    %cst_126 = arith.constant 9.99999974E-6 : f32
    %341 = vector.broadcast %cst_126 : f32 to vector<8x1xf32>
    %342 = arith.addf %338, %341 : vector<8x1xf32>
    %343 = math.rsqrt %342 : vector<8x1xf32>
    %344 = vector.broadcast %343 : vector<8x1xf32> to vector<8x32xf32>
    %345 = arith.mulf %340, %344 : vector<8x32xf32>
    %346 = vector.broadcast %326 : vector<1x32xf32> to vector<8x32xf32>
    %347 = arith.mulf %345, %346 : vector<8x32xf32>
    %348 = vector.broadcast %327 : vector<1x32xf32> to vector<8x32xf32>
    %349 = arith.addf %347, %348 : vector<8x32xf32>
    %c0_127 = arith.constant 0 : index
    %c0_128 = arith.constant 0 : index
    %c0_129 = arith.constant 0 : index
    %350 = vector.load %arg15[%c0_127, %c0_128, %c0_129] : memref<2x32x32xf32, #tpu.memory_space<vmem>>, vector<1x32x32xf32>
    %351 = vector.shape_cast %350 : vector<1x32x32xf32> to vector<32x32xf32>
    %352 = vector.extract_strided_slice %263 {offsets = [1, 0], sizes = [1, 32], strides = [1, 1]} : vector<10x32xf32> to vector<1x32xf32>
    %c0_130 = arith.constant 0 : index
    %c0_131 = arith.constant 0 : index
    %c0_132 = arith.constant 0 : index
    %353 = vector.load %arg16[%c0_130, %c0_131, %c0_132] : memref<2x32x64xf32, #tpu.memory_space<vmem>>, vector<1x32x64xf32>
    %354 = vector.shape_cast %353 : vector<1x32x64xf32> to vector<32x64xf32>
    %c0_133 = arith.constant 0 : index
    %c0_134 = arith.constant 0 : index
    %c0_135 = arith.constant 0 : index
    %355 = vector.load %arg17[%c0_133, %c0_134, %c0_135] : memref<2x1x64xf32, #tpu.memory_space<vmem>>, vector<1x1x64xf32>
    %356 = vector.shape_cast %355 : vector<1x1x64xf32> to vector<1x64xf32>
    %c0_136 = arith.constant 0 : index
    %c0_137 = arith.constant 0 : index
    %c0_138 = arith.constant 0 : index
    %c0_139 = arith.constant 0 : index
    %357 = vector.load %arg18[%c0_136, %c0_137, %c0_138, %c0_139] : memref<2x4x8x32xf32, #tpu.memory_space<vmem>>, vector<1x4x8x32xf32>
    %358 = vector.shape_cast %357 : vector<1x4x8x32xf32> to vector<4x8x32xf32>
    %359 = vector.extract_strided_slice %263 {offsets = [2, 0], sizes = [1, 32], strides = [1, 1]} : vector<10x32xf32> to vector<1x32xf32>
    %cst_140 = arith.constant dense<0.000000e+00> : vector<8x32xf32>
    %360 = tpu.matmul %349, %351, %cst_140 {dimension_numbers = #tpu.dot_dimension_numbers<[1], [0], [0], [1], [0, 0, 1, 1], [], []>} : vector<8x32xf32>, vector<32x32xf32>, vector<8x32xf32> -> vector<8x32xf32>
    %361 = vector.broadcast %352 : vector<1x32xf32> to vector<8x32xf32>
    %362 = arith.addf %360, %361 : vector<8x32xf32>
    %cst_141 = arith.constant dense<0.000000e+00> : vector<8x64xf32>
    %363 = tpu.matmul %259, %354, %cst_141 {dimension_numbers = #tpu.dot_dimension_numbers<[1], [0], [0], [1], [0, 0, 1, 1], [], []>} : vector<8x32xf32>, vector<32x64xf32>, vector<8x64xf32> -> vector<8x64xf32>
    %364 = vector.broadcast %356 : vector<1x64xf32> to vector<8x64xf32>
    %365 = arith.addf %363, %364 : vector<8x64xf32>
    %366 = vector.extract_strided_slice %362 {offsets = [0, 0], sizes = [8, 8], strides = [1, 1]} : vector<8x32xf32> to vector<8x8xf32>
    %367 = vector.extract_strided_slice %362 {offsets = [0, 8], sizes = [8, 8], strides = [1, 1]} : vector<8x32xf32> to vector<8x8xf32>
    %368 = vector.extract_strided_slice %362 {offsets = [0, 16], sizes = [8, 8], strides = [1, 1]} : vector<8x32xf32> to vector<8x8xf32>
    %369 = vector.extract_strided_slice %362 {offsets = [0, 24], sizes = [8, 8], strides = [1, 1]} : vector<8x32xf32> to vector<8x8xf32>
    %370 = vector.shape_cast %366 : vector<8x8xf32> to vector<1x8x8xf32>
    %371 = vector.shape_cast %367 : vector<8x8xf32> to vector<1x8x8xf32>
    %372 = vector.shape_cast %368 : vector<8x8xf32> to vector<1x8x8xf32>
    %373 = vector.shape_cast %369 : vector<8x8xf32> to vector<1x8x8xf32>
    %374 = tpu.concatenate %370, %371, %372, %373 in 0 : vector<1x8x8xf32>, vector<1x8x8xf32>, vector<1x8x8xf32>, vector<1x8x8xf32> -> vector<4x8x8xf32>
    %375 = vector.extract_strided_slice %365 {offsets = [0, 0], sizes = [8, 8], strides = [1, 1]} : vector<8x64xf32> to vector<8x8xf32>
    %376 = vector.extract_strided_slice %365 {offsets = [0, 8], sizes = [8, 8], strides = [1, 1]} : vector<8x64xf32> to vector<8x8xf32>
    %377 = vector.extract_strided_slice %365 {offsets = [0, 16], sizes = [8, 8], strides = [1, 1]} : vector<8x64xf32> to vector<8x8xf32>
    %378 = vector.extract_strided_slice %365 {offsets = [0, 24], sizes = [8, 8], strides = [1, 1]} : vector<8x64xf32> to vector<8x8xf32>
    %379 = vector.shape_cast %375 : vector<8x8xf32> to vector<1x8x8xf32>
    %380 = vector.shape_cast %376 : vector<8x8xf32> to vector<1x8x8xf32>
    %381 = vector.shape_cast %377 : vector<8x8xf32> to vector<1x8x8xf32>
    %382 = vector.shape_cast %378 : vector<8x8xf32> to vector<1x8x8xf32>
    %383 = tpu.concatenate %379, %380, %381, %382 in 0 : vector<1x8x8xf32>, vector<1x8x8xf32>, vector<1x8x8xf32>, vector<1x8x8xf32> -> vector<4x8x8xf32>
    %384 = vector.extract_strided_slice %365 {offsets = [0, 32], sizes = [8, 8], strides = [1, 1]} : vector<8x64xf32> to vector<8x8xf32>
    %385 = vector.extract_strided_slice %365 {offsets = [0, 40], sizes = [8, 8], strides = [1, 1]} : vector<8x64xf32> to vector<8x8xf32>
    %386 = vector.extract_strided_slice %365 {offsets = [0, 48], sizes = [8, 8], strides = [1, 1]} : vector<8x64xf32> to vector<8x8xf32>
    %387 = vector.extract_strided_slice %365 {offsets = [0, 56], sizes = [8, 8], strides = [1, 1]} : vector<8x64xf32> to vector<8x8xf32>
    %388 = vector.shape_cast %384 : vector<8x8xf32> to vector<1x8x8xf32>
    %389 = vector.shape_cast %385 : vector<8x8xf32> to vector<1x8x8xf32>
    %390 = vector.shape_cast %386 : vector<8x8xf32> to vector<1x8x8xf32>
    %391 = vector.shape_cast %387 : vector<8x8xf32> to vector<1x8x8xf32>
    %392 = tpu.concatenate %388, %389, %390, %391 in 0 : vector<1x8x8xf32>, vector<1x8x8xf32>, vector<1x8x8xf32>, vector<1x8x8xf32> -> vector<4x8x8xf32>
    "tpu.trace_start"() <{level = 10 : i32, message = "nqd,nkd->nqk"}> : () -> ()
    %cst_142 = arith.constant dense<0.000000e+00> : vector<4x8x8xf32>
    %393 = tpu.matmul %374, %383, %cst_142 {dimension_numbers = #tpu.dot_dimension_numbers<[2], [2], [1], [1], [0, 0, 0, 1, 1, 1], [0], [0]>} : vector<4x8x8xf32>, vector<4x8x8xf32>, vector<4x8x8xf32> -> vector<4x8x8xf32>
    "tpu.trace_stop"() : () -> ()
    %cst_143 = arith.constant 0.353553385 : f32
    %394 = vector.broadcast %cst_143 : f32 to vector<4x8x8xf32>
    %395 = arith.mulf %393, %394 : vector<4x8x8xf32>
    %cst_144 = arith.constant 0.000000e+00 : f32
    %396 = vector.broadcast %cst_144 : f32 to vector<1x1x8xf32>
    %397 = arith.cmpf ogt, %2, %396 : vector<1x1x8xf32>
    %cst_145 = arith.constant -1.000000e+09 : f32
    %398 = vector.shape_cast %397 : vector<1x1x8xi1> to vector<1x1x8xi1>
    %399 = vector.broadcast %398 : vector<1x1x8xi1> to vector<4x8x8xi1>
    %400 = vector.broadcast %cst_145 : f32 to vector<4x8x8xf32>
    %401 = arith.select %399, %395, %400 : vector<4x8x8xi1>, vector<4x8x8xf32>
    %cst_146 = arith.constant dense<0xFF800000> : vector<4x8xf32>
    %402 = vector.multi_reduction <maximumf>, %401, %cst_146 [2] : vector<4x8x8xf32> to vector<4x8xf32>
    %403 = vector.shape_cast %402 : vector<4x8xf32> to vector<4x8x1xf32>
    %404 = vector.broadcast %403 : vector<4x8x1xf32> to vector<4x8x8xf32>
    %405 = arith.subf %401, %404 : vector<4x8x8xf32>
    %406 = math.exp %405 : vector<4x8x8xf32>
    %cst_147 = arith.constant dense<0.000000e+00> : vector<4x8xf32>
    %407 = vector.multi_reduction <add>, %406, %cst_147 [2] : vector<4x8x8xf32> to vector<4x8xf32>
    %408 = vector.shape_cast %407 : vector<4x8xf32> to vector<4x8x1xf32>
    %409 = tpu.reciprocal %408 {approx = true} : vector<4x8x1xf32> -> vector<4x8x1xf32>
    %410 = vector.broadcast %409 : vector<4x8x1xf32> to vector<4x8x8xf32>
    %411 = arith.mulf %406, %410 : vector<4x8x8xf32>
    "tpu.trace_start"() <{level = 10 : i32, message = "nqk,nkd->nqd"}> : () -> ()
    %cst_148 = arith.constant dense<0.000000e+00> : vector<4x8x8xf32>
    %412 = tpu.matmul %411, %392, %cst_148 {dimension_numbers = #tpu.dot_dimension_numbers<[2], [1], [1], [2], [0, 0, 0, 1, 1, 2], [0], [0]>} : vector<4x8x8xf32>, vector<4x8x8xf32>, vector<4x8x8xf32> -> vector<4x8x8xf32>
    "tpu.trace_stop"() : () -> ()
    "tpu.trace_start"() <{level = 10 : i32, message = "nqd,ndh->nqh"}> : () -> ()
    %cst_149 = arith.constant dense<0.000000e+00> : vector<4x8x32xf32>
    %413 = tpu.matmul %412, %358, %cst_149 {dimension_numbers = #tpu.dot_dimension_numbers<[2], [1], [1], [2], [0, 0, 0, 1, 1, 2], [0], [0]>} : vector<4x8x8xf32>, vector<4x8x32xf32>, vector<4x8x32xf32> -> vector<4x8x32xf32>
    "tpu.trace_stop"() : () -> ()
    %cst_150 = arith.constant dense<0.000000e+00> : vector<8x32xf32>
    %414 = vector.multi_reduction <add>, %413, %cst_150 [0] : vector<4x8x32xf32> to vector<8x32xf32>
    %415 = vector.broadcast %359 : vector<1x32xf32> to vector<8x32xf32>
    %416 = arith.addf %414, %415 : vector<8x32xf32>
    %c0_151 = arith.constant 0 : index
    %c0_152 = arith.constant 0 : index
    %c0_153 = arith.constant 0 : index
    %c0_154 = arith.constant 0 : index
    %417 = vector.load %arg25[%c0_151, %c0_152, %c0_153, %c0_154] : memref<1x8x8x8xf32, #tpu.memory_space<vmem>>, vector<1x4x8x8xf32>
    %418 = vector.shape_cast %417 : vector<1x4x8x8xf32> to vector<4x8x8xf32>
    %419 = vector.shape_cast %411 : vector<4x8x8xf32> to vector<1x4x8x8xf32>
    tpu.vector_store %arg25[%c0_151, %c0_152, %c0_153, %c0_154], %419 {strides = array<i32>} : memref<1x8x8x8xf32, #tpu.memory_space<vmem>>, vector<1x4x8x8xf32>,
    %420 = arith.addf %349, %416 : vector<8x32xf32>
    %421 = vector.extract_strided_slice %263 {offsets = [6, 0], sizes = [1, 32], strides = [1, 1]} : vector<10x32xf32> to vector<1x32xf32>
    %422 = vector.extract_strided_slice %263 {offsets = [7, 0], sizes = [1, 32], strides = [1, 1]} : vector<10x32xf32> to vector<1x32xf32>
    %cst_155 = arith.constant dense<0.000000e+00> : vector<8xf32>
    %423 = vector.multi_reduction <add>, %420, %cst_155 [1] : vector<8x32xf32> to vector<8xf32>
    %424 = vector.shape_cast %423 : vector<8xf32> to vector<8x1xf32>
    %cst_156 = arith.constant 3.200000e+01 : f32
    %425 = vector.broadcast %cst_156 : f32 to vector<8x1xf32>
    %426 = arith.divf %424, %425 : vector<8x1xf32>
    %427 = vector.broadcast %426 : vector<8x1xf32> to vector<8x32xf32>
    %428 = arith.subf %420, %427 : vector<8x32xf32>
    %429 = arith.mulf %428, %428 : vector<8x32xf32>
    %cst_157 = arith.constant dense<0.000000e+00> : vector<8xf32>
    %430 = vector.multi_reduction <add>, %429, %cst_157 [1] : vector<8x32xf32> to vector<8xf32>
    %431 = vector.shape_cast %430 : vector<8xf32> to vector<8x1xf32>
    %cst_158 = arith.constant 3.200000e+01 : f32
    %432 = vector.broadcast %cst_158 : f32 to vector<8x1xf32>
    %433 = arith.divf %431, %432 : vector<8x1xf32>
    %434 = vector.broadcast %426 : vector<8x1xf32> to vector<8x32xf32>
    %435 = arith.subf %420, %434 : vector<8x32xf32>
    %cst_159 = arith.constant 9.99999974E-6 : f32
    %436 = vector.broadcast %cst_159 : f32 to vector<8x1xf32>
    %437 = arith.addf %433, %436 : vector<8x1xf32>
    %438 = math.rsqrt %437 : vector<8x1xf32>
    %439 = vector.broadcast %438 : vector<8x1xf32> to vector<8x32xf32>
    %440 = arith.mulf %435, %439 : vector<8x32xf32>
    %441 = vector.broadcast %421 : vector<1x32xf32> to vector<8x32xf32>
    %442 = arith.mulf %440, %441 : vector<8x32xf32>
    %443 = vector.broadcast %422 : vector<1x32xf32> to vector<8x32xf32>
    %444 = arith.addf %442, %443 : vector<8x32xf32>
    %c0_160 = arith.constant 0 : index
    %c0_161 = arith.constant 0 : index
    %c0_162 = arith.constant 0 : index
    %445 = vector.load %arg19[%c0_160, %c0_161, %c0_162] : memref<2x32x64xf32, #tpu.memory_space<vmem>>, vector<1x32x64xf32>
    %446 = vector.shape_cast %445 : vector<1x32x64xf32> to vector<32x64xf32>
    %cst_163 = arith.constant dense<0.000000e+00> : vector<8x64xf32>
    %447 = tpu.matmul %444, %446, %cst_163 {dimension_numbers = #tpu.dot_dimension_numbers<[1], [0], [0], [1], [0, 0, 1, 1], [], []>} : vector<8x32xf32>, vector<32x64xf32>, vector<8x64xf32> -> vector<8x64xf32>
    %c0_164 = arith.constant 0 : index
    %c0_165 = arith.constant 0 : index
    %c0_166 = arith.constant 0 : index
    %448 = vector.load %arg20[%c0_164, %c0_165, %c0_166] : memref<2x1x64xf32, #tpu.memory_space<vmem>>, vector<1x1x64xf32>
    %449 = vector.shape_cast %448 : vector<1x1x64xf32> to vector<1x64xf32>
    %450 = vector.broadcast %449 : vector<1x64xf32> to vector<8x64xf32>
    %451 = arith.addf %447, %450 : vector<8x64xf32>
    %cst_167 = arith.constant 0.000000e+00 : f32
    %452 = vector.broadcast %cst_167 : f32 to vector<8x64xf32>
    %453 = arith.maximumf %451, %452 : vector<8x64xf32>
    %c0_168 = arith.constant 0 : index
    %c0_169 = arith.constant 0 : index
    %c0_170 = arith.constant 0 : index
    %454 = vector.load %arg21[%c0_168, %c0_169, %c0_170] : memref<2x64x32xf32, #tpu.memory_space<vmem>>, vector<1x64x32xf32>
    %455 = vector.shape_cast %454 : vector<1x64x32xf32> to vector<64x32xf32>
    %cst_171 = arith.constant dense<0.000000e+00> : vector<8x32xf32>
    %456 = tpu.matmul %453, %455, %cst_171 {dimension_numbers = #tpu.dot_dimension_numbers<[1], [0], [0], [1], [0, 0, 1, 1], [], []>} : vector<8x64xf32>, vector<64x32xf32>, vector<8x32xf32> -> vector<8x32xf32>
    %457 = vector.extract_strided_slice %263 {offsets = [3, 0], sizes = [1, 32], strides = [1, 1]} : vector<10x32xf32> to vector<1x32xf32>
    %458 = vector.broadcast %457 : vector<1x32xf32> to vector<8x32xf32>
    %459 = arith.addf %456, %458 : vector<8x32xf32>
    %460 = arith.addf %444, %459 : vector<8x32xf32>
    %461 = vector.extract_strided_slice %263 {offsets = [8, 0], sizes = [1, 32], strides = [1, 1]} : vector<10x32xf32> to vector<1x32xf32>
    %462 = vector.extract_strided_slice %263 {offsets = [9, 0], sizes = [1, 32], strides = [1, 1]} : vector<10x32xf32> to vector<1x32xf32>
    %cst_172 = arith.constant dense<0.000000e+00> : vector<8xf32>
    %463 = vector.multi_reduction <add>, %460, %cst_172 [1] : vector<8x32xf32> to vector<8xf32>
    %464 = vector.shape_cast %463 : vector<8xf32> to vector<8x1xf32>
    %cst_173 = arith.constant 3.200000e+01 : f32
    %465 = vector.broadcast %cst_173 : f32 to vector<8x1xf32>
    %466 = arith.divf %464, %465 : vector<8x1xf32>
    %467 = vector.broadcast %466 : vector<8x1xf32> to vector<8x32xf32>
    %468 = arith.subf %460, %467 : vector<8x32xf32>
    %469 = arith.mulf %468, %468 : vector<8x32xf32>
    %cst_174 = arith.constant dense<0.000000e+00> : vector<8xf32>
    %470 = vector.multi_reduction <add>, %469, %cst_174 [1] : vector<8x32xf32> to vector<8xf32>
    %471 = vector.shape_cast %470 : vector<8xf32> to vector<8x1xf32>
    %cst_175 = arith.constant 3.200000e+01 : f32
    %472 = vector.broadcast %cst_175 : f32 to vector<8x1xf32>
    %473 = arith.divf %471, %472 : vector<8x1xf32>
    %474 = vector.broadcast %466 : vector<8x1xf32> to vector<8x32xf32>
    %475 = arith.subf %460, %474 : vector<8x32xf32>
    %cst_176 = arith.constant 9.99999974E-6 : f32
    %476 = vector.broadcast %cst_176 : f32 to vector<8x1xf32>
    %477 = arith.addf %473, %476 : vector<8x1xf32>
    %478 = math.rsqrt %477 : vector<8x1xf32>
    %479 = vector.broadcast %478 : vector<8x1xf32> to vector<8x32xf32>
    %480 = arith.mulf %475, %479 : vector<8x32xf32>
    %481 = vector.broadcast %461 : vector<1x32xf32> to vector<8x32xf32>
    %482 = arith.mulf %480, %481 : vector<8x32xf32>
    %483 = vector.broadcast %462 : vector<1x32xf32> to vector<8x32xf32>
    %484 = arith.addf %482, %483 : vector<8x32xf32>
    %c1_177 = arith.constant 1 : index
    %c0_178 = arith.constant 0 : index
    %c0_179 = arith.constant 0 : index
    %485 = vector.load %arg22[%c1_177, %c0_178, %c0_179] : memref<2x10x32xf32, #tpu.memory_space<vmem>>, vector<1x10x32xf32>
    %486 = vector.shape_cast %485 : vector<1x10x32xf32> to vector<10x32xf32>
    %c1_180 = arith.constant 1 : index
    %c0_181 = arith.constant 0 : index
    %c0_182 = arith.constant 0 : index
    %487 = vector.load %arg12[%c1_180, %c0_181, %c0_182] : memref<2x32x96xf32, #tpu.memory_space<vmem>>, vector<1x32x96xf32>
    %488 = vector.shape_cast %487 : vector<1x32x96xf32> to vector<32x96xf32>
    %c1_183 = arith.constant 1 : index
    %c0_184 = arith.constant 0 : index
    %c0_185 = arith.constant 0 : index
    %489 = vector.load %arg13[%c1_183, %c0_184, %c0_185] : memref<2x1x96xf32, #tpu.memory_space<vmem>>, vector<1x1x96xf32>
    %490 = vector.shape_cast %489 : vector<1x1x96xf32> to vector<1x96xf32>
    %c1_186 = arith.constant 1 : index
    %c0_187 = arith.constant 0 : index
    %c0_188 = arith.constant 0 : index
    %c0_189 = arith.constant 0 : index
    %491 = vector.load %arg14[%c1_186, %c0_187, %c0_188, %c0_189] : memref<2x4x8x32xf32, #tpu.memory_space<vmem>>, vector<1x4x8x32xf32>
    %492 = vector.shape_cast %491 : vector<1x4x8x32xf32> to vector<4x8x32xf32>
    %493 = vector.extract_strided_slice %486 {offsets = [0, 0], sizes = [1, 32], strides = [1, 1]} : vector<10x32xf32> to vector<1x32xf32>
    %cst_190 = arith.constant dense<0.000000e+00> : vector<8x96xf32>
    %494 = tpu.matmul %484, %488, %cst_190 {dimension_numbers = #tpu.dot_dimension_numbers<[1], [0], [0], [1], [0, 0, 1, 1], [], []>} : vector<8x32xf32>, vector<32x96xf32>, vector<8x96xf32> -> vector<8x96xf32>
    %495 = vector.broadcast %490 : vector<1x96xf32> to vector<8x96xf32>
    %496 = arith.addf %494, %495 : vector<8x96xf32>
    %497 = vector.extract_strided_slice %496 {offsets = [0, 0], sizes = [8, 8], strides = [1, 1]} : vector<8x96xf32> to vector<8x8xf32>
    %498 = vector.extract_strided_slice %496 {offsets = [0, 8], sizes = [8, 8], strides = [1, 1]} : vector<8x96xf32> to vector<8x8xf32>
    %499 = vector.extract_strided_slice %496 {offsets = [0, 16], sizes = [8, 8], strides = [1, 1]} : vector<8x96xf32> to vector<8x8xf32>
    %500 = vector.extract_strided_slice %496 {offsets = [0, 24], sizes = [8, 8], strides = [1, 1]} : vector<8x96xf32> to vector<8x8xf32>
    %501 = vector.shape_cast %497 : vector<8x8xf32> to vector<1x8x8xf32>
    %502 = vector.shape_cast %498 : vector<8x8xf32> to vector<1x8x8xf32>
    %503 = vector.shape_cast %499 : vector<8x8xf32> to vector<1x8x8xf32>
    %504 = vector.shape_cast %500 : vector<8x8xf32> to vector<1x8x8xf32>
    %505 = tpu.concatenate %501, %502, %503, %504 in 0 : vector<1x8x8xf32>, vector<1x8x8xf32>, vector<1x8x8xf32>, vector<1x8x8xf32> -> vector<4x8x8xf32>
    %506 = vector.extract_strided_slice %496 {offsets = [0, 32], sizes = [8, 8], strides = [1, 1]} : vector<8x96xf32> to vector<8x8xf32>
    %507 = vector.extract_strided_slice %496 {offsets = [0, 40], sizes = [8, 8], strides = [1, 1]} : vector<8x96xf32> to vector<8x8xf32>
    %508 = vector.extract_strided_slice %496 {offsets = [0, 48], sizes = [8, 8], strides = [1, 1]} : vector<8x96xf32> to vector<8x8xf32>
    %509 = vector.extract_strided_slice %496 {offsets = [0, 56], sizes = [8, 8], strides = [1, 1]} : vector<8x96xf32> to vector<8x8xf32>
    %510 = vector.shape_cast %506 : vector<8x8xf32> to vector<1x8x8xf32>
    %511 = vector.shape_cast %507 : vector<8x8xf32> to vector<1x8x8xf32>
    %512 = vector.shape_cast %508 : vector<8x8xf32> to vector<1x8x8xf32>
    %513 = vector.shape_cast %509 : vector<8x8xf32> to vector<1x8x8xf32>
    %514 = tpu.concatenate %510, %511, %512, %513 in 0 : vector<1x8x8xf32>, vector<1x8x8xf32>, vector<1x8x8xf32>, vector<1x8x8xf32> -> vector<4x8x8xf32>
    %515 = vector.extract_strided_slice %496 {offsets = [0, 64], sizes = [8, 8], strides = [1, 1]} : vector<8x96xf32> to vector<8x8xf32>
    %516 = vector.extract_strided_slice %496 {offsets = [0, 72], sizes = [8, 8], strides = [1, 1]} : vector<8x96xf32> to vector<8x8xf32>
    %517 = vector.extract_strided_slice %496 {offsets = [0, 80], sizes = [8, 8], strides = [1, 1]} : vector<8x96xf32> to vector<8x8xf32>
    %518 = vector.extract_strided_slice %496 {offsets = [0, 88], sizes = [8, 8], strides = [1, 1]} : vector<8x96xf32> to vector<8x8xf32>
    %519 = vector.shape_cast %515 : vector<8x8xf32> to vector<1x8x8xf32>
    %520 = vector.shape_cast %516 : vector<8x8xf32> to vector<1x8x8xf32>
    %521 = vector.shape_cast %517 : vector<8x8xf32> to vector<1x8x8xf32>
    %522 = vector.shape_cast %518 : vector<8x8xf32> to vector<1x8x8xf32>
    %523 = tpu.concatenate %519, %520, %521, %522 in 0 : vector<1x8x8xf32>, vector<1x8x8xf32>, vector<1x8x8xf32>, vector<1x8x8xf32> -> vector<4x8x8xf32>
    "tpu.trace_start"() <{level = 10 : i32, message = "nqd,nkd->nqk"}> : () -> ()
    %cst_191 = arith.constant dense<0.000000e+00> : vector<4x8x8xf32>
    %524 = tpu.matmul %505, %514, %cst_191 {dimension_numbers = #tpu.dot_dimension_numbers<[2], [2], [1], [1], [0, 0, 0, 1, 1, 1], [0], [0]>} : vector<4x8x8xf32>, vector<4x8x8xf32>, vector<4x8x8xf32> -> vector<4x8x8xf32>
    "tpu.trace_stop"() : () -> ()
    %cst_192 = arith.constant 0.353553385 : f32
    %525 = vector.broadcast %cst_192 : f32 to vector<4x8x8xf32>
    %526 = arith.mulf %524, %525 : vector<4x8x8xf32>
    %cst_193 = arith.constant 0.000000e+00 : f32
    %527 = vector.broadcast %cst_193 : f32 to vector<1x8x8xf32>
    %528 = arith.cmpf ogt, %3, %527 : vector<1x8x8xf32>
    %cst_194 = arith.constant -1.000000e+09 : f32
    %529 = vector.shape_cast %528 : vector<1x8x8xi1> to vector<1x8x8xi1>
    %530 = vector.broadcast %529 : vector<1x8x8xi1> to vector<4x8x8xi1>
    %531 = vector.broadcast %cst_194 : f32 to vector<4x8x8xf32>
    %532 = arith.select %530, %526, %531 : vector<4x8x8xi1>, vector<4x8x8xf32>
    %cst_195 = arith.constant dense<0xFF800000> : vector<4x8xf32>
    %533 = vector.multi_reduction <maximumf>, %532, %cst_195 [2] : vector<4x8x8xf32> to vector<4x8xf32>
    %534 = vector.shape_cast %533 : vector<4x8xf32> to vector<4x8x1xf32>
    %535 = vector.broadcast %534 : vector<4x8x1xf32> to vector<4x8x8xf32>
    %536 = arith.subf %532, %535 : vector<4x8x8xf32>
    %537 = math.exp %536 : vector<4x8x8xf32>
    %cst_196 = arith.constant dense<0.000000e+00> : vector<4x8xf32>
    %538 = vector.multi_reduction <add>, %537, %cst_196 [2] : vector<4x8x8xf32> to vector<4x8xf32>
    %539 = vector.shape_cast %538 : vector<4x8xf32> to vector<4x8x1xf32>
    %540 = tpu.reciprocal %539 {approx = true} : vector<4x8x1xf32> -> vector<4x8x1xf32>
    %541 = vector.broadcast %540 : vector<4x8x1xf32> to vector<4x8x8xf32>
    %542 = arith.mulf %537, %541 : vector<4x8x8xf32>
    "tpu.trace_start"() <{level = 10 : i32, message = "nqk,nkd->nqd"}> : () -> ()
    %cst_197 = arith.constant dense<0.000000e+00> : vector<4x8x8xf32>
    %543 = tpu.matmul %542, %523, %cst_197 {dimension_numbers = #tpu.dot_dimension_numbers<[2], [1], [1], [2], [0, 0, 0, 1, 1, 2], [0], [0]>} : vector<4x8x8xf32>, vector<4x8x8xf32>, vector<4x8x8xf32> -> vector<4x8x8xf32>
    "tpu.trace_stop"() : () -> ()
    "tpu.trace_start"() <{level = 10 : i32, message = "nqd,ndh->nqh"}> : () -> ()
    %cst_198 = arith.constant dense<0.000000e+00> : vector<4x8x32xf32>
    %544 = tpu.matmul %543, %492, %cst_198 {dimension_numbers = #tpu.dot_dimension_numbers<[2], [1], [1], [2], [0, 0, 0, 1, 1, 2], [0], [0]>} : vector<4x8x8xf32>, vector<4x8x32xf32>, vector<4x8x32xf32> -> vector<4x8x32xf32>
    "tpu.trace_stop"() : () -> ()
    %cst_199 = arith.constant dense<0.000000e+00> : vector<8x32xf32>
    %545 = vector.multi_reduction <add>, %544, %cst_199 [0] : vector<4x8x32xf32> to vector<8x32xf32>
    %546 = vector.broadcast %493 : vector<1x32xf32> to vector<8x32xf32>
    %547 = arith.addf %545, %546 : vector<8x32xf32>
    %548 = arith.addf %484, %547 : vector<8x32xf32>
    %549 = vector.extract_strided_slice %486 {offsets = [4, 0], sizes = [1, 32], strides = [1, 1]} : vector<10x32xf32> to vector<1x32xf32>
    %550 = vector.extract_strided_slice %486 {offsets = [5, 0], sizes = [1, 32], strides = [1, 1]} : vector<10x32xf32> to vector<1x32xf32>
    %cst_200 = arith.constant dense<0.000000e+00> : vector<8xf32>
    %551 = vector.multi_reduction <add>, %548, %cst_200 [1] : vector<8x32xf32> to vector<8xf32>
    %552 = vector.shape_cast %551 : vector<8xf32> to vector<8x1xf32>
    %cst_201 = arith.constant 3.200000e+01 : f32
    %553 = vector.broadcast %cst_201 : f32 to vector<8x1xf32>
    %554 = arith.divf %552, %553 : vector<8x1xf32>
    %555 = vector.broadcast %554 : vector<8x1xf32> to vector<8x32xf32>
    %556 = arith.subf %548, %555 : vector<8x32xf32>
    %557 = arith.mulf %556, %556 : vector<8x32xf32>
    %cst_202 = arith.constant dense<0.000000e+00> : vector<8xf32>
    %558 = vector.multi_reduction <add>, %557, %cst_202 [1] : vector<8x32xf32> to vector<8xf32>
    %559 = vector.shape_cast %558 : vector<8xf32> to vector<8x1xf32>
    %cst_203 = arith.constant 3.200000e+01 : f32
    %560 = vector.broadcast %cst_203 : f32 to vector<8x1xf32>
    %561 = arith.divf %559, %560 : vector<8x1xf32>
    %562 = vector.broadcast %554 : vector<8x1xf32> to vector<8x32xf32>
    %563 = arith.subf %548, %562 : vector<8x32xf32>
    %cst_204 = arith.constant 9.99999974E-6 : f32
    %564 = vector.broadcast %cst_204 : f32 to vector<8x1xf32>
    %565 = arith.addf %561, %564 : vector<8x1xf32>
    %566 = math.rsqrt %565 : vector<8x1xf32>
    %567 = vector.broadcast %566 : vector<8x1xf32> to vector<8x32xf32>
    %568 = arith.mulf %563, %567 : vector<8x32xf32>
    %569 = vector.broadcast %549 : vector<1x32xf32> to vector<8x32xf32>
    %570 = arith.mulf %568, %569 : vector<8x32xf32>
    %571 = vector.broadcast %550 : vector<1x32xf32> to vector<8x32xf32>
    %572 = arith.addf %570, %571 : vector<8x32xf32>
    %c1_205 = arith.constant 1 : index
    %c0_206 = arith.constant 0 : index
    %c0_207 = arith.constant 0 : index
    %573 = vector.load %arg15[%c1_205, %c0_206, %c0_207] : memref<2x32x32xf32, #tpu.memory_space<vmem>>, vector<1x32x32xf32>
    %574 = vector.shape_cast %573 : vector<1x32x32xf32> to vector<32x32xf32>
    %575 = vector.extract_strided_slice %486 {offsets = [1, 0], sizes = [1, 32], strides = [1, 1]} : vector<10x32xf32> to vector<1x32xf32>
    %c1_208 = arith.constant 1 : index
    %c0_209 = arith.constant 0 : index
    %c0_210 = arith.constant 0 : index
    %576 = vector.load %arg16[%c1_208, %c0_209, %c0_210] : memref<2x32x64xf32, #tpu.memory_space<vmem>>, vector<1x32x64xf32>
    %577 = vector.shape_cast %576 : vector<1x32x64xf32> to vector<32x64xf32>
    %c1_211 = arith.constant 1 : index
    %c0_212 = arith.constant 0 : index
    %c0_213 = arith.constant 0 : index
    %578 = vector.load %arg17[%c1_211, %c0_212, %c0_213] : memref<2x1x64xf32, #tpu.memory_space<vmem>>, vector<1x1x64xf32>
    %579 = vector.shape_cast %578 : vector<1x1x64xf32> to vector<1x64xf32>
    %c1_214 = arith.constant 1 : index
    %c0_215 = arith.constant 0 : index
    %c0_216 = arith.constant 0 : index
    %c0_217 = arith.constant 0 : index
    %580 = vector.load %arg18[%c1_214, %c0_215, %c0_216, %c0_217] : memref<2x4x8x32xf32, #tpu.memory_space<vmem>>, vector<1x4x8x32xf32>
    %581 = vector.shape_cast %580 : vector<1x4x8x32xf32> to vector<4x8x32xf32>
    %582 = vector.extract_strided_slice %486 {offsets = [2, 0], sizes = [1, 32], strides = [1, 1]} : vector<10x32xf32> to vector<1x32xf32>
    %cst_218 = arith.constant dense<0.000000e+00> : vector<8x32xf32>
    %583 = tpu.matmul %572, %574, %cst_218 {dimension_numbers = #tpu.dot_dimension_numbers<[1], [0], [0], [1], [0, 0, 1, 1], [], []>} : vector<8x32xf32>, vector<32x32xf32>, vector<8x32xf32> -> vector<8x32xf32>
    %584 = vector.broadcast %575 : vector<1x32xf32> to vector<8x32xf32>
    %585 = arith.addf %583, %584 : vector<8x32xf32>
    %cst_219 = arith.constant dense<0.000000e+00> : vector<8x64xf32>
    %586 = tpu.matmul %259, %577, %cst_219 {dimension_numbers = #tpu.dot_dimension_numbers<[1], [0], [0], [1], [0, 0, 1, 1], [], []>} : vector<8x32xf32>, vector<32x64xf32>, vector<8x64xf32> -> vector<8x64xf32>
    %587 = vector.broadcast %579 : vector<1x64xf32> to vector<8x64xf32>
    %588 = arith.addf %586, %587 : vector<8x64xf32>
    %589 = vector.extract_strided_slice %585 {offsets = [0, 0], sizes = [8, 8], strides = [1, 1]} : vector<8x32xf32> to vector<8x8xf32>
    %590 = vector.extract_strided_slice %585 {offsets = [0, 8], sizes = [8, 8], strides = [1, 1]} : vector<8x32xf32> to vector<8x8xf32>
    %591 = vector.extract_strided_slice %585 {offsets = [0, 16], sizes = [8, 8], strides = [1, 1]} : vector<8x32xf32> to vector<8x8xf32>
    %592 = vector.extract_strided_slice %585 {offsets = [0, 24], sizes = [8, 8], strides = [1, 1]} : vector<8x32xf32> to vector<8x8xf32>
    %593 = vector.shape_cast %589 : vector<8x8xf32> to vector<1x8x8xf32>
    %594 = vector.shape_cast %590 : vector<8x8xf32> to vector<1x8x8xf32>
    %595 = vector.shape_cast %591 : vector<8x8xf32> to vector<1x8x8xf32>
    %596 = vector.shape_cast %592 : vector<8x8xf32> to vector<1x8x8xf32>
    %597 = tpu.concatenate %593, %594, %595, %596 in 0 : vector<1x8x8xf32>, vector<1x8x8xf32>, vector<1x8x8xf32>, vector<1x8x8xf32> -> vector<4x8x8xf32>
    %598 = vector.extract_strided_slice %588 {offsets = [0, 0], sizes = [8, 8], strides = [1, 1]} : vector<8x64xf32> to vector<8x8xf32>
    %599 = vector.extract_strided_slice %588 {offsets = [0, 8], sizes = [8, 8], strides = [1, 1]} : vector<8x64xf32> to vector<8x8xf32>
    %600 = vector.extract_strided_slice %588 {offsets = [0, 16], sizes = [8, 8], strides = [1, 1]} : vector<8x64xf32> to vector<8x8xf32>
    %601 = vector.extract_strided_slice %588 {offsets = [0, 24], sizes = [8, 8], strides = [1, 1]} : vector<8x64xf32> to vector<8x8xf32>
    %602 = vector.shape_cast %598 : vector<8x8xf32> to vector<1x8x8xf32>
    %603 = vector.shape_cast %599 : vector<8x8xf32> to vector<1x8x8xf32>
    %604 = vector.shape_cast %600 : vector<8x8xf32> to vector<1x8x8xf32>
    %605 = vector.shape_cast %601 : vector<8x8xf32> to vector<1x8x8xf32>
    %606 = tpu.concatenate %602, %603, %604, %605 in 0 : vector<1x8x8xf32>, vector<1x8x8xf32>, vector<1x8x8xf32>, vector<1x8x8xf32> -> vector<4x8x8xf32>
    %607 = vector.extract_strided_slice %588 {offsets = [0, 32], sizes = [8, 8], strides = [1, 1]} : vector<8x64xf32> to vector<8x8xf32>
    %608 = vector.extract_strided_slice %588 {offsets = [0, 40], sizes = [8, 8], strides = [1, 1]} : vector<8x64xf32> to vector<8x8xf32>
    %609 = vector.extract_strided_slice %588 {offsets = [0, 48], sizes = [8, 8], strides = [1, 1]} : vector<8x64xf32> to vector<8x8xf32>
    %610 = vector.extract_strided_slice %588 {offsets = [0, 56], sizes = [8, 8], strides = [1, 1]} : vector<8x64xf32> to vector<8x8xf32>
    %611 = vector.shape_cast %607 : vector<8x8xf32> to vector<1x8x8xf32>
    %612 = vector.shape_cast %608 : vector<8x8xf32> to vector<1x8x8xf32>
    %613 = vector.shape_cast %609 : vector<8x8xf32> to vector<1x8x8xf32>
    %614 = vector.shape_cast %610 : vector<8x8xf32> to vector<1x8x8xf32>
    %615 = tpu.concatenate %611, %612, %613, %614 in 0 : vector<1x8x8xf32>, vector<1x8x8xf32>, vector<1x8x8xf32>, vector<1x8x8xf32> -> vector<4x8x8xf32>
    "tpu.trace_start"() <{level = 10 : i32, message = "nqd,nkd->nqk"}> : () -> ()
    %cst_220 = arith.constant dense<0.000000e+00> : vector<4x8x8xf32>
    %616 = tpu.matmul %597, %606, %cst_220 {dimension_numbers = #tpu.dot_dimension_numbers<[2], [2], [1], [1], [0, 0, 0, 1, 1, 1], [0], [0]>} : vector<4x8x8xf32>, vector<4x8x8xf32>, vector<4x8x8xf32> -> vector<4x8x8xf32>
    "tpu.trace_stop"() : () -> ()
    %cst_221 = arith.constant 0.353553385 : f32
    %617 = vector.broadcast %cst_221 : f32 to vector<4x8x8xf32>
    %618 = arith.mulf %616, %617 : vector<4x8x8xf32>
    %cst_222 = arith.constant 0.000000e+00 : f32
    %619 = vector.broadcast %cst_222 : f32 to vector<1x1x8xf32>
    %620 = arith.cmpf ogt, %2, %619 : vector<1x1x8xf32>
    %cst_223 = arith.constant -1.000000e+09 : f32
    %621 = vector.shape_cast %620 : vector<1x1x8xi1> to vector<1x1x8xi1>
    %622 = vector.broadcast %621 : vector<1x1x8xi1> to vector<4x8x8xi1>
    %623 = vector.broadcast %cst_223 : f32 to vector<4x8x8xf32>
    %624 = arith.select %622, %618, %623 : vector<4x8x8xi1>, vector<4x8x8xf32>
    %cst_224 = arith.constant dense<0xFF800000> : vector<4x8xf32>
    %625 = vector.multi_reduction <maximumf>, %624, %cst_224 [2] : vector<4x8x8xf32> to vector<4x8xf32>
    %626 = vector.shape_cast %625 : vector<4x8xf32> to vector<4x8x1xf32>
    %627 = vector.broadcast %626 : vector<4x8x1xf32> to vector<4x8x8xf32>
    %628 = arith.subf %624, %627 : vector<4x8x8xf32>
    %629 = math.exp %628 : vector<4x8x8xf32>
    %cst_225 = arith.constant dense<0.000000e+00> : vector<4x8xf32>
    %630 = vector.multi_reduction <add>, %629, %cst_225 [2] : vector<4x8x8xf32> to vector<4x8xf32>
    %631 = vector.shape_cast %630 : vector<4x8xf32> to vector<4x8x1xf32>
    %632 = tpu.reciprocal %631 {approx = true} : vector<4x8x1xf32> -> vector<4x8x1xf32>
    %633 = vector.broadcast %632 : vector<4x8x1xf32> to vector<4x8x8xf32>
    %634 = arith.mulf %629, %633 : vector<4x8x8xf32>
    "tpu.trace_start"() <{level = 10 : i32, message = "nqk,nkd->nqd"}> : () -> ()
    %cst_226 = arith.constant dense<0.000000e+00> : vector<4x8x8xf32>
    %635 = tpu.matmul %634, %615, %cst_226 {dimension_numbers = #tpu.dot_dimension_numbers<[2], [1], [1], [2], [0, 0, 0, 1, 1, 2], [0], [0]>} : vector<4x8x8xf32>, vector<4x8x8xf32>, vector<4x8x8xf32> -> vector<4x8x8xf32>
    "tpu.trace_stop"() : () -> ()
    "tpu.trace_start"() <{level = 10 : i32, message = "nqd,ndh->nqh"}> : () -> ()
    %cst_227 = arith.constant dense<0.000000e+00> : vector<4x8x32xf32>
    %636 = tpu.matmul %635, %581, %cst_227 {dimension_numbers = #tpu.dot_dimension_numbers<[2], [1], [1], [2], [0, 0, 0, 1, 1, 2], [0], [0]>} : vector<4x8x8xf32>, vector<4x8x32xf32>, vector<4x8x32xf32> -> vector<4x8x32xf32>
    "tpu.trace_stop"() : () -> ()
    %cst_228 = arith.constant dense<0.000000e+00> : vector<8x32xf32>
    %637 = vector.multi_reduction <add>, %636, %cst_228 [0] : vector<4x8x32xf32> to vector<8x32xf32>
    %638 = vector.broadcast %582 : vector<1x32xf32> to vector<8x32xf32>
    %639 = arith.addf %637, %638 : vector<8x32xf32>
    %c0_229 = arith.constant 0 : index
    %c4 = arith.constant 4 : index
    %c0_230 = arith.constant 0 : index
    %c0_231 = arith.constant 0 : index
    %640 = vector.load %arg25[%c0_229, %c4, %c0_230, %c0_231] : memref<1x8x8x8xf32, #tpu.memory_space<vmem>>, vector<1x4x8x8xf32>
    %641 = vector.shape_cast %640 : vector<1x4x8x8xf32> to vector<4x8x8xf32>
    %642 = vector.shape_cast %634 : vector<4x8x8xf32> to vector<1x4x8x8xf32>
    tpu.vector_store %arg25[%c0_229, %c4, %c0_230, %c0_231], %642 {strides = array<i32>} : memref<1x8x8x8xf32, #tpu.memory_space<vmem>>, vector<1x4x8x8xf32>,
    %643 = arith.addf %572, %639 : vector<8x32xf32>
    %644 = vector.extract_strided_slice %486 {offsets = [6, 0], sizes = [1, 32], strides = [1, 1]} : vector<10x32xf32> to vector<1x32xf32>
    %645 = vector.extract_strided_slice %486 {offsets = [7, 0], sizes = [1, 32], strides = [1, 1]} : vector<10x32xf32> to vector<1x32xf32>
    %cst_232 = arith.constant dense<0.000000e+00> : vector<8xf32>
    %646 = vector.multi_reduction <add>, %643, %cst_232 [1] : vector<8x32xf32> to vector<8xf32>
    %647 = vector.shape_cast %646 : vector<8xf32> to vector<8x1xf32>
    %cst_233 = arith.constant 3.200000e+01 : f32
    %648 = vector.broadcast %cst_233 : f32 to vector<8x1xf32>
    %649 = arith.divf %647, %648 : vector<8x1xf32>
    %650 = vector.broadcast %649 : vector<8x1xf32> to vector<8x32xf32>
    %651 = arith.subf %643, %650 : vector<8x32xf32>
    %652 = arith.mulf %651, %651 : vector<8x32xf32>
    %cst_234 = arith.constant dense<0.000000e+00> : vector<8xf32>
    %653 = vector.multi_reduction <add>, %652, %cst_234 [1] : vector<8x32xf32> to vector<8xf32>
    %654 = vector.shape_cast %653 : vector<8xf32> to vector<8x1xf32>
    %cst_235 = arith.constant 3.200000e+01 : f32
    %655 = vector.broadcast %cst_235 : f32 to vector<8x1xf32>
    %656 = arith.divf %654, %655 : vector<8x1xf32>
    %657 = vector.broadcast %649 : vector<8x1xf32> to vector<8x32xf32>
    %658 = arith.subf %643, %657 : vector<8x32xf32>
    %cst_236 = arith.constant 9.99999974E-6 : f32
    %659 = vector.broadcast %cst_236 : f32 to vector<8x1xf32>
    %660 = arith.addf %656, %659 : vector<8x1xf32>
    %661 = math.rsqrt %660 : vector<8x1xf32>
    %662 = vector.broadcast %661 : vector<8x1xf32> to vector<8x32xf32>
    %663 = arith.mulf %658, %662 : vector<8x32xf32>
    %664 = vector.broadcast %644 : vector<1x32xf32> to vector<8x32xf32>
    %665 = arith.mulf %663, %664 : vector<8x32xf32>
    %666 = vector.broadcast %645 : vector<1x32xf32> to vector<8x32xf32>
    %667 = arith.addf %665, %666 : vector<8x32xf32>
    %c1_237 = arith.constant 1 : index
    %c0_238 = arith.constant 0 : index
    %c0_239 = arith.constant 0 : index
    %668 = vector.load %arg19[%c1_237, %c0_238, %c0_239] : memref<2x32x64xf32, #tpu.memory_space<vmem>>, vector<1x32x64xf32>
    %669 = vector.shape_cast %668 : vector<1x32x64xf32> to vector<32x64xf32>
    %cst_240 = arith.constant dense<0.000000e+00> : vector<8x64xf32>
    %670 = tpu.matmul %667, %669, %cst_240 {dimension_numbers = #tpu.dot_dimension_numbers<[1], [0], [0], [1], [0, 0, 1, 1], [], []>} : vector<8x32xf32>, vector<32x64xf32>, vector<8x64xf32> -> vector<8x64xf32>
    %c1_241 = arith.constant 1 : index
    %c0_242 = arith.constant 0 : index
    %c0_243 = arith.constant 0 : index
    %671 = vector.load %arg20[%c1_241, %c0_242, %c0_243] : memref<2x1x64xf32, #tpu.memory_space<vmem>>, vector<1x1x64xf32>
    %672 = vector.shape_cast %671 : vector<1x1x64xf32> to vector<1x64xf32>
    %673 = vector.broadcast %672 : vector<1x64xf32> to vector<8x64xf32>
    %674 = arith.addf %670, %673 : vector<8x64xf32>
    %cst_244 = arith.constant 0.000000e+00 : f32
    %675 = vector.broadcast %cst_244 : f32 to vector<8x64xf32>
    %676 = arith.maximumf %674, %675 : vector<8x64xf32>
    %c1_245 = arith.constant 1 : index
    %c0_246 = arith.constant 0 : index
    %c0_247 = arith.constant 0 : index
    %677 = vector.load %arg21[%c1_245, %c0_246, %c0_247] : memref<2x64x32xf32, #tpu.memory_space<vmem>>, vector<1x64x32xf32>
    %678 = vector.shape_cast %677 : vector<1x64x32xf32> to vector<64x32xf32>
    %cst_248 = arith.constant dense<0.000000e+00> : vector<8x32xf32>
    %679 = tpu.matmul %676, %678, %cst_248 {dimension_numbers = #tpu.dot_dimension_numbers<[1], [0], [0], [1], [0, 0, 1, 1], [], []>} : vector<8x64xf32>, vector<64x32xf32>, vector<8x32xf32> -> vector<8x32xf32>
    %680 = vector.extract_strided_slice %486 {offsets = [3, 0], sizes = [1, 32], strides = [1, 1]} : vector<10x32xf32> to vector<1x32xf32>
    %681 = vector.broadcast %680 : vector<1x32xf32> to vector<8x32xf32>
    %682 = arith.addf %679, %681 : vector<8x32xf32>
    %683 = arith.addf %667, %682 : vector<8x32xf32>
    %684 = vector.extract_strided_slice %486 {offsets = [8, 0], sizes = [1, 32], strides = [1, 1]} : vector<10x32xf32> to vector<1x32xf32>
    %685 = vector.extract_strided_slice %486 {offsets = [9, 0], sizes = [1, 32], strides = [1, 1]} : vector<10x32xf32> to vector<1x32xf32>
    %cst_249 = arith.constant dense<0.000000e+00> : vector<8xf32>
    %686 = vector.multi_reduction <add>, %683, %cst_249 [1] : vector<8x32xf32> to vector<8xf32>
    %687 = vector.shape_cast %686 : vector<8xf32> to vector<8x1xf32>
    %cst_250 = arith.constant 3.200000e+01 : f32
    %688 = vector.broadcast %cst_250 : f32 to vector<8x1xf32>
    %689 = arith.divf %687, %688 : vector<8x1xf32>
    %690 = vector.broadcast %689 : vector<8x1xf32> to vector<8x32xf32>
    %691 = arith.subf %683, %690 : vector<8x32xf32>
    %692 = arith.mulf %691, %691 : vector<8x32xf32>
    %cst_251 = arith.constant dense<0.000000e+00> : vector<8xf32>
    %693 = vector.multi_reduction <add>, %692, %cst_251 [1] : vector<8x32xf32> to vector<8xf32>
    %694 = vector.shape_cast %693 : vector<8xf32> to vector<8x1xf32>
    %cst_252 = arith.constant 3.200000e+01 : f32
    %695 = vector.broadcast %cst_252 : f32 to vector<8x1xf32>
    %696 = arith.divf %694, %695 : vector<8x1xf32>
    %697 = vector.broadcast %689 : vector<8x1xf32> to vector<8x32xf32>
    %698 = arith.subf %683, %697 : vector<8x32xf32>
    %cst_253 = arith.constant 9.99999974E-6 : f32
    %699 = vector.broadcast %cst_253 : f32 to vector<8x1xf32>
    %700 = arith.addf %696, %699 : vector<8x1xf32>
    %701 = math.rsqrt %700 : vector<8x1xf32>
    %702 = vector.broadcast %701 : vector<8x1xf32> to vector<8x32xf32>
    %703 = arith.mulf %698, %702 : vector<8x32xf32>
    %704 = vector.broadcast %684 : vector<1x32xf32> to vector<8x32xf32>
    %705 = arith.mulf %703, %704 : vector<8x32xf32>
    %706 = vector.broadcast %685 : vector<1x32xf32> to vector<8x32xf32>
    %707 = arith.addf %705, %706 : vector<8x32xf32>
    %c0_254 = arith.constant 0 : index
    %c0_255 = arith.constant 0 : index
    %708 = vector.load %arg23[%c0_254, %c0_255] : memref<32x100xf32, #tpu.memory_space<vmem>>, vector<32x100xf32>
    %cst_256 = arith.constant dense<0.000000e+00> : vector<8x100xf32>
    %709 = tpu.matmul %707, %708, %cst_256 {dimension_numbers = #tpu.dot_dimension_numbers<[1], [0], [0], [1], [0, 0, 1, 1], [], []>} : vector<8x32xf32>, vector<32x100xf32>, vector<8x100xf32> -> vector<8x100xf32>
    %c0_257 = arith.constant 0 : index
    %c0_258 = arith.constant 0 : index
    %710 = vector.load %arg24[%c0_257, %c0_258] : memref<1x100xf32, #tpu.memory_space<vmem>>, vector<1x100xf32>
    %711 = vector.broadcast %710 : vector<1x100xf32> to vector<8x100xf32>
    %712 = arith.addf %709, %711 : vector<8x100xf32>
    %c0_259 = arith.constant 0 : index
    %c0_260 = arith.constant 0 : index
    %c0_261 = arith.constant 0 : index
    %713 = vector.load %arg26[%c0_259, %c0_260, %c0_261] : memref<1x8x100xf32, #tpu.memory_space<vmem>>, vector<1x8x100xf32>
    %714 = vector.shape_cast %713 : vector<1x8x100xf32> to vector<8x100xf32>
    %715 = vector.shape_cast %712 : vector<8x100xf32> to vector<1x8x100xf32>
    tpu.vector_store %arg26[%c0_259, %c0_260, %c0_261], %715 {strides = array<i32>} : memref<1x8x100xf32, #tpu.memory_space<vmem>>, vector<1x8x100xf32>,
    return
  }
  func.func @transform_0(%arg0: i32) -> (i32, i32, i32) {
    %c0_i32 = arith.constant 0 : i32
    %c0_i32_0 = arith.constant 0 : i32
    %c0_i32_1 = arith.constant 0 : i32
    return %arg0, %c0_i32, %c0_i32_0 : i32, i32, i32
  }
  func.func @transform_1(%arg0: i32) -> (i32, i32, i32) {
    %c0_i32 = arith.constant 0 : i32
    %c0_i32_0 = arith.constant 0 : i32
    %c0_i32_1 = arith.constant 0 : i32
    return %arg0, %c0_i32, %c0_i32_0 : i32, i32, i32
  }
  func.func @transform_2(%arg0: i32) -> (i32, i32, i32) {
    %c0_i32 = arith.constant 0 : i32
    %c0_i32_0 = arith.constant 0 : i32
    %c0_i32_1 = arith.constant 0 : i32
    return %arg0, %c0_i32, %c0_i32_0 : i32, i32, i32
  }
  func.func @transform_3(%arg0: i32) -> (i32, i32, i32) {
    %c0_i32 = arith.constant 0 : i32
    %c0_i32_0 = arith.constant 0 : i32
    %c0_i32_1 = arith.constant 0 : i32
    return %arg0, %c0_i32, %c0_i32_0 : i32, i32, i32
  }
  func.func @transform_4(%arg0: i32) -> (i32, i32, i32) {
    %c0_i32 = arith.constant 0 : i32
    %c0_i32_0 = arith.constant 0 : i32
    %c0_i32_1 = arith.constant 0 : i32
    %c0_i32_2 = arith.constant 0 : i32
    return %c0_i32, %c0_i32_0, %c0_i32_1 : i32, i32, i32
  }
  func.func @transform_5(%arg0: i32) -> (i32, i32, i32) {
    %c0_i32 = arith.constant 0 : i32
    %c0_i32_0 = arith.constant 0 : i32
    %c0_i32_1 = arith.constant 0 : i32
    %c0_i32_2 = arith.constant 0 : i32
    return %c0_i32, %c0_i32_0, %c0_i32_1 : i32, i32, i32
  }
  func.func @transform_6(%arg0: i32) -> (i32, i32, i32, i32) {
    %c0_i32 = arith.constant 0 : i32
    %c0_i32_0 = arith.constant 0 : i32
    %c0_i32_1 = arith.constant 0 : i32
    %c0_i32_2 = arith.constant 0 : i32
    %c0_i32_3 = arith.constant 0 : i32
    return %c0_i32, %c0_i32_0, %c0_i32_1, %c0_i32_2 : i32, i32, i32, i32
  }
  func.func @transform_7(%arg0: i32) -> (i32, i32, i32) {
    %c0_i32 = arith.constant 0 : i32
    %c0_i32_0 = arith.constant 0 : i32
    %c0_i32_1 = arith.constant 0 : i32
    %c0_i32_2 = arith.constant 0 : i32
    return %c0_i32, %c0_i32_0, %c0_i32_1 : i32, i32, i32
  }
  func.func @transform_8(%arg0: i32) -> (i32, i32, i32) {
    %c0_i32 = arith.constant 0 : i32
    %c0_i32_0 = arith.constant 0 : i32
    %c0_i32_1 = arith.constant 0 : i32
    %c0_i32_2 = arith.constant 0 : i32
    return %c0_i32, %c0_i32_0, %c0_i32_1 : i32, i32, i32
  }
  func.func @transform_9(%arg0: i32) -> (i32, i32, i32) {
    %c0_i32 = arith.constant 0 : i32
    %c0_i32_0 = arith.constant 0 : i32
    %c0_i32_1 = arith.constant 0 : i32
    %c0_i32_2 = arith.constant 0 : i32
    return %c0_i32, %c0_i32_0, %c0_i32_1 : i32, i32, i32
  }
  func.func @transform_10(%arg0: i32) -> (i32, i32, i32) {
    %c0_i32 = arith.constant 0 : i32
    %c0_i32_0 = arith.constant 0 : i32
    %c0_i32_1 = arith.constant 0 : i32
    %c0_i32_2 = arith.constant 0 : i32
    return %c0_i32, %c0_i32_0, %c0_i32_1 : i32, i32, i32
  }
  func.func @transform_11(%arg0: i32) -> (i32, i32, i32) {
    %c0_i32 = arith.constant 0 : i32
    %c0_i32_0 = arith.constant 0 : i32
    %c0_i32_1 = arith.constant 0 : i32
    %c0_i32_2 = arith.constant 0 : i32
    return %c0_i32, %c0_i32_0, %c0_i32_1 : i32, i32, i32
  }
  func.func @transform_12(%arg0: i32) -> (i32, i32, i32) {
    %c0_i32 = arith.constant 0 : i32
    %c0_i32_0 = arith.constant 0 : i32
    %c0_i32_1 = arith.constant 0 : i32
    %c0_i32_2 = arith.constant 0 : i32
    return %c0_i32, %c0_i32_0, %c0_i32_1 : i32, i32, i32
  }
  func.func @transform_13(%arg0: i32) -> (i32, i32, i32, i32) {
    %c0_i32 = arith.constant 0 : i32
    %c0_i32_0 = arith.constant 0 : i32
    %c0_i32_1 = arith.constant 0 : i32
    %c0_i32_2 = arith.constant 0 : i32
    %c0_i32_3 = arith.constant 0 : i32
    return %c0_i32, %c0_i32_0, %c0_i32_1, %c0_i32_2 : i32, i32, i32, i32
  }
  func.func @transform_14(%arg0: i32) -> (i32, i32, i32) {
    %c0_i32 = arith.constant 0 : i32
    %c0_i32_0 = arith.constant 0 : i32
    %c0_i32_1 = arith.constant 0 : i32
    %c0_i32_2 = arith.constant 0 : i32
    return %c0_i32, %c0_i32_0, %c0_i32_1 : i32, i32, i32
  }
  func.func @transform_15(%arg0: i32) -> (i32, i32, i32) {
    %c0_i32 = arith.constant 0 : i32
    %c0_i32_0 = arith.constant 0 : i32
    %c0_i32_1 = arith.constant 0 : i32
    %c0_i32_2 = arith.constant 0 : i32
    return %c0_i32, %c0_i32_0, %c0_i32_1 : i32, i32, i32
  }
  func.func @transform_16(%arg0: i32) -> (i32, i32, i32) {
    %c0_i32 = arith.constant 0 : i32
    %c0_i32_0 = arith.constant 0 : i32
    %c0_i32_1 = arith.constant 0 : i32
    %c0_i32_2 = arith.constant 0 : i32
    return %c0_i32, %c0_i32_0, %c0_i32_1 : i32, i32, i32
  }
  func.func @transform_17(%arg0: i32) -> (i32, i32, i32, i32) {
    %c0_i32 = arith.constant 0 : i32
    %c0_i32_0 = arith.constant 0 : i32
    %c0_i32_1 = arith.constant 0 : i32
    %c0_i32_2 = arith.constant 0 : i32
    %c0_i32_3 = arith.constant 0 : i32
    return %c0_i32, %c0_i32_0, %c0_i32_1, %c0_i32_2 : i32, i32, i32, i32
  }
  func.func @transform_18(%arg0: i32) -> (i32, i32, i32) {
    %c0_i32 = arith.constant 0 : i32
    %c0_i32_0 = arith.constant 0 : i32
    %c0_i32_1 = arith.constant 0 : i32
    %c0_i32_2 = arith.constant 0 : i32
    return %c0_i32, %c0_i32_0, %c0_i32_1 : i32, i32, i32
  }
  func.func @transform_19(%arg0: i32) -> (i32, i32, i32) {
    %c0_i32 = arith.constant 0 : i32
    %c0_i32_0 = arith.constant 0 : i32
    %c0_i32_1 = arith.constant 0 : i32
    %c0_i32_2 = arith.constant 0 : i32
    return %c0_i32, %c0_i32_0, %c0_i32_1 : i32, i32, i32
  }
  func.func @transform_20(%arg0: i32) -> (i32, i32, i32) {
    %c0_i32 = arith.constant 0 : i32
    %c0_i32_0 = arith.constant 0 : i32
    %c0_i32_1 = arith.constant 0 : i32
    %c0_i32_2 = arith.constant 0 : i32
    return %c0_i32, %c0_i32_0, %c0_i32_1 : i32, i32, i32
  }
  func.func @transform_21(%arg0: i32) -> (i32, i32, i32) {
    %c0_i32 = arith.constant 0 : i32
    %c0_i32_0 = arith.constant 0 : i32
    %c0_i32_1 = arith.constant 0 : i32
    %c0_i32_2 = arith.constant 0 : i32
    return %c0_i32, %c0_i32_0, %c0_i32_1 : i32, i32, i32
  }
  func.func @transform_22(%arg0: i32) -> (i32, i32) {
    %c0_i32 = arith.constant 0 : i32
    %c0_i32_0 = arith.constant 0 : i32
    %c0_i32_1 = arith.constant 0 : i32
    return %c0_i32, %c0_i32_0 : i32, i32
  }
  func.func @transform_23(%arg0: i32) -> (i32, i32) {
    %c0_i32 = arith.constant 0 : i32
    %c0_i32_0 = arith.constant 0 : i32
    %c0_i32_1 = arith.constant 0 : i32
    return %c0_i32, %c0_i32_0 : i32, i32
  }
  func.func @transform_24(%arg0: i32) -> (i32, i32, i32, i32) {
    %c0_i32 = arith.constant 0 : i32
    %c0_i32_0 = arith.constant 0 : i32
    %c0_i32_1 = arith.constant 0 : i32
    %c0_i32_2 = arith.constant 0 : i32
    return %arg0, %c0_i32, %c0_i32_0, %c0_i32_1 : i32, i32, i32, i32
  }
  func.func @transform_25(%arg0: i32) -> (i32, i32, i32) {
    %c0_i32 = arith.constant 0 : i32
    %c0_i32_0 = arith.constant 0 : i32
    %c0_i32_1 = arith.constant 0 : i32
    return %arg0, %c0_i32, %c0_i32_0 : i32, i32, i32
  }
}

</mosaic_0001>

<bundles_post_ra>
// kernel: tpu_custom_call.1
= control target key start
LH: loop header
LB: loop body
LE: loop exit
PB: predicated region body
PF: predicated region fallthrough
CT: control target
= control target key end

     0   :  { %s6653_s0 = inlined_call_operand.hbm [shape: f32[2,8,32], index: 0, kind: input, shape index: {}]   ;;  %s6654_s1 = inlined_call_operand.hbm [shape: f32[2,8,32], index: 1, kind: input, shape index: {}]   ;;  %s6655_s2 = inlined_call_operand.hbm [shape: f32[2,1,8], index: 2, kind: input, shape index: {}]   ;;  %s6656_s3 = inlined_call_operand.hbm [shape: f32[2,8,8], index: 3, kind: input, shape index: {}]   ;;  %s6657_s4 = inlined_call_operand.vmem [shape: f32[2,32,96], index: 4, kind: input, shape index: {}]   ;;  %s6658_s5 = inlined_call_operand.hbm [shape: f32[2,1,96], index: 5, kind: input, shape index: {}]   ;;  %s6659_s6 = inlined_call_operand.vmem [shape: f32[2,4,8,32], index: 6, kind: input, shape index: {}]   ;;  %s6660_s7 = inlined_call_operand.vmem [shape: f32[2,32,64], index: 7, kind: input, shape index: {}]   ;;  %s6661_s8 = inlined_call_operand.hbm [shape: f32[2,1,64], index: 8, kind: input, shape index: {}]   ;;  %s6662_s9 = inlined_call_operand.vmem [shape: f32[2,64,32], index: 9, kind: input, shape index: {}]   ;;  %s6663_s10 = inlined_call_operand.vmem [shape: f32[2,6,32], index: 10, kind: input, shape index: {}]   ;;  %s6664_s11 = inlined_call_operand.vmem [shape: f32[2,32,96], index: 11, kind: input, shape index: {}]   ;;  %s6665_s12 = inlined_call_operand.hbm [shape: f32[2,1,96], index: 12, kind: input, shape index: {}]   ;;  %s6666_s13 = inlined_call_operand.vmem [shape: f32[2,4,8,32], index: 13, kind: input, shape index: {}]   ;;  %s6667_s14 = inlined_call_operand.vmem [shape: f32[2,32,32], index: 14, kind: input, shape index: {}]   ;;  %s6668_s15 = inlined_call_operand.vmem [shape: f32[2,32,64], index: 15, kind: input, shape index: {}]   ;;  %s6669_s16 = inlined_call_operand.hbm [shape: f32[2,1,64], index: 16, kind: input, shape index: {}]   ;;  %s6670_s17 = inlined_call_operand.hbm [shape: f32[2,4,8,32], index: 17, kind: input, shape index: {}]   ;;  %s6671_s18 = inlined_call_operand.hbm [shape: f32[2,32,64], index: 18, kind: input, shape index: {}]   ;;  %s6672_s19 = inlined_call_operand.hbm [shape: f32[2,1,64], index: 19, kind: input, shape index: {}]   ;;  %s6673_s20 = inlined_call_operand.vmem [shape: f32[2,64,32], index: 20, kind: input, shape index: {}]   ;;  %s6674_s21 = inlined_call_operand.vmem [shape: f32[2,10,32], index: 21, kind: input, shape index: {}]   ;;  %s6675_s22 = inlined_call_operand.vmem [shape: f32[32,100], index: 22, kind: input, shape index: {}]   ;;  %s6676_s23 = inlined_call_operand.vmem [shape: f32[1,100], index: 23, kind: input, shape index: {}]   ;;  %s6677_s24 = inlined_call_operand.hbm [shape: f32[2,8,8,8], index: 24, kind: output, shape index: {0}]   ;;  %s6678_s25 = inlined_call_operand.hbm [shape: f32[2,8,100], index: 25, kind: output, shape index: {1}]  }
   0x1   :  { %6724 = sst [smem:[#allocation38_spill]] %s6653_s0 }
   0x2   :  { %6725 = sst [smem:[#allocation39_spill]] %s6654_s1 }
   0x3   :  { %6726 = sst [smem:[#allocation40_spill]] %s6655_s2 }
   0x4   :  { %6727 = sst [smem:[#allocation41_spill]] %s6656_s3 }
   0x5   :  { %6728 = sst [smem:[#allocation42_spill]] %s6657_s4 }
   0x6   :  { %6729 = sst [smem:[#allocation43_spill]] %s6658_s5 }
   0x7   :  { %6730 = sst [smem:[#allocation44_spill]] %s6659_s6 }
   0x8   :  { %6731 = sst [smem:[#allocation45_spill]] %s6660_s7 }
   0x9   :  { %6732 = sst [smem:[#allocation46_spill]] %s6661_s8 }
   0xa   :  { %6733 = sst [smem:[#allocation47_spill]] %s6662_s9 }
   0xb   :  { %6734 = sst [smem:[#allocation48_spill]] %s6663_s10 }
   0xc   :  { %6735 = sst [smem:[#allocation49_spill]] %s6664_s11 }
   0xd   :  { %6736 = sst [smem:[#allocation50_spill]] %s6665_s12 }
   0xe   :  { %6737 = sst [smem:[#allocation51_spill]] %s6666_s13 }
   0xf   :  { %6738 = sst [smem:[#allocation52_spill]] %s6667_s14 }
  0x10   :  { %6739 = sst [smem:[#allocation53_spill]] %s6668_s15 }
  0x11   :  { %6740 = sst [smem:[#allocation54_spill]] %s6669_s16 }
  0x12   :  { %6741 = sst [smem:[#allocation55_spill]] %s6670_s17 }
  0x13   :  { %6742 = sst [smem:[#allocation56_spill]] %s6671_s18 }
  0x14   :  { %6743 = sst [smem:[#allocation57_spill]] %s6672_s19 }
  0x15   :  { %6744 = sst [smem:[#allocation58_spill]] %s6673_s20 }
  0x16   :  { %6745 = sst [smem:[#allocation59_spill]] %s6674_s21 }
  0x17   :  { %6746 = sst [smem:[#allocation60_spill]] %s6675_s22 }
  0x18   :  { %6747 = sst [smem:[#allocation61_spill]] %s6676_s23 }
  0x19   :  { %6748 = sst [smem:[#allocation62_spill]] %s6677_s24 }
  0x1a   :  { %6749 = sst [smem:[#allocation63_spill]] %s6678_s25 }
  0x1b   :  { %31 = vsyncpa [#allocation3], 0 }
  0x1c   :  { %33 = vsyncpa [#allocation3 + $0x1], 0 }
  0x1d   :  { %34 = vsyncpa [#allocation6], 0 }
  0x1e   :  { %36 = vsyncpa [#allocation6 + $0x1], 0 }
  0x1f   :  { %37 = vsyncpa [#allocation9], 0 }
  0x20   :  { %39 = vsyncpa [#allocation9 + $0x1], 0 }
  0x21   :  { %40 = vsyncpa [#allocation12], 0 }
  0x22   :  { %41 = vsyncpa [#allocation15], 0 }
  0x23   :  { %42 = vsyncpa [#allocation18], 0 }
  0x24   :  { %43 = vsyncpa [#allocation4], 0 }
  0x25   :  { %45 = vsyncpa [#allocation4 + $0x1], 0 }
  0x26   :  { %46 = vsyncpa [#allocation22], 0 }
  0x27   :  { %48 = vsyncpa [#allocation22 + $0x1], 0  ;;  %s5513_s29 = smov 0   ;;  %s5515_s2 = smov 0  }
  0x28   :  { %s5517_s6 = smov 0   ;;  %s5519_s30 = smov 0  }
  0x29 LB: > { %6750 = sst [smem:[#allocation32_spill]] %s5349_s29  ;;  %s5537_s8 = sadd.s32 4294967295, %s5361_s30   ;;  %s5361_s30 = sphi %s5519_s30, %s6819_s30   ;;  %s5357_s6 = sphi %s5517_s6, %s6821_s6   ;;  %s5353_s2 = sphi %s5515_s2, %s6823_s2   ;;  %s5349_s29 = sphi %s5513_s29, %s6822_s29  }
  0x2a   : > { %6751 = sst [smem:[#allocation33_spill]] %s5357_s6  ;;  %p4370_p0 = scmp.ge.s32.totalorder %s5361_s30, 1 }
  0x2b   : > { %s6752_s26 = sld [smem:[#allocation43_spill]]  ;;  %p6704_p1 = scmp.eq.s32.totalorder %s5537_s8, 0 }
  0x2c   : > { %p635_p2 = scmp.lt.s32.totalorder %s5361_s30, 3  ;;  %s5363_s4 = smov [#allocation10]  }
  0x2d   : > { %s651_s28 = sshll.u32 %s5363_s4, 4  ;;  %s6754_s0 = sld [smem:[#allocation46_spill]]  ;;  %s652_s28 = int_to_ptr.vmem [resolvable:$true] %s651_s28 }
  0x2e   : > { %p5542_p3 = pnand %p4370_p0, %p635_p2  ;;  %s6756_s16 = sld [smem:[#allocation54_spill]] }
  0x2f   : > { %s5364_s25 = smov [#allocation11]   ;;  %s6693_s22 = smov 16  }
  0x30   : > { %p4610_p4 = pneg %p5542_p3  ;;  %s671_s24 = sshll.u32 %s5364_s25, 4  ;;  %s672_s24 = int_to_ptr.vmem [resolvable:$true] %s671_s24 }
  0x31   : > { %s649_s1 = sshll.u32 %s6752_s26, 4  ;;  %s6695_s20 = smov 1   ;;  %s650_s1 = int_to_ptr.hbm [resolvable:$true] %s649_s1 }
  0x32   : > { %p5554_p6 = pnand %p4610_p4, %p6704_p1  ;;  %s5367_s23 = smov [#allocation14]  }
  0x33   : > { %s669_s7 = sshll.u32 %s6754_s0, 4  ;;  %s717_s25 = sshll.u32 %s5367_s23, 4  ;;  %s670_s7 = int_to_ptr.hbm [resolvable:$true] %s669_s7  ;;  %s718_s25 = int_to_ptr.vmem [resolvable:$true] %s717_s25 }
  0x34   : > { %s715_s4 = sshll.u32 %s6756_s16, 4  ;;  %s6757_s18 = sld [smem:[#allocation56_spill]]  ;;  %s716_s4 = int_to_ptr.hbm [resolvable:$true] %s715_s4 }
  0x35   : > { %4613 = dma.hbm_to_vmem [thread:$0]  (!%p5554_p6), %s650_s1, 32, %s652_s28, [#allocation9], %s6693_s22, %s6693_s22, %s6695_s20  }
  0x36   : > { %4616 = dma.hbm_to_vmem [thread:$0]  (!%p5554_p6), %s670_s7, 32, %s672_s24, [#allocation12], %s6693_s22, %s6693_s22, %s6695_s20  }
  0x37   : > { %4622 = dma.hbm_to_vmem [thread:$0]  (!%p5554_p6), %s716_s4, 32, %s718_s25, [#allocation15], %s6693_s22, %s6693_s22, %s6695_s20  }
  0x38   : > { %s5368_s24 = smov [#allocation17]   ;;  %s6691_s0 = smov 128  }
  0x39   : > { %s745_s28 = sshll.u32 %s5368_s24, 4  ;;  %s6692_s7 = smov 8   ;;  %s746_s28 = int_to_ptr.vmem [resolvable:$true] %s745_s28 }
  0x3a   : > { %s743_s1 = sshll.u32 %s6757_s18, 4  ;;  %s4369_s26 = sadd.s32 4294967294, %s5361_s30   ;;  %s744_s1 = int_to_ptr.hbm [resolvable:$true] %s743_s1 }
  0x3b   : > { %4628 = dma.hbm_to_vmem [thread:$0]  (!%p5554_p6), %s744_s1, 1024, %s746_s28, [#allocation18], %s6691_s0, %s6691_s0, %s6692_s7  }
  0x3c   : > { %s5586_s23 = sadd.s32 1, %s5361_s30   ;;  %s61_s25 = sadd.s32 1, %s5357_s6 }
  0x3d   : > { %6758 = sst [smem:[#allocation34_spill]] %s5586_s23  ;;  %s58_s4 = ssub.s32 %s5361_s30, %s5586_s23 }
  0x3e   : > { %p59_p7 = scmp.eq.s32.totalorder %s58_s4, 0  ;;  %p68_p8 = scmp.ne.s32.totalorder %s5357_s6, %s5353_s2 }
  0x3f   : > { %p69_p9 = scmp.eq.s32.totalorder %s5361_s30, 0  ;;  %p74_p10 = scmp.ne.s32.totalorder %s5353_s2, %s5349_s29 }
  0x40   : > { %s5597_s9 = scalar_select %p59_p7, %s5357_s6, %s61_s25  }
  0x41   : > { %p70_p11 = por %p69_p9, %p68_p8  ;;  %p5601_p12 = por %p6704_p1, %p74_p10 }
  0x42   : > { %6759 = sst [smem:[#allocation35_spill]] %s5597_s9  ;;  %p596_p13 = scmp.eq.s32.totalorder %s5537_s8, 1 }
  0x43   : > { %p602_p0 = scmp.eq.s32.totalorder %s4369_s26, 1  ;;  %p4659_p2 = scmp.lt.s32.totalorder %s5361_s30, 2 }
  0x44   : > { %s5608_s1 = sand.u32 1, %s5357_s6   ;;  %p5610_p4 = por %p596_p13, %p68_p8 }
  0x45   : > { %p5614_p5 = por %p602_p0, %p74_p10  ;;  %s5619_s4 = sshll.u32 %s5608_s1, 3 }
  0x46   : > { %s6761_s24 = scalar_select %p5610_p4, 1, 0 }
  0x47   : > { %s6763_s28 = scalar_select %p5614_p5, 1, 0 }
  0x48   : > { %6762 = sst [smem:[#allocation36_spill]] %s6761_s24  ;;  %s5622_s25 = sshll.u32 %s5361_s30, 3 }
  0x49   : > { %6764 = sst [smem:[#allocation37_spill]] %s6763_s28  ;;  %p5624_p7 = pnand %p4659_p2, %p70_p11 }
  0x4a   : > { %s6705_s0 = sand.u32 1, %s5361_s30   ;;  %s6766_s20 = sld [smem:[#allocation39_spill]] }
  0x4b   : > { %s808_s9 = scalar_lea.vmem [#allocation5], %s5619_s4  ;;  %s5636_s23 = scalar_lea.sflag [#allocation6], %s6705_s0 }
  0x4c   : > { %s816_s6 = sshll.u32 %s808_s9, 4  ;;  %p5033_p9 = pneg %p5624_p7  ;;  %s817_s6 = int_to_ptr.vmem [resolvable:$true] %s816_s6 }
  0x50   : > { %s812_s16 = scalar_lea.hbm %s6766_s20, %s5622_s25 }
  0x51   : > { %s814_s18 = sshll.u32 %s812_s16, 4  ;;  %s5036_s16 = scalar_lea.hbm %s6766_s20, 16  ;;  %s815_s18 = int_to_ptr.hbm [resolvable:$true] %s814_s18 }
  0x52   : > { %s5029_s28 = sshra.s32 %s815_s18, 4  ;;  %s5030_s28 = int_to_ptr.hbm [resolvable:$true] %s5029_s28 }
  0x53   : > { %s5031_s29 = scalar_lea.hbm %s5030_s28, 8  ;;  %p5037_p13 = scmp.lt.s32.totalorder %s5030_s28, %s6766_s20 }
  0x54   : > { %p5032_p8 = scmp.ne.s32.totalorder %s5030_s28, %s5031_s29  ;;  %p5038_p0 = scmp.lt.s32.totalorder %s5036_s16, %s5031_s29 }
  0x56   : > { %p5034_p10 = pnand %p5033_p9, %p5032_p8  ;;  %p5039_p2 = por %p5038_p0, %p5037_p13 }
  0x58   : > { %p5035_p11 = pneg %p5034_p10 }
  0x5a   : > { %p5040_p1 = pnand %p5039_p2, %p5035_p11 }
  0x5c   : > { %5043 = shalt.err (!%p5040_p1)
}
  0x5d   : > { %4638 = dma.hbm_to_vmem [thread:$0]  (!%p5624_p7), %s815_s18, 128, %s817_s6, %s5636_s23  }
  0x5e   : > { %s6767_s12 = sld [smem:[#allocation50_spill]]  ;;  %s5371_s22 = smov [#allocation13]  }
  0x5f   : > { %s694_s24 = sshll.u32 %s5371_s22, 4  ;;  %s6768_s17 = sld [smem:[#allocation55_spill]]  ;;  %s695_s24 = int_to_ptr.vmem [resolvable:$true] %s694_s24 }
  0x60   : > { %s6769_s16 = smov 1   ;;  %s6770_s9 = smov 16  }
  0x61   : > { %s6771_s19 = sld [smem:[#allocation57_spill]]  ;;  %s5372_s0 = smov [#allocation16]  }
  0x62   : > { %s6772_s22 = smov 8   ;;  %s6773_s28 = smov 128  }
  0x63   : > { %s5373_s29 = smov [#allocation19]   ;;  %s6774_s18 = sld [smem:[#allocation38_spill]] }
  0x64   : > { %s692_s14 = sshll.u32 %s6767_s12, 4  ;;  %s731_s12 = sshll.u32 %s5372_s0, 4  ;;  %s693_s14 = int_to_ptr.hbm [resolvable:$true] %s692_s14  ;;  %s732_s12 = int_to_ptr.vmem [resolvable:$true] %s731_s12 }
  0x65   : > { %s729_s7 = sshll.u32 %s6768_s17, 4  ;;  %s759_s17 = sshll.u32 %s5373_s29, 4  ;;  %s730_s7 = int_to_ptr.hbm [resolvable:$true] %s729_s7  ;;  %s760_s17 = int_to_ptr.vmem [resolvable:$true] %s759_s17 }
  0x66   : > { %4619 = dma.hbm_to_vmem [thread:$0]  (!%p5554_p6), %s693_s14, 32, %s695_s24, [#allocation12], %s6770_s9, %s6770_s9, %s6769_s16  }
  0x67   : > { %s757_s6 = sshll.u32 %s6771_s19, 4  ;;  %s789_s0 = scalar_lea.vmem [#allocation2], %s5619_s4  ;;  %s758_s6 = int_to_ptr.hbm [resolvable:$true] %s757_s6 }
  0x68   : > { %4625 = dma.hbm_to_vmem [thread:$0]  (!%p5554_p6), %s730_s7, 1024, %s732_s12, [#allocation15], %s6773_s28, %s6773_s28, %s6772_s22  }
  0x69   : > { %4631 = dma.hbm_to_vmem [thread:$0]  (!%p5554_p6), %s758_s6, 32, %s760_s17, [#allocation18], %s6770_s9, %s6770_s9, %s6769_s16  }
  0x6a   : > { %s793_s21 = scalar_lea.hbm %s6774_s18, %s5622_s25  ;;  %s797_s19 = sshll.u32 %s789_s0, 4  ;;  %s798_s19 = int_to_ptr.vmem [resolvable:$true] %s797_s19 }
  0x6b   : > { %s795_s20 = sshll.u32 %s793_s21, 4  ;;  %s786_s15 = scalar_lea.sflag [#allocation3], %s5608_s1  ;;  %s796_s20 = int_to_ptr.hbm [resolvable:$true] %s795_s20 }
  0x6c   : > { %s5149_s12 = sshra.s32 %s796_s20, 4  ;;  %s5156_s16 = scalar_lea.hbm %s6774_s18, 16  ;;  %s5150_s12 = int_to_ptr.hbm [resolvable:$true] %s5149_s12 }
  0x6d   : > { %s5151_s7 = scalar_lea.hbm %s5150_s12, 8  ;;  %p5157_p6 = scmp.lt.s32.totalorder %s5150_s12, %s6774_s18 }
  0x6e   : > { %p5152_p1 = scmp.ne.s32.totalorder %s5150_s12, %s5151_s7  ;;  %p5158_p11 = scmp.lt.s32.totalorder %s5156_s16, %s5151_s7 }
  0x70   : > { %p5154_p8 = pnand %p5152_p1, %p5033_p9  ;;  %p5159_p13 = por %p5158_p11, %p5157_p6 }
  0x72   : > { %p5155_p10 = pneg %p5154_p8 }
  0x74   : > { %p5160_p0 = pnand %p5159_p13, %p5155_p10 }
  0x76   : > { %5163 = shalt.err (!%p5160_p0)
}
  0x77   : > { %4635 = dma.hbm_to_vmem [thread:$0]  (!%p5624_p7), %s796_s20, 128, %s798_s19, %s786_s15  }
  0x78   : > { %s6775_s29 = sld [smem:[#allocation40_spill]]  ;;  %s826_s21 = scalar_lea.vmem [#allocation7], %s5608_s1 }
  0x79   : > { %s833_s0 = sshll.u32 %s826_s21, 4  ;;  %s834_s0 = int_to_ptr.vmem [resolvable:$true] %s833_s0 }
  0x7e   : > { %s6776_s14 = smov %s6775_s29  ;;  %s829_s24 = scalar_lea.hbm %s6775_s29, %s5361_s30 }
  0x7f   : > { %s831_s3 = sshll.u32 %s829_s24, 4  ;;  %s5186_s15 = scalar_lea.hbm %s6776_s14, 2  ;;  %s832_s3 = int_to_ptr.hbm [resolvable:$true] %s831_s3 }
  0x80   : > { %s5179_s12 = sshra.s32 %s832_s3, 4  ;;  %s5180_s12 = int_to_ptr.hbm [resolvable:$true] %s5179_s12 }
  0x81   : > { %s5181_s7 = scalar_lea.hbm %s5180_s12, 1  ;;  %p5187_p10 = scmp.lt.s32.totalorder %s5180_s12, %s6776_s14 }
  0x82   : > { %p5182_p2 = scmp.ne.s32.totalorder %s5180_s12, %s5181_s7  ;;  %p5188_p6 = scmp.lt.s32.totalorder %s5186_s15, %s5181_s7 }
  0x84   : > { %p5184_p1 = pnand %p5182_p2, %p5033_p9  ;;  %p5189_p11 = por %p5188_p6, %p5187_p10 }
  0x86   : > { %p5185_p8 = pneg %p5184_p1 }
  0x88   : > { %p5190_p13 = pnand %p5189_p11, %p5185_p8 }
  0x8a   : > { %5193 = shalt.err (!%p5190_p13)
}
  0x8b   : > { %4641 = dma.hbm_to_vmem [thread:$0]  (!%p5624_p7), %s832_s3, 16, %s834_s0, %s5636_s23  }
  0x8c   : > { %s6777_s6 = sld [smem:[#allocation41_spill]]  ;;  %s844_s29 = scalar_lea.vmem [#allocation8], %s5619_s4 }
  0x8d   : > { %s852_s24 = sshll.u32 %s844_s29, 4  ;;  %s6779_s12 = sand.u32 1, %s5361_s30   ;;  %s853_s24 = int_to_ptr.vmem [resolvable:$true] %s852_s24 }
  0x8e   : > { %s841_s7 = scalar_lea.sflag [#allocation9], %s6779_s12 }
  0x92   : > { %s6778_s22 = smov %s6777_s6  ;;  %s848_s28 = scalar_lea.hbm %s6777_s6, %s5622_s25 }
  0x93   : > { %s850_s21 = sshll.u32 %s848_s28, 4  ;;  %s5216_s3 = scalar_lea.hbm %s6778_s22, 16  ;;  %s851_s21 = int_to_ptr.hbm [resolvable:$true] %s850_s21 }
  0x94   : > { %s5209_s17 = sshra.s32 %s851_s21, 4  ;;  %s5210_s17 = int_to_ptr.hbm [resolvable:$true] %s5209_s17 }
  0x95   : > { %s5211_s16 = scalar_lea.hbm %s5210_s17, 8  ;;  %p5217_p8 = scmp.lt.s32.totalorder %s5210_s17, %s6778_s22 }
  0x96   : > { %p5212_p0 = scmp.ne.s32.totalorder %s5210_s17, %s5211_s16  ;;  %p5218_p10 = scmp.lt.s32.totalorder %s5216_s3, %s5211_s16 }
  0x98   : > { %p5214_p2 = pnand %p5212_p0, %p5033_p9  ;;  %p5219_p6 = por %p5218_p10, %p5217_p8 }
  0x9a   : > { %p5215_p1 = pneg %p5214_p2 }
  0x9c   : > { %p5220_p11 = pnand %p5219_p6, %p5215_p1 }
  0x9e   : > { %5223 = shalt.err (!%p5220_p11)
}
  0x9f   : > { %4644 = dma.hbm_to_vmem [thread:$0]  (!%p5624_p7), %s851_s21, 128, %s853_s24, %s841_s7  }
  0xa0   : > { %861 = sbr.rel (%p5542_p3) target bundleno = 9129 (0x23a9), region = 116  ;;  %s5731_s15 = sand.u32 (!%p5542_p3), 1, %s5353_s2  }
  0xa1   : > { %s5734_s19 = sshll.u32 (!%p5542_p3), %s5731_s15, 3  ;;  %s864_s20 = scalar_lea.sflag (!%p5542_p3), [#allocation3], %s5731_s15 }
  0xa2   : > { %s867_s1 = scalar_lea.vmem (!%p5542_p3), [#allocation2], %s5734_s19 }
  0xa5   : > { %5312 = dma.done.wait (%p5601_p12), %s864_s20, 128  }
  0xa6   : > { %5314 = vsyncadd (%p5601_p12), %s864_s20, 4294967168  ;;  %s873_s27 = sand.u32 1, %s5537_s8   ;;  %s877_s9 = scalar_lea.vmem [#allocation5], %s5734_s19 }
  0xa7   : > { %s874_s26 = scalar_lea.sflag [#allocation6], %s873_s27 }
  0xa8   : > { %5316 = dma.done.wait (%p5601_p12), %s874_s26, 144  }
  0xa9   : > { %5318 = vsyncadd (%p5601_p12), %s874_s26, 4294967152  ;;  %s886_s6 = scalar_lea.vmem [#allocation7], %s5731_s15  ;;  %s893_s28 = scalar_lea.sflag [#allocation9], %s873_s27 }
  0xaa   : > { %5320 = dma.done.wait (%p5601_p12), %s893_s28, 128  }
  0xab   : > { %5322 = vsyncadd (%p5601_p12), %s893_s28, 4294967168  ;;  %p6780_p3 = scmp.eq.s32.totalorder %s5537_s8, 0 }
  0xad   : > { %5324 = dma.done.wait (%p6780_p3), [#allocation9], 32   ;;  %p6781_p7 = pmov %p6780_p3 }
  0xae   : > { %p6782_p9 = pmov %p6780_p3 }
  0xaf   : > { %5326 = vsyncadd (%p6781_p7), [#allocation9], 4294967264 }
  0xb0   : > { %5328 = dma.done.wait (%p6782_p9), [#allocation12], 64   ;;  %p6783_p13 = pmov %p6780_p3 }
  0xb1   : > { %p6784_p0 = pmov %p6780_p3 }
  0xb2   : > { %5330 = vsyncadd (%p6783_p13), [#allocation12], 4294967232 }
  0xb3   : > { %5332 = dma.done.wait (%p6784_p0), [#allocation15], 1056   ;;  %p6785_p2 = pmov %p6784_p0 }
  0xb4   : > { %p6786_p12 = pmov %p6784_p0 }
  0xb5   : > { %5334 = vsyncadd (%p6785_p2), [#allocation15], 4294966240 }
  0xb6   : > { %5336 = dma.done.wait (%p6786_p12), [#allocation18], 1056   ;;  %p6787_p1 = pmov %p6784_p0 }
  0xb7   : > { %s6788_s21 = sld [smem:[#allocation42_spill]]  ;;  %v5782_v4 = vld [vmem:[%s867_s1] sm:$0xff]  ;;  %vm1034_vm0 = vcmask 261120   ;;  %v4780_v5 = vld [vmem:[#allocation10] ss:$0 sm:$0xff]  ;;  %s6712_s3 = smov 96  }
  0xb8   : > { %5338 = vsyncadd (%p6787_p1), [#allocation18], 4294966240  ;;  %s6714_s25 = smov 104   ;;  %s6716_s4 = smov 120   ;;  %vm1067_vm1 = vcmask 64512   ;;  %v5378_v13 = vmov 0  }
  0xb9   : > { %s6718_s20 = smov 112   ;;  %v1019_v12 = vld [vmem:[%s886_s6] sm:$0x1]  ;;  %s6710_s1 = smov 64   ;;  %vm1506_vm8 = vcmask 523264  }
  0xba   : > { %vm1174_vm2 = vcmp.gt.f32.partialorder %v1019_v12, 0.0  ;;  %s6791_s6 = sld [smem:[#allocation44_spill]]  ;;  %s6798_s16 = scalar_lea.vmem [#allocation8], %s5734_s19 }
  0xbb   : > { %v1175_v14 = vsel %vm1174_vm2, 1, %v5378_v13  ;;  %s6793_s10 = sld [smem:[#allocation48_spill]]  ;;  %s4396_s23 = sshll.u32 %s5731_s15, 6 }
  0xbc   : > { %v1176_v16 = vperm.slane %v1175_v14, 0  ;;  %s6796_s27 = sld [smem:[#allocation47_spill]]  ;;  %s6806_s7 = smov 64  }
  0xbd   : > { %v1025_v0 = vld [vmem:[%s6788_s21 + $0x18] sm:$0xff]  ;;  %v1024_v1 = vld [vmem:[%s6788_s21 + $0x10] sm:$0xff]  ;;  %v1023_v2 = vld [vmem:[%s6788_s21 + $0x8] sm:$0xff]  ;;  %s6797_s11 = sld [smem:[#allocation49_spill]] }
  0xbe   : > { %1050 = vmatpush.msra.mxu0 %v1025_v0  ;;  %v1022_v3 = vld [vmem:[%s6788_s21] sm:$0xff]  ;;  %vm5806_vm3 = vcmp.eq.s32.totalorder %v1176_v16, 1  ;;  %s6799_s13 = sld [smem:[#allocation51_spill]] }
  0xbf   : > { %s6802_s0 = sld [smem:[#allocation52_spill]] }
  0xc0   : > { %1051 = vmatpush.msra.mxu0 %v1024_v1  ;;  %s6792_s28 = smov %s6791_s6  ;;  %v1027_v0 = vld [vmem:[%s6791_s6] sm:$0xff]  ;;  %s6794_s6 = sld [smem:[#allocation45_spill]] }
  0xc1   : > { %v1028_v16 = vld [vmem:[%s6792_s28 + $0x8] sm:$0xff]  ;;  %s6804_s12 = sld [smem:[#allocation58_spill]] }
  0xc2   : > { %1052 = vmatpush.msra.mxu0 %v1023_v2 }
  0xc4   : > { %1053 = vmatpush.msra.mxu0 %v1022_v3 }
  0xc5   : > { %4398 = vmatmul.msk.f32.vlgmr.msra.gmra.mxu0 %vm1034_vm0, %v5782_v4 }
  0xc6   : > { %s6795_s5 = smov %s6794_s6 }
 0x142   : > { %v1055_v6 = vpop.f32.mrf.mxu0 }
 0x143   : > { %v1056_v7 = vadd.f32 %v4780_v5, %v1055_v6 }
 0x145   : > { %1065 = vrot.lane.b32.xlu2 %v1056_v7, %s6712_s3  ;;  %1063 = vrot.lane.b32.xlu1 %v1056_v7, %s6714_s25 }
 0x146   : > { %1059 = vrot.lane.b32.xlu0 %v1056_v7, %s6716_s4 }
 0x14e   : > { %1061 = vrot.lane.b32.xlu0 %v1056_v7, %s6718_s20 }
 0x19f   : > { %v1066_v8 = vpop.permute.xlu2 %1065 }
 0x1a0   : > { %4399 = vmatpush.xpose.msk.msra.mxu1 %vm1067_vm1, %v1066_v8 }
 0x1a3   : > { %4400 = vmatmul.msk.f32.vlgmr.msra.gmra.mxu1 %vm1067_vm1, %v1056_v7 }
 0x1b7   : > { %v5792_v9 = vpop.permute.xlu1 %1063 }
 0x1b8   : > { %v1060_v10 = vpop.permute.xlu0 %1059  ;;  %1144 = vrot.lane.b32.xlu0 %v5792_v9, %s6712_s3 }
 0x1b9   : > { %1092 = vrot.lane.b32.xlu1 %v1060_v10, %s6712_s3  ;;  %v4720_v39 = vpack.i.bf16 %v1060_v10, %v1056_v7 }
 0x1c0   : > { %v5797_v11 = vpop.permute.xlu0 %1061 }
 0x1c1   : > { %1118 = vrot.lane.b32.xlu2 %v5797_v11, %s6712_s3  ;;  %v4725_v62 = vpack.i.bf16 %v5792_v9, %v5797_v11 }
 0x21b   : > { %v1119_v15 = vpop.permute.xlu2 %1118 }
 0x21c   : > { %4403 = vmatpush.xpose.msk.msra.mxu3 %vm1067_vm1, %v1119_v15  ;;  %v1029_v15 = vld [vmem:[%s6792_s28 + $0x10] sm:$0xff] }
 0x21f   : > { %4404 = vmatmul.msk.f32.vlgmr.msra.gmra.mxu3 %vm1067_vm1, %v5797_v11 }
 0x220   : > { %v1089_v17 = vpop.f32.mrf.mxu1 }
 0x221   : > { %v1170_v19 = vmul.f32 0.35355338, %v1089_v17  ;;  %v1030_v17 = vld [vmem:[%s6792_s28 + $0x18] sm:$0xff] }
 0x223   : > { %v1178_v20 = vsel %vm5806_vm3, %v1170_v19, -1e+09 }
 0x224   : > { %v1182_v21 = vsel %vm1067_vm1, %v1178_v20, -inf }
 0x225   : > { %1183 = vmax.xlane.f32.xlu1 %v1182_v21 }
 0x22a   : > { %v1145_v22 = vpop.permute.xlu0 %1144 }
 0x22b   : > { %v1093_v23 = vpop.permute.xlu1 %1092  ;;  %4405 = vmatpush.xpose.msk.msrb.mxu1 %vm1067_vm1, %v1145_v22 }
 0x22c   : > { %4401 = vmatpush.xpose.msk.msra.mxu2 %vm1067_vm1, %v1093_v23 }
 0x22e   : > { %4406 = vmatmul.msk.f32.vlgmr.msrb.gmra.mxu1 %vm1067_vm1, %v5792_v9 }
 0x22f   : > { %4402 = vmatmul.msk.f32.vlgmr.msra.gmra.mxu2 %vm1067_vm1, %v1060_v10 }
 0x298   : > { %v1184_v24 = vpop.xlane.xlu1 %1183 }
 0x299   : > { %v1194_v25 = vsub.f32 %v1178_v20, %v1184_v24 }
 0x29b   : > { %v1198_v26 = vmul.f32 1.442695, %v1194_v25 }
 0x29d   : > { %4791 = vpow2.f32 %v1198_v26 }
 0x2a2   : > { %v1141_v27 = vpop.f32.mrf.mxu3 }
 0x2a3   : > { %v4792_v28 = vpop.eup %4791  ;;  %v1172_v29 = vmul.f32 0.35355338, %v1141_v27  ;;  %v5860_v27 = vld [vmem:[%s6793_s10] sm:$0x3f] }
 0x2a4   : > { %v1206_v30 = vsel %vm1067_vm1, %v4792_v28, 0.0 }
 0x2a5   : > { %1207 = vadd.xlane.f32.xlu1 %v1206_v30  ;;  %v1180_v31 = vsel %vm5806_vm3, %v1172_v29, -1e+09 }
 0x2a6   : > { %v1188_v32 = vsel %vm1067_vm1, %v1180_v31, -inf }
 0x2a7   : > { %1189 = vmax.xlane.f32.xlu0 %v1188_v32  ;;  %v1429_v32 = vperm.slane %v5860_v27, 0 }
 0x2ab   : > { %v1167_v35 = vpop.f32.mrf.mxu1 }
 0x2ac   : > { %v1173_v38 = vmul.f32 0.35355338, %v1167_v35 }
 0x2ae   : > { %v1181_v40 = vsel %vm5806_vm3, %v1173_v38, -1e+09  ;;  %v5380_v38 = vmov 32.0  }
 0x2af   : > { %v1191_v41 = vsel %vm1067_vm1, %v1181_v40, -inf }
 0x2b2   : > { %v1115_v33 = vpop.f32.mrf.mxu2 }
 0x2b3   : > { %v1171_v34 = vmul.f32 0.35355338, %v1115_v33 }
 0x2b5   : > { %v1179_v36 = vsel %vm5806_vm3, %v1171_v34, -1e+09 }
 0x2b6   : > { %v1185_v37 = vsel %vm1067_vm1, %v1179_v36, -inf }
 0x2b7   : > { %1186 = vmax.xlane.f32.xlu2 %v1185_v37 }
 0x2bb   : > { %4721 = vrot.lane.b32.xlu0 %v4720_v39, %s6710_s1 }
 0x2bf   : > { %1192 = vmax.xlane.f32.xlu2 %v1191_v41 }
 0x318   : > { %v1208_v45 = vpop.xlane.xlu1 %1207 }
 0x31a   : > { %v1190_v42 = vpop.xlane.xlu0 %1189 }
 0x31b   : > { %v1196_v43 = vsub.f32 %v1180_v31, %v1190_v42 }
 0x31d   : > { %v1202_v44 = vmul.f32 1.442695, %v1196_v43 }
 0x31f   : > { %4793 = vpow2.f32 %v1202_v44 }
 0x320   : > { %4795 = vrcp.f32 %v1208_v45 }
 0x325   : > { %v4794_v46 = vpop.eup %4793 }
 0x326   : > { %v1212_v47 = vsel %vm1067_vm1, %v4794_v46, 0.0  ;;  %v4796_v50 = vpop.eup %4795 }
 0x327   : > { %1213 = vadd.xlane.f32.xlu1 %v1212_v47  ;;  %v1222_v55 = vmul.f32 %v4796_v50, %v4792_v28  ;;  %v1467_v50 = vld [vmem:[%s6795_s5 + $0x10] sm:$0xff] }
 0x32a   : > { %v1187_v48 = vpop.xlane.xlu2 %1186 }
 0x32b   : > { %v1195_v49 = vsub.f32 %v1179_v36, %v1187_v48 }
 0x32d   : > { %v1200_v51 = vmul.f32 1.442695, %v1195_v49  ;;  %v4722_v52 = vpop.permute.xlu0 %4721  ;;  %v1468_v49 = vld [vmem:[%s6794_s6 + $0x18] sm:$0xff]  ;;  %s6800_s6 = sld [smem:[#allocation53_spill]] }
 0x32e   : > { %v4723_v53 = vunpack.i.l.bf16 %v4722_v52  ;;  %v4724_v54 = vunpack.i.h.bf16 %v4722_v52  ;;  %v1465_v52 = vld [vmem:[%s6795_s5] sm:$0xff] }
 0x32f   : > { %4797 = vpow2.f32 %v1200_v51  ;;  %v1466_v51 = vld [vmem:[%s6795_s5 + $0x8] sm:$0xff] }
 0x330   : > { %1247 = vmatpush.msrb.mxu2 %v4723_v53  ;;  %1273 = vmatpush.msrb.mxu3 %v4724_v54  ;;  %v1504_v53 = vld [vmem:[%s6796_s27 + $0x38] sm:$0xff]  ;;  %v1503_v54 = vld [vmem:[%s6796_s27 + $0x30] sm:$0xff] }
 0x331   : > { %4407 = vmatmul.msk.f32.vlgmr.msrb.gmra.mxu2 %vm1067_vm1, %v1222_v55  ;;  %v1502_v55 = vld [vmem:[%s6796_s27 + $0x28] sm:$0xff] }
 0x332   : > { %v1193_v56 = vpop.xlane.xlu2 %1192  ;;  %1348 = vmatpush.msra.mxu2 %v1027_v0  ;;  %1371 = vmatpush.msra.mxu3 %v1028_v16 }
 0x333   : > { %v1197_v57 = vsub.f32 %v1181_v40, %v1193_v56  ;;  %s6801_s24 = smov %s6800_s6 }
 0x334   : > { %1488 = vmatpush.msrb.mxu2 %v1468_v49 }
 0x335   : > { %v4798_v58 = vpop.eup %4797  ;;  %v1204_v59 = vmul.f32 1.442695, %v1197_v57 }
 0x336   : > { %v1209_v60 = vsel %vm1067_vm1, %v4798_v58, 0.0  ;;  %1489 = vmatpush.msrb.mxu2 %v1467_v50 }
 0x337   : > { %4799 = vpow2.f32 %v1204_v59  ;;  %1210 = vadd.xlane.f32.xlu2 %v1209_v60  ;;  %v1500_v60 = vld [vmem:[%s6796_s27 + $0x18] sm:$0xff] }
 0x338   : > { %1490 = vmatpush.msrb.mxu2 %v1466_v51 }
 0x33a   : > { %1491 = vmatpush.msrb.mxu2 %v1465_v52 }
 0x33d   : > { %v4800_v61 = vpop.eup %4799 }
 0x33e   : > { %v1215_v63 = vsel %vm1067_vm1, %v4800_v61, 0.0 }
 0x33f   : > { %1216 = vadd.xlane.f32.xlu2 %v1215_v63 }
 0x340   : > { %4726 = vrot.lane.b32.xlu1 %v4725_v62, %s6710_s1 }
 0x39a   : > { %v1214_v1 = vpop.xlane.xlu1 %1213 }
 0x39b   : > { %4801 = vrcp.f32 %v1214_v1 }
 0x3a1   : > { %v4802_v3 = vpop.eup %4801 }
 0x3a2   : > { %v1224_v12 = vmul.f32 %v4802_v3, %v4794_v46  ;;  %v1461_v3 = vperm.slane %v5860_v27, 2 }
 0x3aa   : > { %v1211_v2 = vpop.xlane.xlu2 %1210 }
 0x3ab   : > { %4803 = vrcp.f32 %v1211_v2 }
 0x3b1   : > { %v4804_v5 = vpop.eup %4803 }
 0x3b2   : > { %v4727_v6 = vpop.permute.xlu1 %4726  ;;  %v1217_v7 = vpop.xlane.xlu2 %1216  ;;  %v1223_v8 = vmul.f32 %v4804_v5, %v4798_v58  ;;  %v1501_v58 = vld [vmem:[%s6796_s27 + $0x20] sm:$0xff] }
 0x3b3   : > { %v4729_v9 = vunpack.i.h.bf16 %v4727_v6  ;;  %4805 = vrcp.f32 %v1217_v7  ;;  %v4728_v10 = vunpack.i.l.bf16 %v4727_v6  ;;  %v1463_v7 = vperm.slane %v5860_v27, 3 }
 0x3b4   : > { %v1249_v11 = vpop.f32.mrf.mxu2  ;;  %4408 = vmatmul.msk.f32.vlgmr.msrb.gmra.mxu3 %vm1067_vm1, %v1223_v8  ;;  %4807 = vrcp.f32 %v5380_v38 }
 0x3b5   : > { %1299 = vmatpush.msrb.mxu0 %v4728_v10  ;;  %1325 = vmatpush.msra.mxu1 %v4729_v9  ;;  %v1499_v10 = vld [vmem:[%s6796_s27 + $0x10] sm:$0xff] }
 0x3b6   : > { %4411 = vmatmul.msk.f32.vlgmr.msra.gmra.mxu2 %vm1067_vm1, %v1249_v11  ;;  %4409 = vmatmul.msk.f32.vlgmr.msrb.gmra.mxu0 %vm1067_vm1, %v1224_v12  ;;  %v1498_v11 = vld [vmem:[%s6796_s27 + $0x8] sm:$0xff]  ;;  %v1497_v12 = vld [vmem:[%s6796_s27] sm:$0xff] }
 0x3b7   : > { %1394 = vmatpush.msra.mxu0 %v1029_v15  ;;  %1417 = vmatpush.msrb.mxu1 %v1030_v17  ;;  %v1505_v17 = vperm.slane %v5860_v27, 1 }
 0x3b8   : > { %1518 = vmatpush.msrb.mxu3 %v1504_v53 }
 0x3b9   : > { %v4806_v13 = vpop.eup %4805 }
 0x3ba   : > { %v1225_v14 = vmul.f32 %v4806_v13, %v4800_v61  ;;  %v4808_v39 = vpop.eup %4807  ;;  %1519 = vmatpush.msrb.mxu3 %v1503_v54  ;;  %v4781_v13 = vld [vmem:[#allocation11] ss:$0 sm:$0xff] }
 0x3bb   : > { %v1436_v40 = vmul.f32 32.0, %v4808_v39  ;;  %vm1440_vm4 = vweird.f32 %v4808_v39 }
 0x3bc   : > { %4410 = vmatmul.msk.f32.vlgmr.msra.gmra.mxu1 %vm1067_vm1, %v1225_v14  ;;  %1520 = vmatpush.msrb.mxu3 %v1502_v55 }
 0x3bd   : > { %v1437_v41 = vsub.f32 1.0, %v1436_v40 }
 0x3be   : > { %1521 = vmatpush.msrb.mxu3 %v1501_v58 }
 0x3bf   : > { %v1438_v42 = vmul.f32 %v4808_v39, %v1437_v41 }
 0x3c0   : > { %1522 = vmatpush.msrb.mxu3 %v1500_v60 }
 0x3c1   : > { %v1439_v43 = vadd.f32 %v4808_v39, %v1438_v42  ;;  %v1553_v42 = vperm.slane %v5860_v27, 4 }
 0x3c2   : > { %1523 = vmatpush.msrb.mxu3 %v1499_v10 }
 0x3c3   : > { %v5867_v44 = vsel %vm1440_vm4, %v4808_v39, %v1439_v43 }
 0x3c4   : > { %1524 = vmatpush.msrb.mxu3 %v1498_v11 }
 0x3c6   : > { %1525 = vmatpush.msrb.mxu3 %v1497_v12 }
 0x433   : > { %v1301_v19 = vpop.f32.mrf.mxu0 }
 0x434   : > { %4413 = vmatmul.msk.f32.vlgmr.msra.gmra.mxu0 %vm1067_vm1, %v1301_v19 }
 0x437   : > { %v1275_v20 = vpop.f32.mrf.mxu3 }
 0x438   : > { %4412 = vmatmul.msk.f32.vlgmr.msra.gmra.mxu3 %vm1067_vm1, %v1275_v20 }
 0x439   : > { %v1327_v21 = vpop.f32.mrf.mxu1  ;;  %v1350_v22 = vpop.f32.mrf.mxu2 }
 0x43a   : > { %4414 = vmatmul.msk.f32.vlgmr.msrb.gmra.mxu1 %vm1067_vm1, %v1327_v21  ;;  %v1422_v25 = vsel %vm1034_vm0, %v1350_v22, 0.0 }
 0x4b1   : > { %v1396_v23 = vpop.f32.mrf.mxu0 }
 0x4b2   : > { %v1425_v30 = vsel %vm1034_vm0, %v1396_v23, 0.0 }
 0x4b7   : > { %v1419_v28 = vpop.f32.mrf.mxu1 }
 0x4b8   : > { %v1427_v33 = vsel %vm1034_vm0, %v1419_v28, 0.0 }
 0x4bb   : > { %v1373_v24 = vpop.f32.mrf.mxu3 }
 0x4bc   : > { %v1423_v26 = vsel %vm1034_vm0, %v1373_v24, 0.0 }
 0x4bd   : > { %v1424_v29 = vadd.f32 %v1423_v26, %v1422_v25 }
 0x4bf   : > { %v1426_v31 = vadd.f32 %v1425_v30, %v1424_v29  ;;  %v4421_v29 = vld [vmem:[%s6788_s21 + $0x38] sm:$0xff]  ;;  %v4420_v30 = vld [vmem:[%s6788_s21 + $0x30] sm:$0xff] }
 0x4c0   : > { %1589 = vmatpush.msrb.mxu0 %v4421_v29 }
 0x4c1   : > { %v1428_v34 = vadd.f32 %v1427_v33, %v1426_v31  ;;  %v4419_v31 = vld [vmem:[%s6788_s21 + $0x28] sm:$0xff] }
 0x4c2   : > { %1590 = vmatpush.msrb.mxu0 %v4420_v30 }
 0x4c3   : > { %v1430_v35 = vadd.f32 %v1429_v32, %v1428_v34  ;;  %v4418_v32 = vld [vmem:[%s6788_s21 + $0x20] sm:$0xff] }
 0x4c4   : > { %1591 = vmatpush.msrb.mxu0 %v4419_v31 }
 0x4c5   : > { %v1431_v36 = vadd.f32 %v1430_v35, %v5782_v4 }
 0x4c6   : > { %1592 = vmatpush.msrb.mxu0 %v4418_v32 }
 0x4c7   : > { %v1432_v37 = vsel %vm1034_vm0, %v1431_v36, 0.0 }
 0x4c8   : > { %1433 = vadd.xlane.f32.xlu2 %v1432_v37 }
 0x53b   : > { %v1434_v45 = vpop.xlane.xlu2 %1433 }
 0x53c   : > { %v1442_v46 = vmul.f32 %v5867_v44, %v1434_v45 }
 0x53e   : > { %v1443_v47 = vsub.f32 %v1431_v36, %v1442_v46  ;;  %v1555_v46 = vperm.slane %v5860_v27, 5 }
 0x540   : > { %v1444_v48 = vmul.f32 %v1443_v47, %v1443_v47 }
 0x542   : > { %v1445_v4 = vsel %vm1034_vm0, %v1444_v48, 0.0 }
 0x543   : > { %1446 = vadd.xlane.f32.xlu0 %v1445_v4  ;;  %v4782_v4 = vld [vmem:[#allocation10 + $0x1] ss:$0 sm:$0xff] }
 0x5b6   : > { %v1447_v56 = vpop.xlane.xlu0 %1446 }
 0x5b7   : > { %v1448_v57 = vmul.f32 %v1447_v56, %v5867_v44 }
 0x5b9   : > { %v1449_v59 = vadd.f32 1e-05, %v1448_v57 }
 0x5bb   : > { %4809 = vrsqrt.f32 %v1449_v59  ;;  %vm1456_vm6 = vweird.f32 %v1449_v59 }
 0x5c1   : > { %v4810_v61 = vpop.eup %4809 }
 0x5c2   : > { %v1451_v62 = vmul.f32 %v4810_v61, %v1449_v59  ;;  %vm1457_vm5 = vweird.f32 %v4810_v61 }
 0x5c3   : > { %vm1458_vm7 = vmor %vm1456_vm6, %vm1457_vm5 }
 0x5c4   : > { %v1452_v63 = vmul.f32 %v4810_v61, %v1451_v62 }
 0x5c6   : > { %v1453_v0 = vmul.f32 0.5, %v1452_v63 }
 0x5c8   : > { %v1454_v1 = vsub.f32 1.5, %v1453_v0 }
 0x5ca   : > { %v1455_v2 = vmul.f32 %v4810_v61, %v1454_v1 }
 0x5cc   : > { %v1459_v5 = vsel %vm1458_vm7, %v4810_v61, %v1455_v2 }
 0x5cd   : > { %v1460_v6 = vmul.f32 %v1459_v5, %v1443_v47 }
 0x5cf   : > { %v1462_v8 = vmul.f32 %v1461_v3, %v1460_v6 }
 0x5d1   : > { %v1464_v9 = vadd.f32 %v1463_v7, %v1462_v8 }
 0x5d3   : > { %4415 = vmatmul.msk.f32.vlgmr.msrb.gmra.mxu2 %vm1034_vm0, %v1464_v9 }
 0x656   : > { %v1493_v14 = vpop.f32.mrf.mxu2 }
 0x657   : > { %v1494_v15 = vadd.f32 %v4781_v13, %v1493_v14 }
 0x659   : > { %v1496_v16 = vmax.f32 %v1494_v15, 0.0 }
 0x65b   : > { %4416 = vmatmul.msk.f32.vlgmr.msrb.gmra.mxu3 %vm1506_vm8, %v1496_v16 }
 0x6de   : > { %v1527_v19 = vpop.f32.mrf.mxu3 }
 0x6df   : > { %v1528_v20 = vadd.f32 %v1527_v19, %v1505_v17 }
 0x6e1   : > { %v1530_v21 = vadd.f32 %v1528_v20, %v1464_v9 }
 0x6e3   : > { %v1531_v22 = vsel %vm1034_vm0, %v1530_v21, 0.0 }
 0x6e4   : > { %1532 = vadd.xlane.f32.xlu2 %v1531_v22 }
 0x757   : > { %v1533_v23 = vpop.xlane.xlu2 %1532 }
 0x758   : > { %v1534_v24 = vmul.f32 %v1533_v23, %v5867_v44 }
 0x75a   : > { %v1535_v25 = vsub.f32 %v1530_v21, %v1534_v24 }
 0x75c   : > { %v1536_v26 = vmul.f32 %v1535_v25, %v1535_v25 }
 0x75e   : > { %v1537_v28 = vsel %vm1034_vm0, %v1536_v26, 0.0 }
 0x75f   : > { %1538 = vadd.xlane.f32.xlu2 %v1537_v28 }
 0x7d2   : > { %v1539_v33 = vpop.xlane.xlu2 %1538 }
 0x7d3   : > { %v1540_v34 = vmul.f32 %v1539_v33, %v5867_v44 }
 0x7d5   : > { %v1541_v35 = vadd.f32 1e-05, %v1540_v34 }
 0x7d7   : > { %4811 = vrsqrt.f32 %v1541_v35  ;;  %vm1548_vm10 = vweird.f32 %v1541_v35 }
 0x7dd   : > { %v4812_v36 = vpop.eup %4811 }
 0x7de   : > { %v1543_v37 = vmul.f32 %v4812_v36, %v1541_v35  ;;  %vm1549_vm9 = vweird.f32 %v4812_v36 }
 0x7df   : > { %vm1550_vm11 = vmor %vm1548_vm10, %vm1549_vm9 }
 0x7e0   : > { %v1544_v38 = vmul.f32 %v4812_v36, %v1543_v37 }
 0x7e2   : > { %v1545_v39 = vmul.f32 0.5, %v1544_v38 }
 0x7e4   : > { %v1546_v40 = vsub.f32 1.5, %v1545_v39 }
 0x7e6   : > { %v1547_v41 = vmul.f32 %v4812_v36, %v1546_v40 }
 0x7e8   : > { %v1551_v43 = vsel %vm1550_vm11, %v4812_v36, %v1547_v41 }
 0x7e9   : > { %v1552_v45 = vmul.f32 %v1551_v43, %v1535_v25 }
 0x7eb   : > { %v1554_v47 = vmul.f32 %v1553_v42, %v1552_v45 }
 0x7ed   : > { %v5931_v48 = vadd.f32 %v1555_v46, %v1554_v47 }
 0x7ef   : > { %4426 = vmatmul.msk.f32.vlgmr.msrb.gmra.mxu0 %vm1034_vm0, %v5931_v48 }
 0x86c   : > { %v1594_v49 = vpop.f32.mrf.mxu0 }
 0x86d   : > { %v5935_v50 = vadd.f32 %v4782_v4, %v1594_v49 }
 0x86f   : > { %1600 = vrot.lane.b32.xlu2 %v5935_v50, %s6718_s20  ;;  %1598 = vrot.lane.b32.xlu1 %v5935_v50, %s6716_s4 }
 0x877   : > { %1602 = vrot.lane.b32.xlu1 %v5935_v50, %s6714_s25 }
 0x8c9   : > { %v5943_v27 = vpop.permute.xlu2 %1600 }
 0x8ca   : > { %1656 = vrot.lane.b32.xlu0 %v5943_v27, %s6712_s3 }
 0x8e1   : > { %v5947_v51 = vpop.permute.xlu1 %1598 }
 0x8e2   : > { %1630 = vrot.lane.b32.xlu1 %v5947_v51, %s6712_s3  ;;  %v4730_v33 = vpack.i.bf16 %v5947_v51, %v5935_v50 }
 0x8e9   : > { %v5951_v52 = vpop.permute.xlu1 %1602 }
 0x8ea   : > { %1604 = vrot.lane.b32.xlu1 %v5935_v50, %s6712_s3  ;;  %1682 = vrot.lane.b32.xlu2 %v5951_v52, %s6712_s3  ;;  %v4735_v32 = vpack.i.bf16 %v5951_v52, %v5943_v27 }
 0x93c   : > { %v1657_v53 = vpop.permute.xlu0 %1656 }
 0x93d   : > { %4431 = vmatpush.xpose.msk.msra.mxu0 %vm1067_vm1, %v1657_v53  ;;  %v4423_v53 = vld [vmem:[%s6792_s28 + $0x28] sm:$0xff] }
 0x940   : > { %4432 = vmatmul.msk.f32.vlgmr.msra.gmra.mxu0 %vm1067_vm1, %v5943_v27 }
 0x944   : > { %v1683_v56 = vpop.permute.xlu2 %1682 }
 0x954   : > { %v1631_v54 = vpop.permute.xlu1 %1630 }
 0x955   : > { %4429 = vmatpush.xpose.msk.msra.mxu2 %vm1067_vm1, %v1631_v54  ;;  %v4424_v54 = vld [vmem:[%s6792_s28 + $0x30] sm:$0xff] }
 0x958   : > { %4430 = vmatmul.msk.f32.vlgmr.msra.gmra.mxu2 %vm1067_vm1, %v5947_v51 }
 0x95c   : > { %v1605_v55 = vpop.permute.xlu1 %1604 }
 0x95d   : > { %4427 = vmatpush.xpose.msk.msra.mxu1 %vm1067_vm1, %v1605_v55  ;;  %v4425_v55 = vld [vmem:[%s6792_s28 + $0x38] sm:$0xff] }
 0x960   : > { %4428 = vmatmul.msk.f32.vlgmr.msra.gmra.mxu1 %vm1067_vm1, %v5935_v50 }
 0x961   : > { %4433 = vmatpush.xpose.msk.msrb.mxu1 %vm1067_vm1, %v1683_v56  ;;  %v2092_v56 = vld [vmem:[%s6797_s11 + $0x18] sm:$0xff] }
 0x968   : > { %4434 = vmatmul.msk.f32.vlgmr.msrb.gmra.mxu1 %vm1067_vm1, %v5951_v52  ;;  %v4422_v52 = vld [vmem:[%s6792_s28 + $0x20] sm:$0xff] }
 0x9bd   : > { %v1679_v57 = vpop.f32.mrf.mxu0 }
 0x9be   : > { %v1710_v58 = vmul.f32 0.35355338, %v1679_v57  ;;  %v2091_v57 = vld [vmem:[%s6797_s11 + $0x10] sm:$0xff] }
 0x9c0   : > { %v1714_v59 = vsel %vm5806_vm3, %v1710_v58, -1e+09  ;;  %v2090_v58 = vld [vmem:[%s6797_s11 + $0x8] sm:$0xff] }
 0x9c1   : > { %v1722_v60 = vsel %vm1067_vm1, %v1714_v59, -inf }
 0x9c2   : > { %1723 = vmax.xlane.f32.xlu0 %v1722_v60 }
 0x9db   : > { %v1653_v61 = vpop.f32.mrf.mxu2 }
 0x9dc   : > { %v1709_v62 = vmul.f32 0.35355338, %v1653_v61 }
 0x9dd   : > { %v1627_v63 = vpop.f32.mrf.mxu1 }
 0x9de   : > { %v1708_v0 = vmul.f32 0.35355338, %v1627_v63  ;;  %v1713_v1 = vsel %vm5806_vm3, %v1709_v62, -1e+09 }
 0x9df   : > { %v1719_v2 = vsel %vm1067_vm1, %v1713_v1, -inf }
 0x9e0   : > { %1720 = vmax.xlane.f32.xlu2 %v1719_v2  ;;  %v1712_v3 = vsel %vm5806_vm3, %v1708_v0, -1e+09  ;;  %v6025_v0 = vld [vmem:[%s877_s9] sm:$0xff]  ;;  %s6280_s9 = scalar_lea.vmem [#allocation20], %s4396_s23 }
 0x9e1   : > { %v1716_v5 = vsel %vm1067_vm1, %v1712_v3, -inf  ;;  %s4118_s17 = sshll.u32 %s6280_s9, 4  ;;  %s4119_s17 = int_to_ptr.vmem [resolvable:$true] %s4118_s17 }
 0x9e2   : > { %1717 = vmax.xlane.f32.xlu1 %v1716_v5 }
 0x9e5   : > { %v1705_v6 = vpop.f32.mrf.mxu1 }
 0x9e6   : > { %v1711_v7 = vmul.f32 0.35355338, %v1705_v6  ;;  %v6034_v6 = vld [vmem:[%s6793_s10 + $0x8] sm:$0x3f] }
 0x9e8   : > { %v1715_v8 = vsel %vm5806_vm3, %v1711_v7, -1e+09 }
 0x9e9   : > { %v1725_v9 = vsel %vm1067_vm1, %v1715_v8, -inf }
 0x9ea   : > { %1726 = vmax.xlane.f32.xlu1 %v1725_v9 }
 0xa35   : > { %v1724_v10 = vpop.xlane.xlu0 %1723 }
 0xa36   : > { %v1730_v11 = vsub.f32 %v1714_v59, %v1724_v10  ;;  %v2089_v59 = vld [vmem:[%s6797_s11] sm:$0xff] }
 0xa38   : > { %v1736_v12 = vmul.f32 1.442695, %v1730_v11 }
 0xa3a   : > { %4813 = vpow2.f32 %v1736_v12  ;;  %v1963_v12 = vperm.slane %v6034_v6, 0 }
 0xa40   : > { %v4814_v13 = vpop.eup %4813 }
 0xa41   : > { %v1746_v14 = vsel %vm1067_vm1, %v4814_v13, 0.0 }
 0xa42   : > { %1747 = vadd.xlane.f32.xlu1 %v1746_v14 }
 0xa53   : > { %v1721_v15 = vpop.xlane.xlu2 %1720 }
 0xa54   : > { %v1729_v16 = vsub.f32 %v1713_v1, %v1721_v15  ;;  %v4783_v15 = vld [vmem:[#allocation13] ss:$0 sm:$0xff] }
 0xa55   : > { %v1718_v17 = vpop.xlane.xlu1 %1717 }
 0xa56   : > { %v1734_v19 = vmul.f32 1.442695, %v1729_v16  ;;  %v1728_v20 = vsub.f32 %v1712_v3, %v1718_v17 }
 0xa58   : > { %4815 = vpow2.f32 %v1734_v19  ;;  %v1732_v21 = vmul.f32 1.442695, %v1728_v20 }
 0xa5a   : > { %4817 = vpow2.f32 %v1732_v21 }
 0xa5d   : > { %v1727_v22 = vpop.xlane.xlu1 %1726 }
 0xa5e   : > { %v4816_v23 = vpop.eup %4815  ;;  %v1731_v24 = vsub.f32 %v1715_v8, %v1727_v22 }
 0xa5f   : > { %v1743_v25 = vsel %vm1067_vm1, %v4816_v23, 0.0 }
 0xa60   : > { %v4818_v26 = vpop.eup %4817  ;;  %v1738_v28 = vmul.f32 1.442695, %v1731_v24  ;;  %1744 = vadd.xlane.f32.xlu1 %v1743_v25 }
 0xa61   : > { %v1740_v29 = vsel %vm1067_vm1, %v4818_v26, 0.0 }
 0xa62   : > { %4819 = vpow2.f32 %v1738_v28  ;;  %1741 = vadd.xlane.f32.xlu2 %v1740_v29 }
 0xa68   : > { %v4820_v30 = vpop.eup %4819 }
 0xa69   : > { %v1749_v31 = vsel %vm1067_vm1, %v4820_v30, 0.0 }
 0xa6a   : > { %1750 = vadd.xlane.f32.xlu0 %v1749_v31  ;;  %v4446_v31 = vld [vmem:[%s6795_s5 + $0x38] sm:$0xff] }
 0xa79   : > { %4736 = vrot.lane.b32.xlu1 %v4735_v32, %s6710_s1  ;;  %v4445_v32 = vld [vmem:[%s6795_s5 + $0x30] sm:$0xff] }
 0xa7a   : > { %4731 = vrot.lane.b32.xlu2 %v4730_v33, %s6710_s1  ;;  %v4444_v33 = vld [vmem:[%s6795_s5 + $0x28] sm:$0xff] }
 0xab5   : > { %v1748_v34 = vpop.xlane.xlu1 %1747 }
 0xad3   : > { %v1745_v35 = vpop.xlane.xlu1 %1744 }
 0xad4   : > { %4821 = vrcp.f32 %v1745_v35 }
 0xad5   : > { %v1742_v36 = vpop.xlane.xlu2 %1741 }
 0xad6   : > { %4823 = vrcp.f32 %v1742_v36 }
 0xad7   : > { %4825 = vrcp.f32 %v1748_v34  ;;  %v4443_v34 = vld [vmem:[%s6795_s5 + $0x20] sm:$0xff] }
 0xada   : > { %v4822_v37 = vpop.eup %4821 }
 0xadb   : > { %v1757_v42 = vmul.f32 %v4822_v37, %v4816_v23 }
 0xadc   : > { %v4824_v38 = vpop.eup %4823 }
 0xadd   : > { %v4732_v39 = vpop.permute.xlu2 %4731  ;;  %v1756_v43 = vmul.f32 %v4824_v38, %v4818_v26  ;;  %v1751_v45 = vpop.xlane.xlu0 %1750 }
 0xade   : > { %v4734_v40 = vunpack.i.h.bf16 %v4732_v39  ;;  %v4733_v41 = vunpack.i.l.bf16 %v4732_v39  ;;  %4827 = vrcp.f32 %v1751_v45  ;;  %v4826_v46 = vpop.eup %4825 }
 0xadf   : > { %v1758_v27 = vmul.f32 %v4826_v46, %v4814_v13 }
 0xae0   : > { %1781 = vmatpush.msrb.mxu2 %v4733_v41  ;;  %1807 = vmatpush.msra.mxu3 %v4734_v40 }
 0xae1   : > { %4435 = vmatmul.msk.f32.vlgmr.msrb.gmra.mxu2 %vm1067_vm1, %v1756_v43  ;;  %4436 = vmatmul.msk.f32.vlgmr.msra.gmra.mxu3 %vm1067_vm1, %v1757_v42 }
 0xae2   : > { %1882 = vmatpush.msra.mxu2 %v4422_v52  ;;  %1905 = vmatpush.msrb.mxu3 %v4423_v53  ;;  %v6098_v53 = vld [vmem:[%s6798_s16] sm:$0xff]  ;;  %s4101_s16 = scalar_lea.sflag [#allocation4], %s5731_s15 }
 0xae3   : > { %vm2239_vm15 = vcmp.gt.f32.partialorder %v6098_v53, 0.0 }
 0xae4   : > { %v4828_v47 = vpop.eup %4827  ;;  %2017 = vmatpush.msrb.mxu2 %v4446_v31 }
 0xae5   : > { %v1759_v51 = vmul.f32 %v4828_v47, %v4820_v30 }
 0xae6   : > { %2018 = vmatpush.msrb.mxu2 %v4445_v32 }
 0xae8   : > { %2019 = vmatpush.msrb.mxu2 %v4444_v33 }
 0xaea   : > { %2020 = vmatpush.msrb.mxu2 %v4443_v34 }
 0xaeb   : > { %v4737_v4 = vpop.permute.xlu1 %4736 }
 0xaec   : > { %v4739_v49 = vunpack.i.h.bf16 %v4737_v4  ;;  %v4738_v50 = vunpack.i.l.bf16 %v4737_v4  ;;  %v1988_v4 = vperm.slane %v6034_v6, 2 }
 0xaee   : > { %1833 = vmatpush.msrb.mxu0 %v4738_v50  ;;  %1859 = vmatpush.msra.mxu1 %v4739_v49 }
 0xaef   : > { %4437 = vmatmul.msk.f32.vlgmr.msrb.gmra.mxu0 %vm1067_vm1, %v1758_v27  ;;  %4438 = vmatmul.msk.f32.vlgmr.msra.gmra.mxu1 %vm1067_vm1, %v1759_v51  ;;  %v1990_v27 = vperm.slane %v6034_v6, 3 }
 0xaf0   : > { %1928 = vmatpush.msra.mxu0 %v4424_v54  ;;  %1951 = vmatpush.msrb.mxu1 %v4425_v55 }
 0xaf2   : > { %2116 = vmatpush.msrb.mxu0 %v2092_v56 }
 0xaf4   : > { %2117 = vmatpush.msrb.mxu0 %v2091_v57 }
 0xaf6   : > { %2118 = vmatpush.msrb.mxu0 %v2090_v58  ;;  %v4455_v58 = vld [vmem:[%s6796_s27 + $0x78] sm:$0xff] }
 0xaf7   : > { %2047 = vmatpush.msra.mxu3 %v4455_v58 }
 0xaf8   : > { %2119 = vmatpush.msrb.mxu0 %v2089_v59  ;;  %v4454_v59 = vld [vmem:[%s6796_s27 + $0x70] sm:$0xff] }
 0xaf9   : > { %2048 = vmatpush.msra.mxu3 %v4454_v59 }
 0xb64   : > { %v1783_v60 = vpop.f32.mrf.mxu2  ;;  %v1809_v61 = vpop.f32.mrf.mxu3 }
 0xb65   : > { %4439 = vmatmul.msk.f32.vlgmr.msra.gmra.mxu2 %vm1067_vm1, %v1783_v60  ;;  %4440 = vmatmul.msk.f32.vlgmr.msrb.gmra.mxu3 %vm1067_vm1, %v1809_v61  ;;  %v4453_v60 = vld [vmem:[%s6796_s27 + $0x68] sm:$0xff]  ;;  %v4452_v61 = vld [vmem:[%s6796_s27 + $0x60] sm:$0xff] }
 0xb66   : > { %2049 = vmatpush.msra.mxu3 %v4453_v60 }
 0xb68   : > { %2050 = vmatpush.msra.mxu3 %v4452_v61 }
 0xb6c   : > { %v1835_v62 = vpop.f32.mrf.mxu0  ;;  %v1861_v63 = vpop.f32.mrf.mxu1 }
 0xb6d   : > { %4441 = vmatmul.msk.f32.vlgmr.msra.gmra.mxu0 %vm1067_vm1, %v1835_v62  ;;  %4442 = vmatmul.msk.f32.vlgmr.msrb.gmra.mxu1 %vm1067_vm1, %v1861_v63  ;;  %v4451_v62 = vld [vmem:[%s6796_s27 + $0x58] sm:$0xff]  ;;  %v4450_v63 = vld [vmem:[%s6796_s27 + $0x50] sm:$0xff] }
 0xb6e   : > { %2051 = vmatpush.msra.mxu3 %v4451_v62 }
 0xb70   : > { %2052 = vmatpush.msra.mxu3 %v4450_v63 }
 0xb75   : > { %4457 = vmatmul.msk.f32.vlgmr.msrb.gmra.mxu0 %vm1034_vm0, %v6025_v0 }
 0xbe8   : > { %v1884_v1 = vpop.f32.mrf.mxu2  ;;  %v1907_v2 = vpop.f32.mrf.mxu3 }
 0xbe9   : > { %v1956_v3 = vsel %vm1034_vm0, %v1884_v1, 0.0  ;;  %v1957_v5 = vsel %vm1034_vm0, %v1907_v2, 0.0  ;;  %v4449_v1 = vld [vmem:[%s6796_s27 + $0x48] sm:$0xff]  ;;  %v4448_v2 = vld [vmem:[%s6796_s27 + $0x40] sm:$0xff] }
 0xbea   : > { %v1958_v7 = vadd.f32 %v1957_v5, %v1956_v3  ;;  %v1930_v8 = vpop.f32.mrf.mxu0  ;;  %v1953_v9 = vpop.f32.mrf.mxu1  ;;  %2053 = vmatpush.msra.mxu3 %v4449_v1 }
 0xbeb   : > { %v1959_v10 = vsel %vm1034_vm0, %v1930_v8, 0.0  ;;  %v1961_v13 = vsel %vm1034_vm0, %v1953_v9, 0.0 }
 0xbec   : > { %v1960_v11 = vadd.f32 %v1959_v10, %v1958_v7  ;;  %2054 = vmatpush.msra.mxu3 %v4448_v2 }
 0xbee   : > { %v1962_v14 = vadd.f32 %v1961_v13, %v1960_v11  ;;  %v4784_v11 = vld [vmem:[#allocation11 + $0x1] ss:$0 sm:$0xff] }
 0xbf0   : > { %v1964_v16 = vadd.f32 %v1963_v12, %v1962_v14 }
 0xbf2   : > { %v1965_v17 = vadd.f32 %v1964_v16, %v5931_v48  ;;  %v2121_v19 = vpop.f32.mrf.mxu0 }
 0xbf3   : > { %v6040_v20 = vadd.f32 %v4783_v15, %v2121_v19 }
 0xbf4   : > { %v1966_v21 = vsel %vm1034_vm0, %v1965_v17, 0.0 }
 0xbf5   : > { %1967 = vadd.xlane.f32.xlu0 %v1966_v21  ;;  %2127 = vrot.lane.b32.xlu1 %v6040_v20, %s6718_s20 }
 0xc09   : > { %2125 = vrot.lane.b32.xlu0 %v6040_v20, %s6716_s4 }
 0xc11   : > { %2129 = vrot.lane.b32.xlu0 %v6040_v20, %s6714_s25 }
 0xc19   : > { %2131 = vrot.lane.b32.xlu0 %v6040_v20, %s6712_s3 }
 0xc67   : > { %v6057_v28 = vpop.permute.xlu1 %2127 }
 0xc68   : > { %v1968_v22 = vpop.xlane.xlu0 %1967 }
 0xc69   : > { %v1969_v48 = vmul.f32 %v1968_v22, %v5867_v44 }
 0xc6b   : > { %v1970_v23 = vsub.f32 %v1965_v17, %v1969_v48 }
 0xc6d   : > { %v1971_v24 = vmul.f32 %v1970_v23, %v1970_v23 }
 0xc6f   : > { %v1972_v25 = vsel %vm1034_vm0, %v1971_v24, 0.0 }
 0xc70   : > { %1973 = vadd.xlane.f32.xlu2 %v1972_v25 }
 0xc7b   : > { %v6053_v26 = vpop.permute.xlu0 %2125 }
 0xc7c   : > { %2157 = vrot.lane.b32.xlu1 %v6053_v26, %s6712_s3 }
 0xc83   : > { %v6059_v29 = vpop.permute.xlu0 %2129 }
 0xc84   : > { %2183 = vrot.lane.b32.xlu1 %v6057_v28, %s6712_s3  ;;  %2209 = vrot.lane.b32.xlu0 %v6059_v29, %s6712_s3 }
 0xc8b   : > { %v2132_v30 = vpop.permute.xlu0 %2131 }
 0xc8c   : > { %4458 = vmatpush.xpose.msk.msra.mxu1 %vm1067_vm1, %v2132_v30 }
 0xc8f   : > { %4459 = vmatmul.msk.f32.vlgmr.msra.gmra.mxu1 %vm1067_vm1, %v6040_v20 }
 0xce3   : > { %v1974_v35 = vpop.xlane.xlu2 %1973 }
 0xce4   : > { %v1975_v36 = vmul.f32 %v1974_v35, %v5867_v44 }
 0xce6   : > { %v1976_v37 = vadd.f32 1e-05, %v1975_v36 }
 0xce8   : > { %4829 = vrsqrt.f32 %v1976_v37  ;;  %vm1983_vm13 = vweird.f32 %v1976_v37 }
 0xcee   : > { %v4830_v38 = vpop.eup %4829  ;;  %v2158_v39 = vpop.permute.xlu1 %2157 }
 0xcef   : > { %v1978_v40 = vmul.f32 %v4830_v38, %v1976_v37  ;;  %4460 = vmatpush.xpose.msk.msra.mxu2 %vm1067_vm1, %v2158_v39  ;;  %vm1984_vm12 = vweird.f32 %v4830_v38 }
 0xcf0   : > { %vm1985_vm14 = vmor %vm1983_vm13, %vm1984_vm12 }
 0xcf1   : > { %v1979_v41 = vmul.f32 %v4830_v38, %v1978_v40 }
 0xcf3   : > { %v1980_v42 = vmul.f32 0.5, %v1979_v41 }
 0xcf5   : > { %v1981_v43 = vsub.f32 1.5, %v1980_v42 }
 0xcf6   : > { %v2184_v45 = vpop.permute.xlu1 %2183  ;;  %v2210_v46 = vpop.permute.xlu0 %2209 }
 0xcf7   : > { %v1982_v47 = vmul.f32 %v4830_v38, %v1981_v43  ;;  %4462 = vmatpush.xpose.msk.msra.mxu0 %vm1067_vm1, %v2184_v45  ;;  %4464 = vmatpush.xpose.msk.msrb.mxu1 %vm1067_vm1, %v2210_v46  ;;  %v2035_v45 = vperm.slane %v6034_v6, 1 }
 0xcf9   : > { %v1986_v49 = vsel %vm1985_vm14, %v4830_v38, %v1982_v47 }
 0xcfa   : > { %v1987_v50 = vmul.f32 %v1986_v49, %v1970_v23  ;;  %4463 = vmatmul.msk.f32.vlgmr.msra.gmra.mxu0 %vm1067_vm1, %v6057_v28  ;;  %4465 = vmatmul.msk.f32.vlgmr.msrb.gmra.mxu1 %vm1067_vm1, %v6059_v29 }
 0xcfc   : > { %v1989_v51 = vmul.f32 %v1988_v4, %v1987_v50 }
 0xcfe   : > { %v6090_v52 = vadd.f32 %v1990_v27, %v1989_v51  ;;  %v4745_v51 = vpack.i.bf16 %v6059_v29, %v6057_v28 }
 0xd00   : > { %4447 = vmatmul.msk.f32.vlgmr.msrb.gmra.mxu2 %vm1034_vm0, %v6090_v52 }
 0xd08   : > { %4461 = vmatmul.msk.f32.vlgmr.msra.gmra.mxu2 %vm1067_vm1, %v6053_v26 }
 0xd0c   : > { %v2154_v54 = vpop.f32.mrf.mxu1 }
 0xd0d   : > { %v2235_v55 = vmul.f32 0.35355338, %v2154_v54  ;;  %v4740_v54 = vpack.i.bf16 %v6053_v26, %v6040_v20 }
 0xd0f   : > { %v2242_v56 = vsel %vm2239_vm15, %v2235_v55, -1e+09 }
 0xd10   : > { %v2246_v57 = vsel %vm1067_vm1, %v2242_v56, -inf }
 0xd11   : > { %2247 = vmax.xlane.f32.xlu1 %v2246_v57 }
 0xd77   : > { %v2206_v3 = vpop.f32.mrf.mxu0  ;;  %v2232_v7 = vpop.f32.mrf.mxu1 }
 0xd78   : > { %v2237_v5 = vmul.f32 0.35355338, %v2206_v3  ;;  %v2238_v10 = vmul.f32 0.35355338, %v2232_v7 }
 0xd7a   : > { %v2244_v8 = vsel %vm2239_vm15, %v2237_v5, -1e+09  ;;  %v2245_v12 = vsel %vm2239_vm15, %v2238_v10, -1e+09 }
 0xd7b   : > { %v2252_v9 = vsel %vm1067_vm1, %v2244_v8, -inf  ;;  %v2255_v14 = vsel %vm1067_vm1, %v2245_v12, -inf }
 0xd7c   : > { %2253 = vmax.xlane.f32.xlu2 %v2252_v9 }
 0xd83   : > { %v2022_v13 = vpop.f32.mrf.mxu2 }
 0xd84   : > { %v2023_v15 = vadd.f32 %v4784_v11, %v2022_v13  ;;  %v2248_v16 = vpop.xlane.xlu1 %2247  ;;  %2256 = vmax.xlane.f32.xlu2 %v2255_v14  ;;  %v2097_v13 = vld [vmem:[%s6799_s13 + $0x18] sm:$0xff]  ;;  %v2094_v14 = vld [vmem:[%s6799_s13] sm:$0xff] }
 0xd85   : > { %v2258_v17 = vsub.f32 %v2242_v56, %v2248_v16  ;;  %v2529_v16 = vld [vmem:[%s6800_s6 + $0x18] sm:$0xff]  ;;  %s6810_s6 = sld [smem:[#allocation60_spill]] }
 0xd86   : > { %v2025_v19 = vmax.f32 %v2023_v15, 0.0  ;;  %v2095_v15 = vld [vmem:[%s6799_s13 + $0x8] sm:$0xff] }
 0xd87   : > { %v2262_v21 = vmul.f32 1.442695, %v2258_v17  ;;  %v2528_v17 = vld [vmem:[%s6801_s24 + $0x10] sm:$0xff] }
 0xd88   : > { %4456 = vmatmul.msk.f32.vlgmr.msra.gmra.mxu3 %vm1506_vm8, %v2025_v19  ;;  %v2527_v19 = vld [vmem:[%s6801_s24 + $0x8] sm:$0xff] }
 0xd89   : > { %4831 = vpow2.f32 %v2262_v21  ;;  %v2526_v21 = vld [vmem:[%s6801_s24] sm:$0xff] }
 0xd8b   : > { %v2180_v22 = vpop.f32.mrf.mxu2 }
 0xd8c   : > { %v2236_v48 = vmul.f32 0.35355338, %v2180_v22 }
 0xd8e   : > { %v2243_v23 = vsel %vm2239_vm15, %v2236_v48, -1e+09 }
 0xd8f   : > { %v6137_v24 = vpop.eup %4831  ;;  %v2249_v25 = vsel %vm1067_vm1, %v2243_v23, -inf }
 0xd90   : > { %2250 = vmax.xlane.f32.xlu0 %v2249_v25  ;;  %v2270_v30 = vsel %vm1067_vm1, %v6137_v24, 0.0 }
 0xd91   : > { %2271 = vadd.xlane.f32.xlu2 %v2270_v30 }
 0xdef   : > { %v2254_v31 = vpop.xlane.xlu2 %2253 }
 0xdf0   : > { %v2260_v32 = vsub.f32 %v2244_v8, %v2254_v31 }
 0xdf2   : > { %v2266_v33 = vmul.f32 1.442695, %v2260_v32 }
 0xdf4   : > { %4833 = vpow2.f32 %v2266_v33 }
 0xdf7   : > { %v2257_v34 = vpop.xlane.xlu2 %2256 }
 0xdf8   : > { %v2261_v35 = vsub.f32 %v2245_v12, %v2257_v34  ;;  %v2096_v12 = vld [vmem:[%s6799_s13 + $0x10] sm:$0xff] }
 0xdfa   : > { %v4834_v36 = vpop.eup %4833  ;;  %v2268_v37 = vmul.f32 1.442695, %v2261_v35 }
 0xdfb   : > { %v2276_v38 = vsel %vm1067_vm1, %v4834_v36, 0.0 }
 0xdfc   : > { %4835 = vpow2.f32 %v2268_v37  ;;  %2277 = vadd.xlane.f32.xlu1 %v2276_v38  ;;  %v2082_v38 = vperm.slane %v6034_v6, 4 }
 0xe02   : > { %v4836_v39 = vpop.eup %4835 }
 0xe03   : > { %v2251_v40 = vpop.xlane.xlu0 %2250  ;;  %v2279_v41 = vsel %vm1067_vm1, %v4836_v39, 0.0 }
 0xe04   : > { %v2259_v42 = vsub.f32 %v2243_v23, %v2251_v40  ;;  %2280 = vadd.xlane.f32.xlu0 %v2279_v41  ;;  %v2272_v55 = vpop.xlane.xlu2 %2271  ;;  %v2084_v41 = vperm.slane %v6034_v6, 5  ;;  %v2522_v6 = vld [vmem:[%s6802_s0] sm:$0xff] }
 0xe06   : > { %v2264_v43 = vmul.f32 1.442695, %v2259_v42 }
 0xe08   : > { %4837 = vpow2.f32 %v2264_v43 }
 0xe0b   : > { %v2056_v46 = vpop.f32.mrf.mxu3 }
 0xe0c   : > { %v2057_v47 = vadd.f32 %v2056_v46, %v2035_v45  ;;  %v2525_v45 = vld [vmem:[%s6802_s0 + $0x18] sm:$0xff]  ;;  %v2524_v46 = vld [vmem:[%s6802_s0 + $0x10] sm:$0xff] }
 0xe0e   : > { %v4838_v4 = vpop.eup %4837  ;;  %v2059_v49 = vadd.f32 %v2057_v47, %v6090_v52  ;;  %v2523_v47 = vld [vmem:[%s6802_s0 + $0x8] sm:$0xff] }
 0xe0f   : > { %v2273_v50 = vsel %vm1067_vm1, %v4838_v4, 0.0 }
 0xe10   : > { %2274 = vadd.xlane.f32.xlu2 %v2273_v50  ;;  %v2060_v27 = vsel %vm1034_vm0, %v2059_v49, 0.0 }
 0xe11   : > { %2061 = vadd.xlane.f32.xlu0 %v2060_v27 }
 0xe15   : > { %4746 = vrot.lane.b32.xlu1 %v4745_v51, %s6710_s1 }
 0xe28   : > { %4741 = vrot.lane.b32.xlu2 %v4740_v54, %s6710_s1  ;;  %s6803_s1 = sld [smem:[#allocation59_spill]] }
 0xe2e   : > { %v6218_v54 = vld [vmem:[%s6803_s1] sm:$0xff] }
 0xe6f   : > { %v2278_v56 = vpop.xlane.xlu1 %2277 }
 0xe70   : > { %4839 = vrcp.f32 %v2278_v56 }
 0xe76   : > { %v4840_v59 = vpop.eup %4839 }
 0xe77   : > { %v2281_v57 = vpop.xlane.xlu0 %2280  ;;  %v2288_v63 = vmul.f32 %v4840_v59, %v4834_v36 }
 0xe78   : > { %4841 = vrcp.f32 %v2281_v57 }
 0xe79   : > { %4843 = vrcp.f32 %v2272_v55 }
 0xe7e   : > { %v4842_v28 = vpop.eup %4841 }
 0xe7f   : > { %v4844_v26 = vpop.eup %4843  ;;  %v2289_v1 = vmul.f32 %v4842_v28, %v4836_v39  ;;  %v4785_v28 = vld [vmem:[#allocation14] ss:$0 sm:$0xff] }
 0xe80   : > { %v2286_v10 = vmul.f32 %v4844_v26, %v6137_v24 }
 0xe83   : > { %v2275_v52 = vpop.xlane.xlu2 %2274 }
 0xe84   : > { %4845 = vrcp.f32 %v2275_v52  ;;  %v2062_v58 = vpop.xlane.xlu0 %2061 }
 0xe85   : > { %v2063_v60 = vmul.f32 %v2062_v58, %v5867_v44  ;;  %v2493_v58 = vperm.slane %v6218_v54, 0 }
 0xe87   : > { %v6155_v29 = vsub.f32 %v2059_v49, %v2063_v60  ;;  %v4747_v61 = vpop.permute.xlu1 %4746 }
 0xe88   : > { %v4749_v62 = vunpack.i.h.bf16 %v4747_v61  ;;  %v4748_v20 = vunpack.i.l.bf16 %v4747_v61 }
 0xe89   : > { %v2065_v2 = vmul.f32 %v6155_v29, %v6155_v29 }
 0xe8a   : > { %v4846_v3 = vpop.eup %4845  ;;  %2363 = vmatpush.msrb.mxu0 %v4748_v20  ;;  %2389 = vmatpush.msra.mxu1 %v4749_v62 }
 0xe8b   : > { %4468 = vmatmul.msk.f32.vlgmr.msrb.gmra.mxu0 %vm1067_vm1, %v2288_v63  ;;  %v4742_v5 = vpop.permute.xlu2 %4741  ;;  %4469 = vmatmul.msk.f32.vlgmr.msra.gmra.mxu1 %vm1067_vm1, %v2289_v1  ;;  %v2066_v7 = vsel %vm1034_vm0, %v2065_v2, 0.0  ;;  %v2287_v11 = vmul.f32 %v4846_v3, %v4838_v4 }
 0xe8c   : > { %v4744_v8 = vunpack.i.h.bf16 %v4742_v5  ;;  %v4743_v9 = vunpack.i.l.bf16 %v4742_v5  ;;  %2067 = vadd.xlane.f32.xlu0 %v2066_v7  ;;  %2458 = vmatpush.msra.mxu0 %v2096_v12 }
 0xe8d   : > { %2481 = vmatpush.msrb.mxu1 %v2097_v13 }
 0xe8e   : > { %2311 = vmatpush.msrb.mxu2 %v4743_v9  ;;  %2337 = vmatpush.msrb.mxu3 %v4744_v8 }
 0xe8f   : > { %4466 = vmatmul.msk.f32.vlgmr.msrb.gmra.mxu2 %vm1067_vm1, %v2286_v10  ;;  %4467 = vmatmul.msk.f32.vlgmr.msrb.gmra.mxu3 %vm1067_vm1, %v2287_v11 }
 0xe90   : > { %2412 = vmatpush.msra.mxu2 %v2094_v14  ;;  %2435 = vmatpush.msra.mxu3 %v2095_v15 }
 0xe92   : > { %2577 = vmatpush.msrb.mxu3 %v2529_v16  ;;  %2551 = vmatpush.msrb.mxu2 %v2525_v45 }
 0xe94   : > { %2578 = vmatpush.msrb.mxu3 %v2528_v17  ;;  %2552 = vmatpush.msrb.mxu2 %v2524_v46  ;;  %v2518_v17 = vperm.slane %v6218_v54, 4 }
 0xe96   : > { %2579 = vmatpush.msrb.mxu3 %v2527_v19  ;;  %2553 = vmatpush.msrb.mxu2 %v2523_v47 }
 0xe98   : > { %2580 = vmatpush.msrb.mxu3 %v2526_v21  ;;  %2554 = vmatpush.msrb.mxu2 %v2522_v6 }
 0xeff   : > { %v2068_v22 = vpop.xlane.xlu0 %2067 }
 0xf00   : > { %v2069_v48 = vmul.f32 %v2068_v22, %v5867_v44  ;;  %v2520_v22 = vperm.slane %v6218_v54, 5 }
 0xf02   : > { %v2070_v23 = vadd.f32 1e-05, %v2069_v48 }
 0xf04   : > { %4847 = vrsqrt.f32 %v2070_v23  ;;  %vm2077_vm4 = vweird.f32 %v2070_v23 }
 0xf08   : > { %v2365_v24 = vpop.f32.mrf.mxu0  ;;  %v2391_v25 = vpop.f32.mrf.mxu1 }
 0xf09   : > { %4472 = vmatmul.msk.f32.vlgmr.msra.gmra.mxu0 %vm1067_vm1, %v2365_v24  ;;  %4473 = vmatmul.msk.f32.vlgmr.msrb.gmra.mxu1 %vm1067_vm1, %v2391_v25  ;;  %v2535_v25 = vperm.slane %v6218_v54, 1 }
 0xf0a   : > { %v4848_v30 = vpop.eup %4847 }
 0xf0b   : > { %v2072_v31 = vmul.f32 %v4848_v30, %v2070_v23  ;;  %vm2078_vm2 = vweird.f32 %v4848_v30 }
 0xf0c   : > { %vm2079_vm5 = vmor %vm2077_vm4, %vm2078_vm2 }
 0xf0d   : > { %v2073_v32 = vmul.f32 %v4848_v30, %v2072_v31 }
 0xf0f   : > { %v2074_v33 = vmul.f32 0.5, %v2073_v32 }
 0xf11   : > { %v2075_v34 = vsub.f32 1.5, %v2074_v33 }
 0xf12   : > { %v2313_v35 = vpop.f32.mrf.mxu2  ;;  %v2339_v36 = vpop.f32.mrf.mxu3 }
 0xf13   : > { %v2076_v37 = vmul.f32 %v4848_v30, %v2075_v34  ;;  %4470 = vmatmul.msk.f32.vlgmr.msra.gmra.mxu2 %vm1067_vm1, %v2313_v35  ;;  %4471 = vmatmul.msk.f32.vlgmr.msra.gmra.mxu3 %vm1067_vm1, %v2339_v36 }
 0xf15   : > { %v2080_v39 = vsel %vm2079_vm5, %v4848_v30, %v2076_v37 }
 0xf16   : > { %v2081_v40 = vmul.f32 %v2080_v39, %v6155_v29 }
 0xf18   : > { %v2083_v42 = vmul.f32 %v2082_v38, %v2081_v40 }
 0xf1a   : > { %v6197_v43 = vadd.f32 %v2084_v41, %v2083_v42 }
 0xf1c   : > { %4475 = vmatmul.msk.f32.vlgmr.msrb.gmra.mxu3 %vm1034_vm0, %v6197_v43 }
 0xf86   : > { %v2460_v4 = vpop.f32.mrf.mxu0  ;;  %v2483_v55 = vpop.f32.mrf.mxu1 }
 0xf87   : > { %v2489_v57 = vsel %vm1034_vm0, %v2460_v4, 0.0  ;;  %v2491_v59 = vsel %vm1034_vm0, %v2483_v55, 0.0 }
 0xf96   : > { %v2414_v49 = vpop.f32.mrf.mxu2  ;;  %v2437_v50 = vpop.f32.mrf.mxu3 }
 0xf97   : > { %v2486_v27 = vsel %vm1034_vm0, %v2414_v49, 0.0  ;;  %v2487_v51 = vsel %vm1034_vm0, %v2437_v50, 0.0 }
 0xf98   : > { %v2488_v56 = vadd.f32 %v2487_v51, %v2486_v27 }
 0xf9a   : > { %v2490_v52 = vadd.f32 %v2489_v57, %v2488_v56 }
 0xf9c   : > { %v2492_v60 = vadd.f32 %v2491_v59, %v2490_v52 }
 0xf9e   : > { %v2494_v29 = vadd.f32 %v2493_v58, %v2492_v60 }
 0xf9f   : > { %v2582_v61 = vpop.f32.mrf.mxu3 }
 0xfa0   : > { %v6223_v62 = vadd.f32 %v4785_v28, %v2582_v61  ;;  %v2495_v20 = vadd.f32 %v2494_v29, %v6025_v0 }
 0xfa2   : > { %2595 = vrot.lane.b32.xlu1 %v6223_v62, %s6718_s20  ;;  %4476 = vmatpush.xpose.msk.msrb.mxu0 %vm1067_vm1, %v6223_v62  ;;  %v2496_v26 = vsel %vm1034_vm0, %v2495_v20, 0.0 }
 0xfa3   : > { %2497 = vadd.xlane.f32.xlu2 %v2496_v26 }
0x1014   : > { %v6231_v63 = vpop.permute.xlu1 %2595 }
0x1015   : > { %4480 = vmatpush.xpose.msk.msra.mxu2 %vm1067_vm1, %v6231_v63 }
0x1016   : > { %v2498_v1 = vpop.xlane.xlu2 %2497 }
0x1017   : > { %v2499_v2 = vmul.f32 %v2498_v1, %v5867_v44 }
0x1019   : > { %v2500_v3 = vsub.f32 %v2495_v20, %v2499_v2 }
0x101b   : > { %v2501_v5 = vmul.f32 %v2500_v3, %v2500_v3 }
0x101d   : > { %v2502_v0 = vsel %vm1034_vm0, %v2501_v5, 0.0 }
0x101e   : > { %2503 = vadd.xlane.f32.xlu0 %v2502_v0 }
0x1032   : > { %2597 = vrot.lane.b32.xlu0 %v6223_v62, %s6714_s25 }
0x103a   : > { %2593 = vrot.lane.b32.xlu0 %v6223_v62, %s6716_s4 }
0x1091   : > { %v2504_v7 = vpop.xlane.xlu0 %2503 }
0x1092   : > { %v2505_v8 = vmul.f32 %v2504_v7, %v5867_v44 }
0x1094   : > { %v2506_v9 = vadd.f32 1e-05, %v2505_v8 }
0x1096   : > { %4849 = vrsqrt.f32 %v2506_v9  ;;  %vm2513_vm7 = vweird.f32 %v2506_v9 }
0x109c   : > { %v4850_v10 = vpop.eup %4849 }
0x109d   : > { %v2508_v11 = vmul.f32 %v4850_v10, %v2506_v9  ;;  %vm2514_vm6 = vweird.f32 %v4850_v10 }
0x109e   : > { %vm2515_vm9 = vmor %vm2513_vm7, %vm2514_vm6 }
0x109f   : > { %v2509_v12 = vmul.f32 %v4850_v10, %v2508_v11 }
0x10a1   : > { %v2510_v13 = vmul.f32 0.5, %v2509_v12 }
0x10a3   : > { %v2511_v14 = vsub.f32 1.5, %v2510_v13 }
0x10a4   : > { %v6242_v15 = vpop.permute.xlu0 %2597 }
0x10a5   : > { %v2512_v16 = vmul.f32 %v4850_v10, %v2511_v14  ;;  %4482 = vmatpush.xpose.msk.msra.mxu3 %vm1067_vm1, %v6242_v15 }
0x10a7   : > { %v2516_v19 = vsel %vm2515_vm9, %v4850_v10, %v2512_v16  ;;  %v4750_v16 = vpack.i.bf16 %v6242_v15, %v6231_v63 }
0x10a8   : > { %v2517_v21 = vmul.f32 %v2516_v19, %v2500_v3  ;;  %v2531_v19 = vld [vmem:[#allocation16] sm:$0xff] }
0x10aa   : > { %v2519_v48 = vmul.f32 %v2518_v17, %v2517_v21 }
0x10ac   : > { %v2594_v23 = vpop.permute.xlu0 %2593  ;;  %v6248_v24 = vadd.f32 %v2520_v22, %v2519_v48 }
0x10ad   : > { %4478 = vmatpush.xpose.msk.msra.mxu1 %vm1067_vm1, %v2594_v23  ;;  %v4755_v58 = vpack.i.bf16 %v2594_v23, %v6223_v62 }
0x10ae   : > { %4474 = vmatmul.msk.f32.vlgmr.msrb.gmra.mxu2 %vm1034_vm0, %v6248_v24 }
0x1131   : > { %v2556_v30 = vpop.f32.mrf.mxu2 }
0x1132   : > { %v2557_v31 = vadd.f32 %v2556_v30, %v2535_v25 }
0x1134   : > { %2588 = vrot.lane.b32.xlu1 %v2557_v31, %s6718_s20  ;;  %4477 = vmatmul.msk.f32.vlgmr.msrb.gmra.mxu0 %vm1067_vm1, %v2557_v31 }
0x113c   : > { %2590 = vrot.lane.b32.xlu1 %v2557_v31, %s6714_s25 }
0x1144   : > { %2586 = vrot.lane.b32.xlu1 %v2557_v31, %s6716_s4 }
0x11a6   : > { %v2589_v32 = vpop.permute.xlu1 %2588 }
0x11a7   : > { %4481 = vmatmul.msk.f32.vlgmr.msra.gmra.mxu2 %vm1067_vm1, %v2589_v32 }
0x11ae   : > { %v2591_v33 = vpop.permute.xlu1 %2590 }
0x11af   : > { %4483 = vmatmul.msk.f32.vlgmr.msra.gmra.mxu3 %vm1067_vm1, %v2591_v33 }
0x11b1   : > { %v2620_v34 = vpop.f32.mrf.mxu0 }
0x11b2   : > { %v2695_v35 = vmul.f32 0.35355338, %v2620_v34 }
0x11b4   : > { %v2699_v36 = vsel %vm5806_vm3, %v2695_v35, -1e+09  ;;  %v2532_v35 = vld [vmem:[#allocation16 + $0x8] sm:$0xff] }
0x11b5   : > { %v2703_v37 = vsel %vm1067_vm1, %v2699_v36, -inf }
0x11b6   : > { %v2587_v38 = vpop.permute.xlu1 %2586  ;;  %2704 = vmax.xlane.f32.xlu1 %v2703_v37  ;;  %v2534_v37 = vld [vmem:[#allocation16 + $0x18] sm:$0xff] }
0x11b7   : > { %4479 = vmatmul.msk.f32.vlgmr.msra.gmra.mxu1 %vm1067_vm1, %v2587_v38 }
0x1229   : > { %v2705_v39 = vpop.xlane.xlu1 %2704 }
0x122a   : > { %v2668_v40 = vpop.f32.mrf.mxu2  ;;  %v2715_v42 = vsub.f32 %v2699_v36, %v2705_v39  ;;  %v2533_v36 = vld [vmem:[#allocation16 + $0x10] sm:$0xff] }
0x122b   : > { %v2697_v41 = vmul.f32 0.35355338, %v2668_v40 }
0x122c   : > { %v2719_v47 = vmul.f32 1.442695, %v2715_v42 }
0x122d   : > { %v2701_v45 = vsel %vm5806_vm3, %v2697_v41, -1e+09 }
0x122e   : > { %v2709_v46 = vsel %vm1067_vm1, %v2701_v45, -inf  ;;  %4851 = vpow2.f32 %v2719_v47 }
0x122f   : > { %2710 = vmax.xlane.f32.xlu2 %v2709_v46 }
0x1232   : > { %v2692_v6 = vpop.f32.mrf.mxu3 }
0x1233   : > { %v2698_v4 = vmul.f32 0.35355338, %v2692_v6 }
0x1234   : > { %v2644_v49 = vpop.f32.mrf.mxu1  ;;  %v4852_v57 = vpop.eup %4851 }
0x1235   : > { %v2696_v50 = vmul.f32 0.35355338, %v2644_v49  ;;  %v2702_v27 = vsel %vm5806_vm3, %v2698_v4, -1e+09  ;;  %v2727_v52 = vsel %vm1067_vm1, %v4852_v57, 0.0 }
0x1236   : > { %v2712_v51 = vsel %vm1067_vm1, %v2702_v27, -inf }
0x1237   : > { %2713 = vmax.xlane.f32.xlu0 %v2712_v51  ;;  %v2700_v55 = vsel %vm5806_vm3, %v2696_v50, -1e+09 }
0x1238   : > { %v2706_v56 = vsel %vm1067_vm1, %v2700_v55, -inf }
0x1239   : > { %2707 = vmax.xlane.f32.xlu2 %v2706_v56 }
0x123f   : > { %2728 = vadd.xlane.f32.xlu0 %v2727_v52 }
0x1253   : > { %4756 = vrot.lane.b32.xlu0 %v4755_v58, %s6712_s3 }
0x12a2   : > { %v2711_v59 = vpop.xlane.xlu2 %2710 }
0x12a3   : > { %v2717_v60 = vsub.f32 %v2701_v45, %v2711_v59 }
0x12a5   : > { %v2723_v28 = vmul.f32 1.442695, %v2717_v60 }
0x12a7   : > { %4853 = vpow2.f32 %v2723_v28 }
0x12aa   : > { %v2714_v29 = vpop.xlane.xlu0 %2713 }
0x12ab   : > { %v2718_v61 = vsub.f32 %v2702_v27, %v2714_v29  ;;  %v2950_v27 = vperm.slane %v6218_v54, 2 }
0x12ac   : > { %v2708_v20 = vpop.xlane.xlu2 %2707 }
0x12ad   : > { %v4854_v26 = vpop.eup %4853  ;;  %v2725_v1 = vmul.f32 1.442695, %v2718_v61  ;;  %v2716_v2 = vsub.f32 %v2700_v55, %v2708_v20  ;;  %v2986_v61 = vld [vmem:[#allocation17 + $0x18] sm:$0xff]  ;;  %v2985_v20 = vld [vmem:[#allocation17 + $0x10] sm:$0xff] }
0x12ae   : > { %v2733_v3 = vsel %vm1067_vm1, %v4854_v26, 0.0 }
0x12af   : > { %4855 = vpow2.f32 %v2725_v1  ;;  %v2721_v5 = vmul.f32 1.442695, %v2716_v2  ;;  %2734 = vadd.xlane.f32.xlu2 %v2733_v3  ;;  %v2983_v1 = vld [vmem:[#allocation17] sm:$0xff]  ;;  %v3021_v2 = vld [vmem:[%s6804_s12 + $0x30] sm:$0xff]  ;;  %v3020_v3 = vld [vmem:[%s6804_s12 + $0x28] sm:$0xff] }
0x12b1   : > { %4857 = vpow2.f32 %v2721_v5 }
0x12b2   : > { %v2729_v62 = vpop.xlane.xlu0 %2728 }
0x12b3   : > { %4859 = vrcp.f32 %v2729_v62 }
0x12b5   : > { %v4856_v0 = vpop.eup %4855 }
0x12b6   : > { %v2736_v7 = vsel %vm1067_vm1, %v4856_v0, 0.0 }
0x12b7   : > { %v4858_v8 = vpop.eup %4857  ;;  %2737 = vadd.xlane.f32.xlu2 %v2736_v7 }
0x12b8   : > { %v2730_v9 = vsel %vm1067_vm1, %v4858_v8, 0.0 }
0x12b9   : > { %v4860_v10 = vpop.eup %4859  ;;  %2731 = vadd.xlane.f32.xlu1 %v2730_v9 }
0x12ba   : > { %v2743_v11 = vmul.f32 %v4860_v10, %v4852_v57 }
0x12bc   : > { %2952 = vst.msk [vmem:[%s6280_s9] sm:$0xff] %vm1067_vm1, %v2743_v11 }
0x12c5   : > { %v4757_v12 = vpop.permute.xlu0 %4756 }
0x12c6   : > { %v4759_v13 = vunpack.i.h.bf16 %v4757_v12  ;;  %v4758_v14 = vunpack.i.l.bf16 %v4757_v12 }
0x12c8   : > { %2768 = vmatpush.msra.mxu0 %v4758_v14  ;;  %2794 = vmatpush.msrb.mxu1 %v4759_v13 }
0x12c9   : > { %4484 = vmatmul.msk.f32.vlgmr.msra.gmra.mxu0 %vm1067_vm1, %v2743_v11 }
0x12ca   : > { %2869 = vmatpush.msrb.mxu0 %v2531_v19  ;;  %2892 = vmatpush.msra.mxu1 %v2532_v35 }
0x12cc   : > { %3006 = vmatpush.msra.mxu0 %v2986_v61 }
0x12ce   : > { %3007 = vmatpush.msra.mxu0 %v2985_v20  ;;  %v4787_v20 = vld [vmem:[#allocation13 + $0x1] ss:$0 sm:$0xff] }
0x12cf   : > { %4751 = vrot.lane.b32.xlu2 %v4750_v16, %s6712_s3  ;;  %v2979_v16 = vperm.slane %v6218_v54, 6  ;;  %s6805_s3 = smov 96  }
0x1322   : > { %v2735_v17 = vpop.xlane.xlu2 %2734 }
0x1323   : > { %4861 = vrcp.f32 %v2735_v17 }
0x1329   : > { %v4862_v21 = vpop.eup %4861 }
0x132a   : > { %v2745_v22 = vmul.f32 %v4862_v21, %v4854_v26  ;;  %v2738_v48 = vpop.xlane.xlu2 %2737  ;;  %v2984_v26 = vld [vmem:[#allocation17 + $0x8] sm:$0xff]  ;;  %v2981_v21 = vperm.slane %v6218_v54, 7 }
0x132b   : > { %4863 = vrcp.f32 %v2738_v48  ;;  %3008 = vmatpush.msra.mxu0 %v2984_v26 }
0x132c   : > { %2954 = vst.msk [vmem:[%s6280_s9 + $0x10] sm:$0xff] %vm1067_vm1, %v2745_v22  ;;  %v2732_v23 = vpop.xlane.xlu1 %2731 }
0x132d   : > { %4865 = vrcp.f32 %v2732_v23  ;;  %3009 = vmatpush.msra.mxu0 %v2983_v1  ;;  %v3017_v23 = vld [vmem:[%s6804_s12 + $0x10] sm:$0xff] }
0x1331   : > { %v4864_v25 = vpop.eup %4863 }
0x1332   : > { %v2746_v30 = vmul.f32 %v4864_v25, %v4856_v0  ;;  %v4752_v31 = vpop.permute.xlu2 %4751  ;;  %v3019_v0 = vld [vmem:[%s6804_s12 + $0x20] sm:$0xff]  ;;  %v3016_v25 = vld [vmem:[%s6804_s12 + $0x8] sm:$0xff] }
0x1333   : > { %v4866_v63 = vpop.eup %4865  ;;  %v4754_v15 = vunpack.i.h.bf16 %v4752_v31  ;;  %v4753_v32 = vunpack.i.l.bf16 %v4752_v31  ;;  %v4786_v31 = vld [vmem:[#allocation19] ss:$0 sm:$0xff] }
0x1334   : > { %2955 = vst.msk [vmem:[%s6280_s9 + $0x18] sm:$0xff] %vm1067_vm1, %v2746_v30  ;;  %v2744_v33 = vmul.f32 %v4866_v63, %v4858_v8  ;;  %v3018_v8 = vld [vmem:[%s6804_s12 + $0x18] sm:$0xff] }
0x1335   : > { %2820 = vmatpush.msrb.mxu2 %v4753_v32  ;;  %2846 = vmatpush.msrb.mxu3 %v4754_v15 }
0x1336   : > { %2953 = vst.msk [vmem:[%s6280_s9 + $0x8] sm:$0xff] %vm1067_vm1, %v2744_v33  ;;  %4485 = vmatmul.msk.f32.vlgmr.msrb.gmra.mxu1 %vm1067_vm1, %v2744_v33  ;;  %4486 = vmatmul.msk.f32.vlgmr.msrb.gmra.mxu2 %vm1067_vm1, %v2745_v22  ;;  %v3023_v33 = vperm.slane %v6218_v54, 3  ;;  %v4498_v54 = vld [vmem:[%s6797_s11 + $0x30] sm:$0xff] }
0x1337   : > { %4487 = vmatmul.msk.f32.vlgmr.msrb.gmra.mxu3 %vm1067_vm1, %v2746_v30  ;;  %2915 = vmatpush.msra.mxu2 %v2533_v36  ;;  %v3015_v30 = vld [vmem:[%s6804_s12] sm:$0xff] }
0x1338   : > { %2938 = vmatpush.msra.mxu3 %v2534_v37 }
0x1346   : > { %v2770_v34 = vpop.f32.mrf.mxu0 }
0x1347   : > { %4488 = vmatmul.msk.f32.vlgmr.msrb.gmra.mxu0 %vm1067_vm1, %v2770_v34 }
0x13b3   : > { %v2796_v38 = vpop.f32.mrf.mxu1 }
0x13b4   : > { %4489 = vmatmul.msk.f32.vlgmr.msra.gmra.mxu1 %vm1067_vm1, %v2796_v38 }
0x13b9   : > { %v2822_v39 = vpop.f32.mrf.mxu2 }
0x13ba   : > { %v2848_v40 = vpop.f32.mrf.mxu3  ;;  %4490 = vmatmul.msk.f32.vlgmr.msra.gmra.mxu2 %vm1067_vm1, %v2822_v39 }
0x13bb   : > { %4491 = vmatmul.msk.f32.vlgmr.msra.gmra.mxu3 %vm1067_vm1, %v2848_v40 }
0x13c4   : > { %v2871_v42 = vpop.f32.mrf.mxu0 }
0x13c5   : > { %v2943_v46 = vsel %vm1034_vm0, %v2871_v42, 0.0 }
0x1431   : > { %v2894_v41 = vpop.f32.mrf.mxu1 }
0x1432   : > { %v2944_v45 = vsel %vm1034_vm0, %v2894_v41, 0.0 }
0x1433   : > { %v2945_v47 = vadd.f32 %v2944_v45, %v2943_v46  ;;  %v4499_v45 = vld [vmem:[%s6797_s11 + $0x38] sm:$0xff]  ;;  %v4497_v46 = vld [vmem:[%s6797_s11 + $0x28] sm:$0xff] }
0x1434   : > { %3107 = vmatpush.msrb.mxu2 %v4499_v45 }
0x1436   : > { %3108 = vmatpush.msrb.mxu2 %v4498_v54 }
0x1438   : > { %3109 = vmatpush.msrb.mxu2 %v4497_v46 }
0x143d   : > { %v2917_v6 = vpop.f32.mrf.mxu2 }
0x143e   : > { %v2946_v4 = vsel %vm1034_vm0, %v2917_v6, 0.0  ;;  %v2940_v49 = vpop.f32.mrf.mxu3 }
0x143f   : > { %v2947_v50 = vadd.f32 %v2946_v4, %v2945_v47  ;;  %v2948_v51 = vsel %vm1034_vm0, %v2940_v49, 0.0  ;;  %v4496_v47 = vld [vmem:[%s6797_s11 + $0x20] sm:$0xff] }
0x1440   : > { %3110 = vmatpush.msrb.mxu2 %v4496_v47 }
0x1441   : > { %v2949_v55 = vadd.f32 %v2948_v51, %v2947_v50 }
0x1443   : > { %v2951_v56 = vadd.f32 %v2950_v27, %v2949_v55 }
0x1445   : > { %v2956_v57 = vadd.f32 %v2951_v56, %v6248_v24  ;;  %v3022_v24 = vld [vmem:[%s6804_s12 + $0x38] sm:$0xff]  ;;  %v2088_v56 = vld [vmem:[%s6803_s1 + $0x8] sm:$0x3] }
0x1446   : > { %3035 = vmatpush.msrb.mxu1 %v3022_v24 }
0x1447   : > { %v2957_v52 = vsel %vm1034_vm0, %v2956_v57, 0.0 }
0x1448   : > { %2958 = vadd.xlane.f32.xlu1 %v2957_v52  ;;  %3036 = vmatpush.msrb.mxu1 %v3021_v2 }
0x144a   : > { %3037 = vmatpush.msrb.mxu1 %v3020_v3 }
0x144c   : > { %3038 = vmatpush.msrb.mxu1 %v3019_v0 }
0x144e   : > { %3039 = vmatpush.msrb.mxu1 %v3018_v8 }
0x1450   : > { %3040 = vmatpush.msrb.mxu1 %v3017_v23 }
0x1452   : > { %3041 = vmatpush.msrb.mxu1 %v3016_v25 }
0x1454   : > { %3042 = vmatpush.msrb.mxu1 %v3015_v30 }
0x14bb   : > { %v2959_v58 = vpop.xlane.xlu1 %2958 }
0x14bc   : > { %v2960_v59 = vmul.f32 %v2959_v58, %v5867_v44  ;;  %v3070_v58 = vperm.slane %v2088_v56, 0 }
0x14be   : > { %v2961_v60 = vsub.f32 %v2956_v57, %v2960_v59 }
0x14c0   : > { %v2962_v28 = vmul.f32 %v2961_v60, %v2961_v60 }
0x14c2   : > { %v2963_v29 = vsel %vm1034_vm0, %v2962_v28, 0.0  ;;  %v3072_v28 = vperm.slane %v2088_v56, 1 }
0x14c3   : > { %2964 = vadd.xlane.f32.xlu2 %v2963_v29 }
0x1536   : > { %v2965_v5 = vpop.xlane.xlu2 %2964 }
0x1537   : > { %v2966_v62 = vmul.f32 %v2965_v5, %v5867_v44 }
0x1539   : > { %v2967_v7 = vadd.f32 1e-05, %v2966_v62 }
0x153b   : > { %4867 = vrsqrt.f32 %v2967_v7  ;;  %vm2974_vm11 = vweird.f32 %v2967_v7 }
0x1541   : > { %v4868_v9 = vpop.eup %4867 }
0x1542   : > { %v2969_v10 = vmul.f32 %v4868_v9, %v2967_v7  ;;  %vm2975_vm10 = vweird.f32 %v4868_v9 }
0x1543   : > { %vm2976_vm12 = vmor %vm2974_vm11, %vm2975_vm10 }
0x1544   : > { %v2970_v11 = vmul.f32 %v4868_v9, %v2969_v10 }
0x1546   : > { %v2971_v12 = vmul.f32 0.5, %v2970_v11 }
0x1548   : > { %v2972_v13 = vsub.f32 1.5, %v2971_v12 }
0x154a   : > { %v2973_v14 = vmul.f32 %v4868_v9, %v2972_v13 }
0x154c   : > { %v2977_v17 = vsel %vm2976_vm12, %v4868_v9, %v2973_v14 }
0x154d   : > { %v2978_v19 = vmul.f32 %v2977_v17, %v2961_v60 }
0x154f   : > { %v2980_v22 = vmul.f32 %v2979_v16, %v2978_v19 }
0x1551   : > { %v2982_v48 = vadd.f32 %v2981_v21, %v2980_v22 }
0x1553   : > { %4492 = vmatmul.msk.f32.vlgmr.msra.gmra.mxu0 %vm1034_vm0, %v2982_v48 }
0x15d0   : > { %v3011_v63 = vpop.f32.mrf.mxu0 }
0x15d1   : > { %v3012_v15 = vadd.f32 %v4786_v31, %v3011_v63 }
0x15d3   : > { %v3014_v32 = vmax.f32 %v3012_v15, 0.0 }
0x15d5   : > { %4493 = vmatmul.msk.f32.vlgmr.msrb.gmra.mxu1 %vm1506_vm8, %v3014_v32 }
0x1652   : > { %v3044_v34 = vpop.f32.mrf.mxu1 }
0x1653   : > { %v3045_v35 = vadd.f32 %v3044_v34, %v3023_v33 }
0x1655   : > { %v3047_v36 = vadd.f32 %v3045_v35, %v2982_v48 }
0x1657   : > { %v3048_v37 = vsel %vm1034_vm0, %v3047_v36, 0.0 }
0x1658   : > { %3049 = vadd.xlane.f32.xlu1 %v3048_v37 }
0x16cb   : > { %v3050_v38 = vpop.xlane.xlu1 %3049 }
0x16cc   : > { %v3051_v39 = vmul.f32 %v3050_v38, %v5867_v44 }
0x16ce   : > { %v3052_v40 = vsub.f32 %v3047_v36, %v3051_v39 }
0x16d0   : > { %v3053_v41 = vmul.f32 %v3052_v40, %v3052_v40 }
0x16d2   : > { %v3054_v42 = vsel %vm1034_vm0, %v3053_v41, 0.0 }
0x16d3   : > { %3055 = vadd.xlane.f32.xlu1 %v3054_v42 }
0x1746   : > { %v3056_v6 = vpop.xlane.xlu1 %3055 }
0x1747   : > { %v3057_v4 = vmul.f32 %v3056_v6, %v5867_v44 }
0x1749   : > { %v3058_v49 = vadd.f32 1e-05, %v3057_v4 }
0x174b   : > { %4869 = vrsqrt.f32 %v3058_v49  ;;  %vm3065_vm14 = vweird.f32 %v3058_v49 }
0x1751   : > { %v4870_v50 = vpop.eup %4869 }
0x1752   : > { %v3060_v27 = vmul.f32 %v4870_v50, %v3058_v49  ;;  %vm3066_vm13 = vweird.f32 %v4870_v50 }
0x1753   : > { %vm3067_vm2 = vmor %vm3065_vm14, %vm3066_vm13 }
0x1754   : > { %v3061_v51 = vmul.f32 %v4870_v50, %v3060_v27 }
0x1756   : > { %v3062_v55 = vmul.f32 0.5, %v3061_v51 }
0x1758   : > { %v3063_v57 = vsub.f32 1.5, %v3062_v55 }
0x175a   : > { %v3064_v52 = vmul.f32 %v4870_v50, %v3063_v57 }
0x175c   : > { %v3068_v59 = vsel %vm3067_vm2, %v4870_v50, %v3064_v52 }
0x175d   : > { %v3069_v60 = vmul.f32 %v3068_v59, %v3052_v40 }
0x175f   : > { %v3071_v29 = vmul.f32 %v3070_v58, %v3069_v60 }
0x1761   : > { %v6359_v61 = vadd.f32 %v3072_v28, %v3071_v29 }
0x1763   : > { %4504 = vmatmul.msk.f32.vlgmr.msrb.gmra.mxu2 %vm1034_vm0, %v6359_v61 }
0x17e6   : > { %v3112_v26 = vpop.f32.mrf.mxu2 }
0x17e7   : > { %v3113_v1 = vadd.f32 %v4787_v20, %v3112_v26  ;;  %v4500_v26 = vld [vmem:[%s6799_s13 + $0x20] sm:$0xff] }
0x17e9   : > { %3120 = vrot.lane.b32.xlu1 %v3113_v1, %s6714_s25  ;;  %3118 = vrot.lane.b32.xlu0 %v3113_v1, %s6718_s20  ;;  %s6807_s25 = smov 112   ;;  %s6809_s20 = smov 104  }
0x17f1   : > { %3116 = vrot.lane.b32.xlu0 %v3113_v1, %s6716_s4  ;;  %s6808_s4 = smov 120  }
0x17f9   : > { %3122 = vrot.lane.b32.xlu0 %v3113_v1, %s6805_s3 }
0x185b   : > { %v6367_v24 = vpop.permute.xlu1 %3120  ;;  %v6369_v2 = vpop.permute.xlu0 %3118 }
0x185c   : > { %3200 = vrot.lane.b32.xlu0 %v6367_v24, %s6805_s3  ;;  %3174 = vrot.lane.b32.xlu2 %v6369_v2, %s6805_s3  ;;  %v4760_v47 = vpack.i.bf16 %v6367_v24, %v6369_v2 }
0x1863   : > { %v3117_v3 = vpop.permute.xlu0 %3116 }
0x1864   : > { %3148 = vrot.lane.b32.xlu1 %v3117_v3, %s6805_s3  ;;  %v4765_v34 = vpack.i.bf16 %v3117_v3, %v3113_v1 }
0x186b   : > { %v3123_v5 = vpop.permute.xlu0 %3122 }
0x186c   : > { %4505 = vmatpush.xpose.msk.msrb.mxu3 %vm1067_vm1, %v3123_v5 }
0x186f   : > { %4506 = vmatmul.msk.f32.vlgmr.msrb.gmra.mxu3 %vm1067_vm1, %v3113_v1 }
0x18b6   : > { %v3175_v62 = vpop.permute.xlu2 %3174 }
0x18b7   : > { %4509 = vmatpush.xpose.msk.msra.mxu2 %vm1067_vm1, %v3175_v62 }
0x18ba   : > { %4510 = vmatmul.msk.f32.vlgmr.msra.gmra.mxu2 %vm1067_vm1, %v6369_v2 }
0x18ce   : > { %v3201_v0 = vpop.permute.xlu0 %3200 }
0x18cf   : > { %4511 = vmatpush.xpose.msk.msra.mxu3 %vm1067_vm1, %v3201_v0  ;;  %v4502_v0 = vld [vmem:[%s6799_s13 + $0x30] sm:$0xff] }
0x18d2   : > { %4512 = vmatmul.msk.f32.vlgmr.msra.gmra.mxu3 %vm1067_vm1, %v6367_v24 }
0x18d6   : > { %v3149_v7 = vpop.permute.xlu1 %3148 }
0x18d7   : > { %4507 = vmatpush.xpose.msk.msrb.mxu0 %vm1067_vm1, %v3149_v7  ;;  %v4503_v7 = vld [vmem:[%s6799_s13 + $0x38] sm:$0xff] }
0x18da   : > { %4508 = vmatmul.msk.f32.vlgmr.msrb.gmra.mxu0 %vm1067_vm1, %v3117_v3 }
0x18f2   : > { %v3145_v8 = vpop.f32.mrf.mxu3 }
0x18f3   : > { %v3226_v9 = vmul.f32 0.35355338, %v3145_v8  ;;  %v4501_v8 = vld [vmem:[%s6799_s13 + $0x28] sm:$0xff] }
0x18f5   : > { %v3230_v10 = vsel %vm2239_vm15, %v3226_v9, -1e+09  ;;  %v4528_v9 = vld [vmem:[%s6801_s24 + $0x38] sm:$0xff] }
0x18f6   : > { %v3234_v11 = vsel %vm1067_vm1, %v3230_v10, -inf }
0x18f7   : > { %3235 = vmax.xlane.f32.xlu2 %v3234_v11  ;;  %v4526_v11 = vld [vmem:[%s6801_s24 + $0x28] sm:$0xff] }
0x193d   : > { %v3197_v12 = vpop.f32.mrf.mxu2 }
0x193e   : > { %v3228_v13 = vmul.f32 0.35355338, %v3197_v12  ;;  %v4525_v12 = vld [vmem:[%s6801_s24 + $0x20] sm:$0xff] }
0x1940   : > { %v3232_v14 = vsel %vm2239_vm15, %v3228_v13, -1e+09 }
0x1941   : > { %v3240_v16 = vsel %vm1067_vm1, %v3232_v14, -inf }
0x1942   : > { %3241 = vmax.xlane.f32.xlu0 %v3240_v16 }
0x1955   : > { %v3223_v17 = vpop.f32.mrf.mxu3 }
0x1956   : > { %v3229_v19 = vmul.f32 0.35355338, %v3223_v17  ;;  %v4524_v17 = vld [vmem:[%s6802_s0 + $0x38] sm:$0xff] }
0x1957   : > { %v3171_v21 = vpop.f32.mrf.mxu0 }
0x1958   : > { %v3227_v22 = vmul.f32 0.35355338, %v3171_v21  ;;  %v3233_v48 = vsel %vm2239_vm15, %v3229_v19, -1e+09  ;;  %v4523_v19 = vld [vmem:[%s6802_s0 + $0x30] sm:$0xff]  ;;  %v4522_v21 = vld [vmem:[%s6802_s0 + $0x28] sm:$0xff] }
0x1959   : > { %v3243_v23 = vsel %vm1067_vm1, %v3233_v48, -inf }
0x195a   : > { %3244 = vmax.xlane.f32.xlu1 %v3243_v23  ;;  %v3231_v25 = vsel %vm2239_vm15, %v3227_v22, -1e+09  ;;  %v4521_v22 = vld [vmem:[%s6802_s0 + $0x20] sm:$0xff] }
0x195b   : > { %v3237_v30 = vsel %vm1067_vm1, %v3231_v25, -inf }
0x195c   : > { %3238 = vmax.xlane.f32.xlu0 %v3237_v30 }
0x196a   : > { %v3236_v31 = vpop.xlane.xlu2 %3235 }
0x196b   : > { %v3246_v63 = vsub.f32 %v3230_v10, %v3236_v31  ;;  %v4527_v10 = vld [vmem:[%s6801_s24 + $0x30] sm:$0xff] }
0x196c   : > { %v6457_v31 = vld [vmem:[%s6803_s1 + $0x10] sm:$0xff] }
0x196d   : > { %v3250_v15 = vmul.f32 1.442695, %v3246_v63 }
0x196f   : > { %4871 = vpow2.f32 %v3250_v15 }
0x1975   : > { %v4872_v32 = vpop.eup %4871 }
0x1976   : > { %v3258_v33 = vsel %vm1067_vm1, %v4872_v32, 0.0 }
0x1977   : > { %3259 = vadd.xlane.f32.xlu2 %v3258_v33 }
0x198f   : > { %4766 = vrot.lane.b32.xlu2 %v4765_v34, %s6806_s7  ;;  %v3481_v34 = vperm.slane %v6457_v31, 0 }
0x19b5   : > { %v3242_v35 = vpop.xlane.xlu0 %3241 }
0x19b6   : > { %v3248_v36 = vsub.f32 %v3232_v14, %v3242_v35 }
0x19b8   : > { %v3254_v37 = vmul.f32 1.442695, %v3248_v36  ;;  %v4788_v36 = vld [vmem:[#allocation14 + $0x1] ss:$0 sm:$0xff] }
0x19ba   : > { %4873 = vpow2.f32 %v3254_v37 }
0x19c0   : > { %v4874_v53 = vpop.eup %4873 }
0x19c1   : > { %v3264_v38 = vsel %vm1067_vm1, %v4874_v53, 0.0 }
0x19c2   : > { %3265 = vadd.xlane.f32.xlu1 %v3264_v38 }
0x19cd   : > { %v3245_v39 = vpop.xlane.xlu1 %3244 }
0x19ce   : > { %v3249_v40 = vsub.f32 %v3233_v48, %v3245_v39 }
0x19cf   : > { %v3239_v41 = vpop.xlane.xlu0 %3238 }
0x19d0   : > { %v3256_v42 = vmul.f32 1.442695, %v3249_v40  ;;  %v3247_v45 = vsub.f32 %v3231_v25, %v3239_v41 }
0x19d2   : > { %4875 = vpow2.f32 %v3256_v42  ;;  %v3252_v54 = vmul.f32 1.442695, %v3247_v45 }
0x19d4   : > { %4877 = vpow2.f32 %v3252_v54 }
0x19d8   : > { %v4876_v46 = vpop.eup %4875 }
0x19d9   : > { %v3267_v6 = vsel %vm1067_vm1, %v4876_v46, 0.0 }
0x19da   : > { %3268 = vadd.xlane.f32.xlu0 %v3267_v6  ;;  %v4878_v4 = vpop.eup %4877 }
0x19db   : > { %4761 = vrot.lane.b32.xlu1 %v4760_v47, %s6806_s7  ;;  %v3261_v49 = vsel %vm1067_vm1, %v4878_v4, 0.0 }
0x19e2   : > { %3262 = vadd.xlane.f32.xlu0 %v3261_v49 }
0x19ea   : > { %v3260_v50 = vpop.xlane.xlu2 %3259 }
0x19eb   : > { %4879 = vrcp.f32 %v3260_v50 }
0x19f1   : > { %v4880_v27 = vpop.eup %4879 }
0x19f2   : > { %v4767_v51 = vpop.permute.xlu2 %4766  ;;  %v3274_v57 = vmul.f32 %v4880_v27, %v4872_v32 }
0x19f3   : > { %v4769_v55 = vunpack.i.h.bf16 %v4767_v51  ;;  %v4768_v56 = vunpack.i.l.bf16 %v4767_v51 }
0x19f5   : > { %3299 = vmatpush.msra.mxu0 %v4768_v56  ;;  %3325 = vmatpush.msra.mxu1 %v4769_v55 }
0x19f6   : > { %4513 = vmatmul.msk.f32.vlgmr.msra.gmra.mxu0 %vm1067_vm1, %v3274_v57 }
0x19f7   : > { %3400 = vmatpush.msrb.mxu0 %v4500_v26  ;;  %3423 = vmatpush.msrb.mxu1 %v4501_v8 }
0x19f9   : > { %3543 = vmatpush.msra.mxu0 %v4524_v17 }
0x19fb   : > { %3544 = vmatpush.msra.mxu0 %v4523_v19 }
0x19fd   : > { %3545 = vmatpush.msra.mxu0 %v4522_v21 }
0x19ff   : > { %3546 = vmatpush.msra.mxu0 %v4521_v22 }
0x1a35   : > { %v3266_v52 = vpop.xlane.xlu1 %3265 }
0x1a36   : > { %4881 = vrcp.f32 %v3266_v52 }
0x1a3c   : > { %v4882_v58 = vpop.eup %4881 }
0x1a3d   : > { %v3276_v20 = vmul.f32 %v4882_v58, %v4874_v53 }
0x1a4d   : > { %v4762_v59 = vpop.permute.xlu1 %4761  ;;  %v3269_v60 = vpop.xlane.xlu0 %3268 }
0x1a4e   : > { %v4764_v28 = vunpack.i.h.bf16 %v4762_v59  ;;  %v4763_v29 = vunpack.i.l.bf16 %v4762_v59  ;;  %4883 = vrcp.f32 %v3269_v60  ;;  %v3506_v59 = vperm.slane %v6457_v31, 4 }
0x1a50   : > { %3351 = vmatpush.msrb.mxu2 %v4763_v29  ;;  %3377 = vmatpush.msrb.mxu3 %v4764_v28  ;;  %v3508_v29 = vperm.slane %v6457_v31, 5 }
0x1a51   : > { %4515 = vmatmul.msk.f32.vlgmr.msrb.gmra.mxu2 %vm1067_vm1, %v3276_v20 }
0x1a52   : > { %3446 = vmatpush.msra.mxu2 %v4502_v0  ;;  %3469 = vmatpush.msra.mxu3 %v4503_v7 }
0x1a54   : > { %v4884_v1 = vpop.eup %4883 }
0x1a55   : > { %v3277_v24 = vmul.f32 %v4884_v1, %v4876_v46  ;;  %v3263_v2 = vpop.xlane.xlu0 %3262  ;;  %v3527_v1 = vperm.slane %v6457_v31, 1 }
0x1a56   : > { %4885 = vrcp.f32 %v3263_v2 }
0x1a57   : > { %4516 = vmatmul.msk.f32.vlgmr.msrb.gmra.mxu3 %vm1067_vm1, %v3277_v24 }
0x1a5c   : > { %v4886_v3 = vpop.eup %4885 }
0x1a5d   : > { %v3275_v5 = vmul.f32 %v4886_v3, %v4878_v4 }
0x1a5f   : > { %4514 = vmatmul.msk.f32.vlgmr.msra.gmra.mxu1 %vm1067_vm1, %v3275_v5 }
0x1a60   : > { %3566 = vmatpush.msra.mxu1 %v4528_v9 }
0x1a62   : > { %3567 = vmatpush.msra.mxu1 %v4527_v10 }
0x1a64   : > { %3568 = vmatpush.msra.mxu1 %v4526_v11 }
0x1a66   : > { %3569 = vmatpush.msra.mxu1 %v4525_v12 }
0x1a73   : > { %v3301_v62 = vpop.f32.mrf.mxu0 }
0x1a74   : > { %4517 = vmatmul.msk.f32.vlgmr.msrb.gmra.mxu0 %vm1067_vm1, %v3301_v62 }
0x1ad4   : > { %v3353_v13 = vpop.f32.mrf.mxu2 }
0x1ad5   : > { %4519 = vmatmul.msk.f32.vlgmr.msra.gmra.mxu2 %vm1067_vm1, %v3353_v13 }
0x1ada   : > { %v3379_v14 = vpop.f32.mrf.mxu3 }
0x1adb   : > { %4520 = vmatmul.msk.f32.vlgmr.msra.gmra.mxu3 %vm1067_vm1, %v3379_v14 }
0x1adc   : > { %v3327_v16 = vpop.f32.mrf.mxu1 }
0x1add   : > { %4518 = vmatmul.msk.f32.vlgmr.msrb.gmra.mxu1 %vm1067_vm1, %v3327_v16 }
0x1ae5   : > { %4530 = vmatmul.msk.f32.vlgmr.msra.gmra.mxu1 %vm1034_vm0, %v6197_v43 }
0x1af1   : > { %v3402_v43 = vpop.f32.mrf.mxu0 }
0x1af2   : > { %v3474_v25 = vsel %vm1034_vm0, %v3402_v43, 0.0 }
0x1b58   : > { %v3448_v48 = vpop.f32.mrf.mxu2 }
0x1b59   : > { %v3477_v15 = vsel %vm1034_vm0, %v3448_v48, 0.0 }
0x1b5a   : > { %v3425_v23 = vpop.f32.mrf.mxu1 }
0x1b5b   : > { %v3475_v30 = vsel %vm1034_vm0, %v3425_v23, 0.0 }
0x1b5c   : > { %v3476_v63 = vadd.f32 %v3475_v30, %v3474_v25 }
0x1b5e   : > { %v3471_v32 = vpop.f32.mrf.mxu3  ;;  %v3478_v33 = vadd.f32 %v3477_v15, %v3476_v63 }
0x1b5f   : > { %v3479_v35 = vsel %vm1034_vm0, %v3471_v32, 0.0 }
0x1b60   : > { %v3480_v37 = vadd.f32 %v3479_v35, %v3478_v33 }
0x1b62   : > { %v3482_v53 = vadd.f32 %v3481_v34, %v3480_v37  ;;  %v3571_v38 = vpop.f32.mrf.mxu1 }
0x1b63   : > { %v6462_v39 = vadd.f32 %v4788_v36, %v3571_v38 }
0x1b64   : > { %v3483_v40 = vadd.f32 %v3482_v53, %v6359_v61 }
0x1b65   : > { %3584 = vrot.lane.b32.xlu2 %v6462_v39, %s6807_s25  ;;  %3582 = vrot.lane.b32.xlu1 %v6462_v39, %s6808_s4 }
0x1b66   : > { %4531 = vmatpush.xpose.msk.msrb.mxu2 %vm1067_vm1, %v6462_v39  ;;  %v3484_v41 = vsel %vm1034_vm0, %v3483_v40, 0.0 }
0x1b67   : > { %3485 = vadd.xlane.f32.xlu0 %v3484_v41 }
0x1b6d   : > { %3586 = vrot.lane.b32.xlu1 %v6462_v39, %s6809_s20 }
0x1bbf   : > { %v6474_v42 = vpop.permute.xlu2 %3584 }
0x1bc0   : > { %4535 = vmatpush.xpose.msk.msrb.mxu0 %vm1067_vm1, %v6474_v42 }
0x1bd7   : > { %v6478_v61 = vpop.permute.xlu1 %3582 }
0x1bd8   : > { %4533 = vmatpush.xpose.msk.msrb.mxu3 %vm1067_vm1, %v6478_v61  ;;  %v4770_v15 = vpack.i.bf16 %v6478_v61, %v6462_v39 }
0x1bda   : > { %v3486_v45 = vpop.xlane.xlu0 %3485 }
0x1bdb   : > { %v3487_v54 = vmul.f32 %v3486_v45, %v5867_v44 }
0x1bdd   : > { %v3488_v46 = vsub.f32 %v3483_v40, %v3487_v54 }
0x1bdf   : > { %v6483_v47 = vpop.permute.xlu1 %3586  ;;  %v3489_v6 = vmul.f32 %v3488_v46, %v3488_v46 }
0x1be0   : > { %4537 = vmatpush.xpose.msk.msrb.mxu1 %vm1067_vm1, %v6483_v47  ;;  %v4775_v39 = vpack.i.bf16 %v6483_v47, %v6474_v42 }
0x1be1   : > { %v3490_v4 = vsel %vm1034_vm0, %v3489_v6, 0.0 }
0x1be2   : > { %3491 = vadd.xlane.f32.xlu0 %v3490_v4 }
0x1c55   : > { %v3492_v49 = vpop.xlane.xlu0 %3491 }
0x1c56   : > { %v3493_v50 = vmul.f32 %v3492_v49, %v5867_v44 }
0x1c58   : > { %v3494_v27 = vadd.f32 1e-05, %v3493_v50 }
0x1c5a   : > { %4887 = vrsqrt.f32 %v3494_v27  ;;  %vm3501_vm4 = vweird.f32 %v3494_v27 }
0x1c60   : > { %v4888_v51 = vpop.eup %4887 }
0x1c61   : > { %v3496_v55 = vmul.f32 %v4888_v51, %v3494_v27  ;;  %vm3502_vm15 = vweird.f32 %v4888_v51 }
0x1c62   : > { %vm3503_vm5 = vmor %vm3501_vm4, %vm3502_vm15 }
0x1c63   : > { %v3497_v56 = vmul.f32 %v4888_v51, %v3496_v55 }
0x1c65   : > { %v3498_v57 = vmul.f32 0.5, %v3497_v56 }
0x1c67   : > { %v3499_v52 = vsub.f32 1.5, %v3498_v57 }
0x1c69   : > { %v3500_v58 = vmul.f32 %v4888_v51, %v3499_v52 }
0x1c6b   : > { %v3504_v60 = vsel %vm3503_vm5, %v4888_v51, %v3500_v58 }
0x1c6c   : > { %v3505_v28 = vmul.f32 %v3504_v60, %v3488_v46 }
0x1c6e   : > { %v3507_v20 = vmul.f32 %v3506_v59, %v3505_v28  ;;  %v3523_v59 = vld [vmem:[#allocation16 + $0x20] sm:$0xff] }
0x1c70   : > { %v6491_v26 = vadd.f32 %v3508_v29, %v3507_v20 }
0x1c72   : > { %4529 = vmatmul.msk.f32.vlgmr.msra.gmra.mxu0 %vm1034_vm0, %v6491_v26 }
0x1cef   : > { %v3548_v24 = vpop.f32.mrf.mxu0 }
0x1cf0   : > { %v3549_v2 = vadd.f32 %v3548_v24, %v3527_v1 }
0x1cf2   : > { %3579 = vrot.lane.b32.xlu1 %v3549_v2, %s6809_s20  ;;  %3577 = vrot.lane.b32.xlu2 %v3549_v2, %s6807_s25  ;;  %s6811_s25 = smov %s6810_s6 }
0x1cf3   : > { %3575 = vrot.lane.b32.xlu0 %v3549_v2, %s6808_s4  ;;  %4532 = vmatmul.msk.f32.vlgmr.msrb.gmra.mxu2 %vm1067_vm1, %v3549_v2 }
0x1d4c   : > { %v3578_v3 = vpop.permute.xlu2 %3577 }
0x1d4d   : > { %4536 = vmatmul.msk.f32.vlgmr.msrb.gmra.mxu0 %vm1067_vm1, %v3578_v3  ;;  %v3525_v3 = vld [vmem:[#allocation16 + $0x30] sm:$0xff] }
0x1d64   : > { %v3580_v5 = vpop.permute.xlu1 %3579 }
0x1d65   : > { %v3576_v62 = vpop.permute.xlu0 %3575  ;;  %4538 = vmatmul.msk.f32.vlgmr.msrb.gmra.mxu1 %vm1067_vm1, %v3580_v5 }
0x1d66   : > { %4534 = vmatmul.msk.f32.vlgmr.msrb.gmra.mxu3 %vm1067_vm1, %v3576_v62  ;;  %v3524_v62 = vld [vmem:[#allocation16 + $0x28] sm:$0xff] }
0x1d76   : > { %v3609_v0 = vpop.f32.mrf.mxu2 }
0x1d77   : > { %v3684_v7 = vmul.f32 0.35355338, %v3609_v0  ;;  %v3526_v0 = vld [vmem:[#allocation16 + $0x38] sm:$0xff] }
0x1d79   : > { %v3688_v8 = vsel %vm5806_vm3, %v3684_v7, -1e+09 }
0x1d7a   : > { %v3692_v9 = vsel %vm1067_vm1, %v3688_v8, -inf }
0x1d7b   : > { %3693 = vmax.xlane.f32.xlu0 %v3692_v9 }
0x1dca   : > { %v3657_v10 = vpop.f32.mrf.mxu0 }
0x1dcb   : > { %v3686_v11 = vmul.f32 0.35355338, %v3657_v10 }
0x1dcd   : > { %v3690_v12 = vsel %vm5806_vm3, %v3686_v11, -1e+09 }
0x1dce   : > { %v3698_v13 = vsel %vm1067_vm1, %v3690_v12, -inf }
0x1dcf   : > { %3699 = vmax.xlane.f32.xlu1 %v3698_v13 }
0x1de2   : > { %v3681_v14 = vpop.f32.mrf.mxu1 }
0x1de3   : > { %v3687_v16 = vmul.f32 0.35355338, %v3681_v14 }
0x1de5   : > { %v3691_v17 = vsel %vm5806_vm3, %v3687_v16, -1e+09 }
0x1de6   : > { %v3701_v19 = vsel %vm1067_vm1, %v3691_v17, -inf }
0x1de7   : > { %3702 = vmax.xlane.f32.xlu0 %v3701_v19 }
0x1de9   : > { %v3633_v21 = vpop.f32.mrf.mxu3 }
0x1dea   : > { %v3685_v22 = vmul.f32 0.35355338, %v3633_v21  ;;  %v3939_v21 = vperm.slane %v6457_v31, 2 }
0x1dec   : > { %v3689_v43 = vsel %vm5806_vm3, %v3685_v22, -1e+09 }
0x1ded   : > { %v3695_v48 = vsel %vm1067_vm1, %v3689_v43, -inf }
0x1dee   : > { %3696 = vmax.xlane.f32.xlu2 %v3695_v48  ;;  %v3694_v23 = vpop.xlane.xlu0 %3693 }
0x1def   : > { %v3704_v25 = vsub.f32 %v3688_v8, %v3694_v23 }
0x1df1   : > { %v3708_v30 = vmul.f32 1.442695, %v3704_v25 }
0x1df3   : > { %4889 = vpow2.f32 %v3708_v30 }
0x1df9   : > { %v4890_v63 = vpop.eup %4889 }
0x1dfa   : > { %v3716_v32 = vsel %vm1067_vm1, %v4890_v63, 0.0 }
0x1dfb   : > { %3717 = vadd.xlane.f32.xlu2 %v3716_v32  ;;  %4771 = vrot.lane.b32.xlu0 %v4770_v15, %s6805_s3 }
0x1e42   : > { %v3700_v33 = vpop.xlane.xlu1 %3699 }
0x1e43   : > { %v3706_v34 = vsub.f32 %v3690_v12, %v3700_v33 }
0x1e45   : > { %v3712_v18 = vmul.f32 1.442695, %v3706_v34  ;;  %v3977_v34 = vld [vmem:[#allocation17 + $0x38] sm:$0xff] }
0x1e47   : > { %4891 = vpow2.f32 %v3712_v18  ;;  %v3976_v18 = vld [vmem:[#allocation17 + $0x30] sm:$0xff] }
0x1e4d   : > { %v4892_v35 = vpop.eup %4891 }
0x1e4e   : > { %v3722_v36 = vsel %vm1067_vm1, %v4892_v35, 0.0 }
0x1e4f   : > { %3723 = vadd.xlane.f32.xlu2 %v3722_v36  ;;  %v3974_v36 = vld [vmem:[#allocation17 + $0x20] sm:$0xff] }
0x1e5a   : > { %v3703_v37 = vpop.xlane.xlu0 %3702 }
0x1e5b   : > { %v3707_v40 = vsub.f32 %v3691_v17, %v3703_v37  ;;  %v4558_v37 = vld [vmem:[%s6804_s12 + $0x70] sm:$0xff] }
0x1e5d   : > { %v3714_v61 = vmul.f32 1.442695, %v3707_v40 }
0x1e61   : > { %v3697_v53 = vpop.xlane.xlu2 %3696 }
0x1e62   : > { %v3705_v38 = vsub.f32 %v3689_v43, %v3697_v53  ;;  %v4557_v53 = vld [vmem:[%s6804_s12 + $0x68] sm:$0xff] }
0x1e64   : > { %v3710_v41 = vmul.f32 1.442695, %v3705_v38 }
0x1e66   : > { %4893 = vpow2.f32 %v3710_v41  ;;  %v4556_v41 = vld [vmem:[%s6804_s12 + $0x60] sm:$0xff] }
0x1e67   : > { %4776 = vrot.lane.b32.xlu2 %v4775_v39, %s6805_s3  ;;  %4895 = vpow2.f32 %v3714_v61  ;;  %v4555_v61 = vld [vmem:[%s6804_s12 + $0x58] sm:$0xff]  ;;  %s6813_s3 = sld [smem:[#allocation62_spill]] }
0x1e6c   : > { %v4894_v45 = vpop.eup %4893 }
0x1e6d   : > { %v3719_v54 = vsel %vm1067_vm1, %v4894_v45, 0.0  ;;  %v4772_v46 = vpop.permute.xlu0 %4771  ;;  %v4896_v50 = vpop.eup %4895  ;;  %s5259_s10 = scalar_lea.hbm %s6813_s3, 128 }
0x1e6e   : > { %3720 = vadd.xlane.f32.xlu1 %v3719_v54  ;;  %v3718_v6 = vpop.xlane.xlu2 %3717  ;;  %v4774_v4 = vunpack.i.h.bf16 %v4772_v46  ;;  %v4773_v49 = vunpack.i.l.bf16 %v4772_v46  ;;  %v3725_v47 = vsel %vm1067_vm1, %v4896_v50, 0.0 }
0x1e6f   : > { %4897 = vrcp.f32 %v3718_v6 }
0x1e70   : > { %3757 = vmatpush.msra.mxu2 %v4773_v49  ;;  %3783 = vmatpush.msra.mxu3 %v4774_v4 }
0x1e72   : > { %3858 = vmatpush.msrb.mxu2 %v3523_v59  ;;  %3881 = vmatpush.msrb.mxu3 %v3524_v62 }
0x1e75   : > { %v4898_v42 = vpop.eup %4897 }
0x1e76   : > { %v3732_v27 = vmul.f32 %v4898_v42, %v4890_v63  ;;  %3726 = vadd.xlane.f32.xlu1 %v3725_v47 }
0x1e78   : > { %4547 = vst.msk [vmem:[%s6280_s9 + $0x20] sm:$0xff] %vm1067_vm1, %v3732_v27  ;;  %4539 = vmatmul.msk.f32.vlgmr.msra.gmra.mxu2 %vm1067_vm1, %v3732_v27  ;;  %v3971_v27 = vperm.slane %v6457_v31, 7 }
0x1e79   : > { %3998 = vmatpush.msra.mxu2 %v3977_v34 }
0x1e7b   : > { %3999 = vmatpush.msra.mxu2 %v3976_v18 }
0x1ec2   : > { %v3724_v51 = vpop.xlane.xlu2 %3723 }
0x1ec3   : > { %4899 = vrcp.f32 %v3724_v51 }
0x1ec9   : > { %v4900_v55 = vpop.eup %4899 }
0x1eca   : > { %v3734_v56 = vmul.f32 %v4900_v55, %v4892_v35  ;;  %v4777_v57 = vpop.permute.xlu2 %4776  ;;  %v3975_v35 = vld [vmem:[#allocation17 + $0x28] sm:$0xff] }
0x1ecb   : > { %v4779_v52 = vunpack.i.h.bf16 %v4777_v57  ;;  %v4778_v58 = vunpack.i.l.bf16 %v4777_v57  ;;  %4000 = vmatpush.msra.mxu2 %v3975_v35  ;;  %v4553_v57 = vld [vmem:[%s6804_s12 + $0x48] sm:$0xff] }
0x1ecc   : > { %4549 = vst.msk [vmem:[%s6280_s9 + $0x30] sm:$0xff] %vm1067_vm1, %v3734_v56 }
0x1ecd   : > { %3809 = vmatpush.msra.mxu0 %v4778_v58  ;;  %3835 = vmatpush.msra.mxu1 %v4779_v52  ;;  %v4552_v52 = vld [vmem:[%s6804_s12 + $0x40] sm:$0xff]  ;;  %v4789_v58 = vld [vmem:[#allocation19 + $0x1] ss:$0 sm:$0xff] }
0x1ece   : > { %4541 = vmatmul.msk.f32.vlgmr.msra.gmra.mxu0 %vm1067_vm1, %v3734_v56  ;;  %4001 = vmatpush.msra.mxu2 %v3974_v36  ;;  %v4554_v56 = vld [vmem:[%s6804_s12 + $0x50] sm:$0xff] }
0x1ecf   : > { %3904 = vmatpush.msrb.mxu0 %v3525_v3  ;;  %3927 = vmatpush.msrb.mxu1 %v3526_v0 }
0x1ee1   : > { %v3721_v60 = vpop.xlane.xlu1 %3720 }
0x1ee2   : > { %4901 = vrcp.f32 %v3721_v60 }
0x1ee8   : > { %v4902_v28 = vpop.eup %4901 }
0x1ee9   : > { %v3733_v29 = vmul.f32 %v4902_v28, %v4894_v45  ;;  %v3727_v20 = vpop.xlane.xlu1 %3726 }
0x1eea   : > { %4903 = vrcp.f32 %v3727_v20 }
0x1eeb   : > { %4548 = vst.msk [vmem:[%s6280_s9 + $0x28] sm:$0xff] %vm1067_vm1, %v3733_v29  ;;  %4540 = vmatmul.msk.f32.vlgmr.msra.gmra.mxu3 %vm1067_vm1, %v3733_v29  ;;  %v4016_v29 = vperm.slane %v6457_v31, 3 }
0x1ef0   : > { %v4904_v1 = vpop.eup %4903 }
0x1ef1   : > { %v3735_v24 = vmul.f32 %v4904_v1, %v4896_v50  ;;  %v3969_v50 = vperm.slane %v6457_v31, 6  ;;  %v4069_v31 = vld [vmem:[%s6811_s25 + $0x10] sm:$0xff] }
0x1ef3   : > { %4550 = vst.msk [vmem:[%s6280_s9 + $0x38] sm:$0xff] %vm1067_vm1, %v3735_v24  ;;  %4542 = vmatmul.msk.f32.vlgmr.msra.gmra.mxu1 %vm1067_vm1, %v3735_v24 }
0x1efb   : > { %v3759_v2 = vpop.f32.mrf.mxu2 }
0x1efc   : > { %4543 = vmatmul.msk.f32.vlgmr.msrb.gmra.mxu2 %vm1067_vm1, %v3759_v2 }
0x1f4b   : > { %v3811_v5 = vpop.f32.mrf.mxu0 }
0x1f4c   : > { %4545 = vmatmul.msk.f32.vlgmr.msrb.gmra.mxu0 %vm1067_vm1, %v3811_v5 }
0x1f6e   : > { %v3785_v7 = vpop.f32.mrf.mxu3 }
0x1f6f   : > { %4544 = vmatmul.msk.f32.vlgmr.msrb.gmra.mxu3 %vm1067_vm1, %v3785_v7 }
0x1f70   : > { %v3837_v8 = vpop.f32.mrf.mxu1 }
0x1f71   : > { %4546 = vmatmul.msk.f32.vlgmr.msrb.gmra.mxu1 %vm1067_vm1, %v3837_v8  ;;  %v4070_v8 = vld [vmem:[%s6810_s6 + $0x18] sm:$0xff]  ;;  %s4569_s6 = sshll.u32 %s5537_s8, 6 }
0x1f72   : > { %4090 = vmatpush.msra.mxu0 %v4070_v8  ;;  %s4117_s7 = scalar_lea.hbm %s6813_s3, %s4569_s6 }
0x1f73   : > { %s4120_s29 = sshll.u32 %s4117_s7, 4  ;;  %s4121_s29 = int_to_ptr.hbm [resolvable:$true] %s4120_s29 }
0x1f74   : > { %4091 = vmatpush.msra.mxu0 %v4069_v31  ;;  %s5253_s23 = sshra.s32 %s4121_s29, 4  ;;  %s5254_s23 = int_to_ptr.hbm [resolvable:$true] %s5253_s23 }
0x1f75   : > { %s5255_s0 = scalar_lea.hbm %s5254_s23, 64  ;;  %p5260_p11 = scmp.lt.s32.totalorder %s5254_s23, %s6813_s3 }
0x1f76   : > { %p5256_p8 = scmp.ne.s32.totalorder %s5254_s23, %s5255_s0  ;;  %p5261_p3 = scmp.lt.s32.totalorder %s5259_s10, %s5255_s0 }
0x1f78   : > { %p5257_p10 = pnand %p5256_p8, %p5610_p4  ;;  %p5262_p7 = por %p5261_p3, %p5260_p11 }
0x1f7a   : > { %p5258_p6 = pneg %p5257_p10 }
0x1f7c   : > { %p5263_p9 = pnand %p5262_p7, %p5258_p6 }
0x1f7f   : > { %v3860_v9 = vpop.f32.mrf.mxu2 }
0x1f80   : > { %v3932_v12 = vsel %vm1034_vm0, %v3860_v9, 0.0  ;;  %v4068_v9 = vld [vmem:[%s6811_s25 + $0x8] sm:$0xff] }
0x1f81   : > { %4092 = vmatpush.msra.mxu0 %v4068_v9 }
0x1fc9   : > { %v3906_v10 = vpop.f32.mrf.mxu0 }
0x1fca   : > { %v3935_v17 = vsel %vm1034_vm0, %v3906_v10, 0.0  ;;  %v4067_v10 = vld [vmem:[%s6811_s25] sm:$0xff] }
0x1fcb   : > { %4093 = vmatpush.msra.mxu0 %v4067_v10 }
0x1fee   : > { %v3929_v14 = vpop.f32.mrf.mxu1 }
0x1fef   : > { %v3937_v22 = vsel %vm1034_vm0, %v3929_v14, 0.0 }
0x1ff2   : > { %v3883_v11 = vpop.f32.mrf.mxu3 }
0x1ff3   : > { %v3933_v13 = vsel %vm1034_vm0, %v3883_v11, 0.0 }
0x1ff4   : > { %v3934_v16 = vadd.f32 %v3933_v13, %v3932_v12 }
0x1ff6   : > { %v3936_v19 = vadd.f32 %v3935_v17, %v3934_v16 }
0x1ff8   : > { %v3938_v43 = vadd.f32 %v3937_v22, %v3936_v19 }
0x1ffa   : > { %v3940_v48 = vadd.f32 %v3939_v21, %v3938_v43  ;;  %v4495_v21 = vld [vmem:[%s6803_s1 + $0x18] sm:$0x3] }
0x1ffc   : > { %v3946_v23 = vadd.f32 %v3940_v48, %v6491_v26  ;;  %v4559_v26 = vld [vmem:[%s6804_s12 + $0x78] sm:$0xff]  ;;  %v4063_v48 = vperm.slane %v4495_v21, 0 }
0x1ffd   : > { %4028 = vmatpush.msra.mxu3 %v4559_v26 }
0x1ffe   : > { %v3947_v25 = vsel %vm1034_vm0, %v3946_v23, 0.0 }
0x1fff   : > { %3948 = vadd.xlane.f32.xlu1 %v3947_v25  ;;  %4029 = vmatpush.msra.mxu3 %v4558_v37  ;;  %v4065_v25 = vperm.slane %v4495_v21, 1 }
0x2001   : > { %4030 = vmatpush.msra.mxu3 %v4557_v53 }
0x2003   : > { %4031 = vmatpush.msra.mxu3 %v4556_v41 }
0x2005   : > { %4032 = vmatpush.msra.mxu3 %v4555_v61 }
0x2007   : > { %4033 = vmatpush.msra.mxu3 %v4554_v56 }
0x2009   : > { %4034 = vmatpush.msra.mxu3 %v4553_v57 }
0x200b   : > { %4035 = vmatpush.msra.mxu3 %v4552_v52 }
0x2072   : > { %v3949_v30 = vpop.xlane.xlu1 %3948 }
0x2073   : > { %v3950_v63 = vmul.f32 %v3949_v30, %v5867_v44 }
0x2075   : > { %v3951_v15 = vsub.f32 %v3946_v23, %v3950_v63 }
0x2077   : > { %v3952_v32 = vmul.f32 %v3951_v15, %v3951_v15 }
0x2079   : > { %v3953_v33 = vsel %vm1034_vm0, %v3952_v32, 0.0 }
0x207a   : > { %3954 = vadd.xlane.f32.xlu1 %v3953_v33 }
0x20ed   : > { %v3955_v38 = vpop.xlane.xlu1 %3954 }
0x20ee   : > { %v3956_v40 = vmul.f32 %v3955_v38, %v5867_v44 }
0x20f0   : > { %v3957_v39 = vadd.f32 1e-05, %v3956_v40 }
0x20f2   : > { %4905 = vrsqrt.f32 %v3957_v39  ;;  %vm3964_vm3 = vweird.f32 %v3957_v39 }
0x20f8   : > { %v4906_v45 = vpop.eup %4905 }
0x20f9   : > { %v3959_v54 = vmul.f32 %v4906_v45, %v3957_v39  ;;  %vm3965_vm1 = vweird.f32 %v4906_v45 }
0x20fa   : > { %vm3966_vm6 = vmor %vm3964_vm3, %vm3965_vm1 }
0x20fb   : > { %v3960_v46 = vmul.f32 %v4906_v45, %v3959_v54 }
0x20fd   : > { %v3961_v6 = vmul.f32 0.5, %v3960_v46 }
0x20ff   : > { %v3962_v4 = vsub.f32 1.5, %v3961_v6 }
0x2101   : > { %v3963_v49 = vmul.f32 %v4906_v45, %v3962_v4 }
0x2103   : > { %v3967_v42 = vsel %vm3966_vm6, %v4906_v45, %v3963_v49 }
0x2104   : > { %v3968_v47 = vmul.f32 %v3967_v42, %v3951_v15 }
0x2106   : > { %v3970_v51 = vmul.f32 %v3969_v50, %v3968_v47 }
0x2108   : > { %v3972_v55 = vadd.f32 %v3971_v27, %v3970_v51 }
0x210a   : > { %4551 = vmatmul.msk.f32.vlgmr.msra.gmra.mxu2 %vm1034_vm0, %v3972_v55 }
0x218d   : > { %v4003_v59 = vpop.f32.mrf.mxu2 }
0x218e   : > { %v4004_v60 = vadd.f32 %v4789_v58, %v4003_v59 }
0x2190   : > { %v4006_v28 = vmax.f32 %v4004_v60, 0.0 }
0x2192   : > { %4560 = vmatmul.msk.f32.vlgmr.msra.gmra.mxu3 %vm1506_vm8, %v4006_v28 }
0x2215   : > { %v4037_v20 = vpop.f32.mrf.mxu3 }
0x2216   : > { %v4038_v1 = vadd.f32 %v4037_v20, %v4016_v29 }
0x2218   : > { %v4040_v24 = vadd.f32 %v4038_v1, %v3972_v55 }
0x221a   : > { %v4041_v2 = vsel %vm1034_vm0, %v4040_v24, 0.0 }
0x221b   : > { %4042 = vadd.xlane.f32.xlu0 %v4041_v2 }
0x228e   : > { %v4043_v3 = vpop.xlane.xlu0 %4042 }
0x228f   : > { %v4044_v5 = vmul.f32 %v4043_v3, %v5867_v44 }
0x2291   : > { %v4045_v62 = vsub.f32 %v4040_v24, %v4044_v5 }
0x2293   : > { %v4046_v0 = vmul.f32 %v4045_v62, %v4045_v62 }
0x2295   : > { %v4047_v7 = vsel %vm1034_vm0, %v4046_v0, 0.0 }
0x2296   : > { %4048 = vadd.xlane.f32.xlu1 %v4047_v7 }
0x2309   : > { %v4049_v11 = vpop.xlane.xlu1 %4048 }
0x230a   : > { %v4050_v12 = vmul.f32 %v4049_v11, %v5867_v44 }
0x230c   : > { %v4051_v13 = vadd.f32 1e-05, %v4050_v12 }
0x230e   : > { %4907 = vrsqrt.f32 %v4051_v13  ;;  %vm4058_vm7 = vweird.f32 %v4051_v13 }
0x2314   : > { %v4908_v14 = vpop.eup %4907 }
0x2315   : > { %v4053_v16 = vmul.f32 %v4908_v14, %v4051_v13  ;;  %vm4059_vm8 = vweird.f32 %v4908_v14 }
0x2316   : > { %vm4060_vm9 = vmor %vm4058_vm7, %vm4059_vm8 }
0x2317   : > { %v4054_v17 = vmul.f32 %v4908_v14, %v4053_v16 }
0x2319   : > { %v4055_v19 = vmul.f32 0.5, %v4054_v17 }
0x231b   : > { %v4056_v22 = vsub.f32 1.5, %v4055_v19 }
0x231d   : > { %v4057_v43 = vmul.f32 %v4908_v14, %v4056_v22 }
0x231f   : > { %v4061_v44 = vsel %vm4060_vm9, %v4908_v14, %v4057_v43 }
0x2320   : > { %v4062_v23 = vmul.f32 %v4061_v44, %v4045_v62 }
0x2322   : > { %v4064_v30 = vmul.f32 %v4063_v48, %v4062_v23 }
0x2324   : > { %v4066_v63 = vadd.f32 %v4065_v25, %v4064_v30 }
0x2326   : > { %4561 = vmatmul.msk.f32.vlgmr.msra.gmra.mxu0 %vm1034_vm0, %v4066_v63 }
0x2327   : > { %5266 = shalt.err (!%p5263_p9)
}
0x2328   : > { %s5381_s9 = smov 128   ;;  %s5382_s20 = smov 8   ;;  %vm4098_vm0 = vcmask 818176  }
0x2329   : > { %4606 = dma.vmem_to_hbm [thread:$0]  (%p5610_p4), %s4119_s17, 1024, %s4121_s29, %s4101_s16, %s5381_s9, %s5381_s9, %s5382_s20  }
0x232a   : > { %s4566_s7 = sshll.u32 %s5537_s8, 3  ;;  %s6814_s1 = sld [smem:[#allocation63_spill]] }
0x232b   : > { %s6815_s23 = sld [smem:[#allocation61_spill]]  ;;  %s1017_s10 = scalar_lea.vmem [#allocation21], %s5734_s19 }
0x232c   : > { %s4135_s0 = sshll.u32 %s1017_s10, 4  ;;  %s4106_s17 = scalar_lea.sflag [#allocation22], %s5731_s15  ;;  %s4136_s0 = int_to_ptr.vmem [resolvable:$true] %s4135_s0 }
0x2330   : > { %s4133_s12 = scalar_lea.hbm %s6814_s1, %s4566_s7  ;;  %s5287_s19 = scalar_lea.hbm %s6814_s1, 16 }
0x2331   : > { %v4790_v15 = vld [vmem:[%s6815_s23] ss:$0 sm:$0xff]  ;;  %s4137_s6 = sshll.u32 %s4133_s12, 4  ;;  %s4138_s6 = int_to_ptr.hbm [resolvable:$true] %s4137_s6 }
0x2332   : > { %s5281_s8 = sshra.s32 %s4138_s6, 4  ;;  %s5282_s8 = int_to_ptr.hbm [resolvable:$true] %s5281_s8 }
0x2333   : > { %s5283_s29 = scalar_lea.hbm %s5282_s8, 8  ;;  %p5288_p12 = scmp.lt.s32.totalorder %s5282_s8, %s6814_s1 }
0x2334   : > { %p5284_p13 = scmp.ne.s32.totalorder %s5282_s8, %s5283_s29  ;;  %p5289_p1 = scmp.lt.s32.totalorder %s5287_s19, %s5283_s29 }
0x2336   : > { %p5285_p0 = pnand %p5284_p13, %p5610_p4  ;;  %p5290_p8 = por %p5289_p1, %p5288_p12 }
0x2338   : > { %p5286_p2 = pneg %p5285_p0 }
0x233a   : > { %p5291_p10 = pnand %p5290_p8, %p5286_p2 }
0x23a3   : > { %v4095_v32 = vpop.f32.mrf.mxu0 }
0x23a4   : > { %v4096_v33 = vadd.f32 %v4790_v15, %v4095_v32 }
0x23a6   : > { %4099 = vst.msk [vmem:[%s1017_s10] sm:$0xff] %vm4098_vm0, %v4096_v33 }
0x23a7   : > { %5294 = shalt.err (!%p5291_p10)
}
0x23a8   : > { %4607 = dma.vmem_to_hbm [thread:$0]  (%p5610_p4), %s4136_s0, 128, %s4138_s6, %s4106_s17  }
0x23a9 PF: > { %s6816_s15 = sld [smem:[#allocation32_spill]]  ;;  %p6818_p6 = scmp.ge.s32.totalorder %s5361_s30, 2 }
0x23ab   : > { %p4646_p11 = pnand %p6818_p6, %p5614_p5 }
0x23ad   : > { %p4647_p3 = pneg %p4646_p11 }
0x23af   : > { %s4149_s20 = sand.u32 1, %s6816_s15  }
0x23b0   : > { %s4150_s7 = scalar_lea.sflag [#allocation4], %s4149_s20 }
0x23b1   : > { %5340 = dma.done.wait (%p4647_p3), %s4150_s7, 1024  }
0x23b2   : > { %5342 = vsyncadd (%p4647_p3), %s4150_s7, 4294966272  ;;  %s4160_s5 = scalar_lea.sflag [#allocation22], %s4149_s20 }
0x23b3   : > { %5344 = dma.done.wait (%p4647_p3), %s4160_s5, 128  }
0x23b4   : > { %5346 = vsyncadd (%p4647_p3), %s4160_s5, 4294967168  ;;  %s6819_s30 = sld [smem:[#allocation34_spill]]  ;;  %s6822_s29 = smov %s5353_s2 }
0x23b5   : > { %s6820_s4 = sld [smem:[#allocation33_spill]] }
0x23b6   : > { %s6821_s6 = sld [smem:[#allocation35_spill]] }
0x23ba   : > { %p51_p4 = scmp.ge.s32.totalorder %s6819_s30, 4  }
0x23bb   : > { %s6823_s2 = smov %s6820_s4 }
0x23bc   :  { %53 = sbr.rel (!%p51_p4) target bundleno = 41 (0x29), region = 262 }
0x23c1   :  { %4166 = vsyncpa [#allocation3], 1 }
0x23c2   :  { %4168 = vsyncpa [#allocation3 + $0x1], 1 }
0x23c3   :  { %4169 = vsyncpa [#allocation6], 1 }
0x23c4   :  { %4171 = vsyncpa [#allocation6 + $0x1], 1 }
0x23c5   :  { %4172 = vsyncpa [#allocation9], 1 }
0x23c6   :  { %4174 = vsyncpa [#allocation9 + $0x1], 1 }
0x23c7   :  { %4175 = vsyncpa [#allocation12], 1 }
0x23c8   :  { %4176 = vsyncpa [#allocation15], 1 }
0x23c9   :  { %4177 = vsyncpa [#allocation18], 1 }
0x23ca   :  { %4178 = vsyncpa [#allocation4], 1 }
0x23cb   :  { %4180 = vsyncpa [#allocation4 + $0x1], 1 }
0x23cc   :  { %4181 = vsyncpa [#allocation22], 1 }
0x23cd   :  { %4183 = vsyncpa [#allocation22 + $0x1], 1 }

</bundles_post_ra>
